<compile_context>
chip_gen: v7x
topology: tpu7x:2x2x1
jax: 0.10.0
libtpu: 0.0.40
codegen_flags: <defaults>
</compile_context>

<pallas_src>
import jax
import jax.numpy as jnp
from jax.experimental import pallas as pl
from jax.experimental.pallas import tpu as pltpu

EFF_MID = 32       # stand-in stem width (EfficientNet stem-ish)
EFF_FEAT = 1280    # efficientnet_b0 feature dim
VIT_FEAT = 768     # vit_base_patch16_224 feature dim
PATCH = 16         # ViT patch size
NUM_CLASSES = 11
CLS_PAD = 128      # lane-dense padded logits width (sliced to NUM_CLASSES in wrapper)


# ---------------------------------------------------------------------------
# Fused kernel
# ---------------------------------------------------------------------------
def _hybrid_fused_kernel(x_eff_ref, x_vit_ref,
                         w_stem_ref, b_stem_ref,
                         w_head_ref, b_head_ref,
                         w_patch_ref, b_patch_ref,
                         w_fc_eff_ref, w_fc_vit_ref, b_fc_ref,
                         o_ref):
    """Whole HybridModel forward, VMEM-resident.

    x_eff_ref  : (C, B, HW)      f32   channels leading (indexed), HW lane-dense
    x_vit_ref  : (B, PD)         f32   patch-pooled pixels (pool hoisted before embed)
    w_stem_ref : (C, EFF_MID, 1) f32   sublane-oriented (broadcast along lanes is cheap)
    b_stem_ref : (1, EFF_MID, 1) f32
    w_head_ref : (EFF_MID, 1280) bf16, b_head_ref : (1, 1280) f32
    w_patch_ref: (PD, 768)       bf16, b_patch_ref: (1, 768)  f32
    w_fc_*_ref : (1280|768, 128) bf16, b_fc_ref   : (1, 128)  f32
    o_ref      : (B, CLS_PAD)    f32   lane-dense logits (first NUM_CLASSES valid)
    """
    C, B, HW = x_eff_ref.shape
    mid = w_stem_ref.shape[1]

    # ---- EfficientNet-like branch -------------------------------------------------
    # 1x1-conv stem: the K=C(=3) contraction as broadcast FMAs on the VPU.
    y = jnp.broadcast_to(b_stem_ref[...], (B, mid, HW)).astype(jnp.float32)
    for c in range(C):                        # C == 3: static unroll, leading-axis views
        xc = x_eff_ref[c]                     # (B, HW)   lane-dense, no sublane slicing
        wc = w_stem_ref[c]                    # (mid, 1)
        y = y + xc[:, None, :] * wc[None, :, :]          # (B,1,HW) * (1,mid,1)
    y = y * jax.nn.sigmoid(y)                 # SiLU in f32 (EUP sigmoid + VPU mul)
    pooled = jnp.mean(y, axis=-1)             # GAP over HW lanes -> (B, mid)

    # conv_head-like projection 32 -> 1280 (+ SiLU): bf16 MXU, f32 accumulate.
    x1 = jnp.dot(pooled.astype(jnp.bfloat16), w_head_ref[...],
                 preferred_element_type=jnp.float32) + b_head_ref[...]
    x1 = x1 * jax.nn.sigmoid(x1)              # (B, 1280) f32

    # ---- ViT-like branch: linear patch embed on pre-pooled patches -----------------
    x2 = jnp.dot(x_vit_ref[...].astype(jnp.bfloat16), w_patch_ref[...],
                 preferred_element_type=jnp.float32) + b_patch_ref[...]   # (B, 768) f32

    # ---- fc head; torch.cat folded into split weights:
    #      cat(x1, x2) @ W_fc == x1 @ W_fc[:1280] + x2 @ W_fc[1280:]
    logits = (jnp.dot(x1.astype(jnp.bfloat16), w_fc_eff_ref[...],
                      preferred_element_type=jnp.float32)
              + jnp.dot(x2.astype(jnp.bfloat16), w_fc_vit_ref[...],
                        preferred_element_type=jnp.float32)
              + b_fc_ref[...])
    o_ref[...] = logits.astype(o_ref.dtype)   # (B, 128) lane-dense store


# ---------------------------------------------------------------------------
# Wrapper
# ---------------------------------------------------------------------------
def hybrid_forward(x_nchw, params):
    B, C, H, W = x_nchw.shape
    assert H % PATCH == 0 and W % PATCH == 0
    HW = H * W
    PD = C * PATCH * PATCH
    ph, pw = H // PATCH, W // PATCH

    # Lane-dense eff-stem layout: channels leading (in-kernel views), HW on lanes.
    x_eff = jnp.transpose(x_nchw, (1, 0, 2, 3)).reshape(C, B, HW).astype(jnp.float32)

    # ViT: hoist the token mean-pool before the (linear) patch embedding.
    # Patches ordered (c, i, j) like nn.Conv2d weights; mean over the (ph, pw) grid.
    x_pp = x_nchw.reshape(B, C, ph, PATCH, pw, PATCH)
    x_pp = jnp.transpose(x_pp, (0, 1, 3, 5, 2, 4)).reshape(B, PD, ph * pw)
    x_vit = jnp.mean(x_pp, axis=-1).astype(jnp.float32)            # (B, PD)

    vmem = pltpu.MemorySpace.VMEM
    out = pl.pallas_call(
        _hybrid_fused_kernel,
        out_shape=jax.ShapeDtypeStruct((B, CLS_PAD), jnp.float32),
        in_specs=[pl.BlockSpec(memory_space=vmem)] * 11,           # whole arrays, VMEM-resident
        out_specs=pl.BlockSpec(memory_space=vmem),
    )(x_eff, x_vit,
      params["w_stem"], params["b_stem"],
      params["w_head"], params["b_head"],
      params["w_patch"], params["b_patch"],
      params["w_fc_eff"], params["w_fc_vit"], params["b_fc"])

    # TODO(synk): at real 224x224 inputs, tile the HW axis with a grid (accumulate the
    # GAP in VMEM scratch via pl.when) and add a 'parallel' batch axis so v7x's second
    # TensorCore is used and the block fits its 64 MiB VMEM.
    return out[:, :NUM_CLASSES]


# ---------------------------------------------------------------------------
# Deterministic parameter init (kernel-ready layouts) + demo
# ---------------------------------------------------------------------------
def init_params(key, cin=3):
    ks = jax.random.split(key, 6)
    pd = cin * PATCH * PATCH
    scale = 0.02
    w_fc = scale * jax.random.normal(ks[3], (EFF_FEAT + VIT_FEAT, NUM_CLASSES), jnp.float32)
    b_fc = scale * jax.random.normal(ks[4], (1, NUM_CLASSES), jnp.float32)
    # fc head: pad lane-dense to CLS_PAD columns, split at the concat boundary.
    w_fc_pad = jnp.zeros((EFF_FEAT + VIT_FEAT, CLS_PAD), jnp.float32)
    w_fc_pad = w_fc_pad.at[:, :NUM_CLASSES].set(w_fc)
    b_fc_pad = jnp.zeros((1, CLS_PAD), jnp.float32).at[:, :NUM_CLASSES].set(b_fc)
    return {
        # stem weights stored sublane-oriented so the in-kernel broadcast along
        # lanes (HW) needs no lane->sublane relayout.
        "w_stem":  scale * jax.random.normal(ks[0], (cin, EFF_MID, 1), jnp.float32),
        "b_stem":  jnp.zeros((1, EFF_MID, 1), jnp.float32),
        # matmul weights in bf16 (f32 accumulate in-kernel); biases stay f32.
        "w_head":  (scale * jax.random.normal(ks[1], (EFF_MID, EFF_FEAT), jnp.float32)
                    ).astype(jnp.bfloat16),
        "b_head":  jnp.zeros((1, EFF_FEAT), jnp.float32),
        "w_patch": (scale * jax.random.normal(ks[2], (pd, VIT_FEAT), jnp.float32)
                    ).astype(jnp.bfloat16),
        "b_patch": jnp.zeros((1, VIT_FEAT), jnp.float32),
        "w_fc_eff": w_fc_pad[:EFF_FEAT].astype(jnp.bfloat16),
        "w_fc_vit": w_fc_pad[EFF_FEAT:].astype(jnp.bfloat16),
        "b_fc":    b_fc_pad,
    }


if __name__ == "__main__":
    key = jax.random.PRNGKey(0)
    k_x, k_p = jax.random.split(key)
    # Small RGB input; H, W multiples of the 16-px ViT patch (NCHW like PyTorch).
    x = jax.random.normal(k_x, (2, 3, 32, 32), jnp.float32)
    params = init_params(k_p, cin=3)

    out = jax.jit(hybrid_forward)(x, params)
    out = jax.block_until_ready(out)
    assert out.shape == (2, NUM_CLASSES), out.shape
    print("KERNEL_OK")
</pallas_src>

<mosaic_0001>
module attributes {stable_mosaic.version = 11 : i64} {
  func.func @_hybrid_fused_kernel(%arg0: memref<3x2x1024xf32, #tpu.memory_space<vmem>>, %arg1: memref<2x768xf32, #tpu.memory_space<vmem>>, %arg2: memref<3x32x1xf32, #tpu.memory_space<vmem>>, %arg3: memref<1x32x1xf32, #tpu.memory_space<vmem>>, %arg4: memref<32x1280xbf16, #tpu.memory_space<vmem>>, %arg5: memref<1x1280xf32, #tpu.memory_space<vmem>>, %arg6: memref<768x768xbf16, #tpu.memory_space<vmem>>, %arg7: memref<1x768xf32, #tpu.memory_space<vmem>>, %arg8: memref<1280x128xbf16, #tpu.memory_space<vmem>>, %arg9: memref<768x128xbf16, #tpu.memory_space<vmem>>, %arg10: memref<1x128xf32, #tpu.memory_space<vmem>>, %arg11: memref<2x128xf32, #tpu.memory_space<vmem>>) attributes {dimension_semantics = [], scalar_prefetch = 0 : i64, scratch_operands = 0 : i64, tpu.core_type = #tpu.core_type<tc>} {
    %c0 = arith.constant 0 : index
    %c0_0 = arith.constant 0 : index
    %c0_1 = arith.constant 0 : index
    %0 = vector.load %arg3[%c0, %c0_0, %c0_1] : memref<1x32x1xf32, #tpu.memory_space<vmem>>, vector<1x32x1xf32>
    %1 = vector.shape_cast %0 : vector<1x32x1xf32> to vector<1x32x1xf32>
    %2 = vector.broadcast %1 : vector<1x32x1xf32> to vector<2x32x1024xf32>
    %c0_2 = arith.constant 0 : index
    %c0_3 = arith.constant 0 : index
    %c0_4 = arith.constant 0 : index
    %3 = vector.load %arg0[%c0_2, %c0_3, %c0_4] : memref<3x2x1024xf32, #tpu.memory_space<vmem>>, vector<1x2x1024xf32>
    %4 = vector.shape_cast %3 : vector<1x2x1024xf32> to vector<2x1024xf32>
    %c0_5 = arith.constant 0 : index
    %c0_6 = arith.constant 0 : index
    %c0_7 = arith.constant 0 : index
    %5 = vector.load %arg2[%c0_5, %c0_6, %c0_7] : memref<3x32x1xf32, #tpu.memory_space<vmem>>, vector<1x32x1xf32>
    %6 = vector.shape_cast %5 : vector<1x32x1xf32> to vector<32x1xf32>
    %7 = vector.shape_cast %4 : vector<2x1024xf32> to vector<2x1x1024xf32>
    %8 = vector.shape_cast %6 : vector<32x1xf32> to vector<1x32x1xf32>
    %9 = vector.broadcast %7 : vector<2x1x1024xf32> to vector<2x32x1024xf32>
    %10 = vector.broadcast %8 : vector<1x32x1xf32> to vector<2x32x1024xf32>
    %11 = arith.mulf %9, %10 : vector<2x32x1024xf32>
    %12 = arith.addf %2, %11 : vector<2x32x1024xf32>
    %c1 = arith.constant 1 : index
    %c0_8 = arith.constant 0 : index
    %c0_9 = arith.constant 0 : index
    %13 = vector.load %arg0[%c1, %c0_8, %c0_9] : memref<3x2x1024xf32, #tpu.memory_space<vmem>>, vector<1x2x1024xf32>
    %14 = vector.shape_cast %13 : vector<1x2x1024xf32> to vector<2x1024xf32>
    %c1_10 = arith.constant 1 : index
    %c0_11 = arith.constant 0 : index
    %c0_12 = arith.constant 0 : index
    %15 = vector.load %arg2[%c1_10, %c0_11, %c0_12] : memref<3x32x1xf32, #tpu.memory_space<vmem>>, vector<1x32x1xf32>
    %16 = vector.shape_cast %15 : vector<1x32x1xf32> to vector<32x1xf32>
    %17 = vector.shape_cast %14 : vector<2x1024xf32> to vector<2x1x1024xf32>
    %18 = vector.shape_cast %16 : vector<32x1xf32> to vector<1x32x1xf32>
    %19 = vector.broadcast %17 : vector<2x1x1024xf32> to vector<2x32x1024xf32>
    %20 = vector.broadcast %18 : vector<1x32x1xf32> to vector<2x32x1024xf32>
    %21 = arith.mulf %19, %20 : vector<2x32x1024xf32>
    %22 = arith.addf %12, %21 : vector<2x32x1024xf32>
    %c2 = arith.constant 2 : index
    %c0_13 = arith.constant 0 : index
    %c0_14 = arith.constant 0 : index
    %23 = vector.load %arg0[%c2, %c0_13, %c0_14] : memref<3x2x1024xf32, #tpu.memory_space<vmem>>, vector<1x2x1024xf32>
    %24 = vector.shape_cast %23 : vector<1x2x1024xf32> to vector<2x1024xf32>
    %c2_15 = arith.constant 2 : index
    %c0_16 = arith.constant 0 : index
    %c0_17 = arith.constant 0 : index
    %25 = vector.load %arg2[%c2_15, %c0_16, %c0_17] : memref<3x32x1xf32, #tpu.memory_space<vmem>>, vector<1x32x1xf32>
    %26 = vector.shape_cast %25 : vector<1x32x1xf32> to vector<32x1xf32>
    %27 = vector.shape_cast %24 : vector<2x1024xf32> to vector<2x1x1024xf32>
    %28 = vector.shape_cast %26 : vector<32x1xf32> to vector<1x32x1xf32>
    %29 = vector.broadcast %27 : vector<2x1x1024xf32> to vector<2x32x1024xf32>
    %30 = vector.broadcast %28 : vector<1x32x1xf32> to vector<2x32x1024xf32>
    %31 = arith.mulf %29, %30 : vector<2x32x1024xf32>
    %32 = arith.addf %22, %31 : vector<2x32x1024xf32>
    %33 = arith.negf %32 : vector<2x32x1024xf32>
    %34 = math.exp %33 : vector<2x32x1024xf32>
    %cst = arith.constant 1.000000e+00 : f32
    %35 = vector.broadcast %cst : f32 to vector<2x32x1024xf32>
    %36 = arith.addf %35, %34 : vector<2x32x1024xf32>
    %37 = arith.divf %35, %36 : vector<2x32x1024xf32>
    %38 = arith.mulf %32, %37 : vector<2x32x1024xf32>
    %cst_18 = arith.constant dense<0.000000e+00> : vector<2x32xf32>
    %39 = vector.multi_reduction <add>, %38, %cst_18 [2] : vector<2x32x1024xf32> to vector<2x32xf32>
    %cst_19 = arith.constant 1.024000e+03 : f32
    %40 = vector.broadcast %cst_19 : f32 to vector<2x32xf32>
    %41 = arith.divf %39, %40 : vector<2x32xf32>
    %42 = arith.truncf %41 : vector<2x32xf32> to vector<2x32xbf16>
    %c0_20 = arith.constant 0 : index
    %c0_21 = arith.constant 0 : index
    %43 = vector.load %arg4[%c0_20, %c0_21] : memref<32x1280xbf16, #tpu.memory_space<vmem>>, vector<32x1280xbf16>
    %cst_22 = arith.constant dense<0.000000e+00> : vector<2x1280xf32>
    %44 = tpu.matmul %42, %43, %cst_22 {dimension_numbers = #tpu.dot_dimension_numbers<[1], [0], [0], [1], [0, 0, 1, 1], [], []>} : vector<2x32xbf16>, vector<32x1280xbf16>, vector<2x1280xf32> -> vector<2x1280xf32>
    %c0_23 = arith.constant 0 : index
    %c0_24 = arith.constant 0 : index
    %45 = vector.load %arg5[%c0_23, %c0_24] : memref<1x1280xf32, #tpu.memory_space<vmem>>, vector<1x1280xf32>
    %46 = vector.broadcast %45 : vector<1x1280xf32> to vector<2x1280xf32>
    %47 = arith.addf %44, %46 : vector<2x1280xf32>
    %48 = arith.negf %47 : vector<2x1280xf32>
    %49 = math.exp %48 : vector<2x1280xf32>
    %cst_25 = arith.constant 1.000000e+00 : f32
    %50 = vector.broadcast %cst_25 : f32 to vector<2x1280xf32>
    %51 = arith.addf %50, %49 : vector<2x1280xf32>
    %52 = arith.divf %50, %51 : vector<2x1280xf32>
    %53 = arith.mulf %47, %52 : vector<2x1280xf32>
    %c0_26 = arith.constant 0 : index
    %c0_27 = arith.constant 0 : index
    %54 = vector.load %arg1[%c0_26, %c0_27] : memref<2x768xf32, #tpu.memory_space<vmem>>, vector<2x768xf32>
    %55 = arith.truncf %54 : vector<2x768xf32> to vector<2x768xbf16>
    %c0_28 = arith.constant 0 : index
    %c0_29 = arith.constant 0 : index
    %56 = vector.load %arg6[%c0_28, %c0_29] : memref<768x768xbf16, #tpu.memory_space<vmem>>, vector<768x768xbf16>
    %cst_30 = arith.constant dense<0.000000e+00> : vector<2x768xf32>
    %57 = tpu.matmul %55, %56, %cst_30 {dimension_numbers = #tpu.dot_dimension_numbers<[1], [0], [0], [1], [0, 0, 1, 1], [], []>} : vector<2x768xbf16>, vector<768x768xbf16>, vector<2x768xf32> -> vector<2x768xf32>
    %c0_31 = arith.constant 0 : index
    %c0_32 = arith.constant 0 : index
    %58 = vector.load %arg7[%c0_31, %c0_32] : memref<1x768xf32, #tpu.memory_space<vmem>>, vector<1x768xf32>
    %59 = vector.broadcast %58 : vector<1x768xf32> to vector<2x768xf32>
    %60 = arith.addf %57, %59 : vector<2x768xf32>
    %61 = arith.truncf %53 : vector<2x1280xf32> to vector<2x1280xbf16>
    %c0_33 = arith.constant 0 : index
    %c0_34 = arith.constant 0 : index
    %62 = vector.load %arg8[%c0_33, %c0_34] : memref<1280x128xbf16, #tpu.memory_space<vmem>>, vector<1280x128xbf16>
    %cst_35 = arith.constant dense<0.000000e+00> : vector<2x128xf32>
    %63 = tpu.matmul %61, %62, %cst_35 {dimension_numbers = #tpu.dot_dimension_numbers<[1], [0], [0], [1], [0, 0, 1, 1], [], []>} : vector<2x1280xbf16>, vector<1280x128xbf16>, vector<2x128xf32> -> vector<2x128xf32>
    %64 = arith.truncf %60 : vector<2x768xf32> to vector<2x768xbf16>
    %c0_36 = arith.constant 0 : index
    %c0_37 = arith.constant 0 : index
    %65 = vector.load %arg9[%c0_36, %c0_37] : memref<768x128xbf16, #tpu.memory_space<vmem>>, vector<768x128xbf16>
    %cst_38 = arith.constant dense<0.000000e+00> : vector<2x128xf32>
    %66 = tpu.matmul %64, %65, %cst_38 {dimension_numbers = #tpu.dot_dimension_numbers<[1], [0], [0], [1], [0, 0, 1, 1], [], []>} : vector<2x768xbf16>, vector<768x128xbf16>, vector<2x128xf32> -> vector<2x128xf32>
    %67 = arith.addf %63, %66 : vector<2x128xf32>
    %c0_39 = arith.constant 0 : index
    %c0_40 = arith.constant 0 : index
    %68 = vector.load %arg10[%c0_39, %c0_40] : memref<1x128xf32, #tpu.memory_space<vmem>>, vector<1x128xf32>
    %69 = vector.broadcast %68 : vector<1x128xf32> to vector<2x128xf32>
    %70 = arith.addf %67, %69 : vector<2x128xf32>
    %c0_41 = arith.constant 0 : index
    %c0_42 = arith.constant 0 : index
    %71 = vector.load %arg11[%c0_41, %c0_42] : memref<2x128xf32, #tpu.memory_space<vmem>>, vector<2x128xf32>
    tpu.vector_store %arg11[%c0_41, %c0_42], %70 {strides = array<i32>} : memref<2x128xf32, #tpu.memory_space<vmem>>, vector<2x128xf32>,
    return
  }
}

</mosaic_0001>

<bundles_post_ra>
// kernel: hybrid_forward.1
= control target key start
LH: loop header
LB: loop body
LE: loop exit
PB: predicated region body
PF: predicated region fallthrough
CT: control target
= control target key end

     0   :  { %16 = vsyncpa [#allocation3], 0  ;;  %s8962_s0 = inlined_call_operand.vmem [shape: f32[3,2,1024], index: 0, kind: input, shape index: {}]   ;;  %s8963_s1 = inlined_call_operand.vmem [shape: f32[2,768], index: 1, kind: input, shape index: {}]   ;;  %s8964_s2 = inlined_call_operand.vmem [shape: f32[3,32,1], index: 2, kind: input, shape index: {}]   ;;  %s8965_s3 = inlined_call_operand.vmem [shape: f32[1,32,1], index: 3, kind: input, shape index: {}]   ;;  %s8966_s4 = inlined_call_operand.hbm [shape: bf16[32,1280], index: 4, kind: input, shape index: {}]   ;;  %s8967_s5 = inlined_call_operand.hbm [shape: f32[1,1280], index: 5, kind: input, shape index: {}]   ;;  %s8968_s6 = inlined_call_operand.hbm [shape: bf16[768,768], index: 6, kind: input, shape index: {}]   ;;  %s8969_s7 = inlined_call_operand.hbm [shape: f32[1,768], index: 7, kind: input, shape index: {}]   ;;  %s8970_s8 = inlined_call_operand.vmem [shape: bf16[1280,128], index: 8, kind: input, shape index: {}]   ;;  %s8971_s9 = inlined_call_operand.hbm [shape: bf16[768,128], index: 9, kind: input, shape index: {}]   ;;  %s8972_s10 = inlined_call_operand.hbm [shape: f32[1,128], index: 10, kind: input, shape index: {}]   ;;  %s8973_s11 = inlined_call_operand.hbm [shape: f32[2,128], index: 11, kind: output, shape index: {}]  }
   0x1   :  { %17 = vsyncpa [#allocation6], 0 }
   0x2   :  { %18 = vsyncpa [#allocation9], 0 }
   0x3   :  { %19 = vsyncpa [#allocation12], 0 }
   0x4   :  { %20 = vsyncpa [#allocation4], 0  ;;  %s7313_s17 = smov [#allocation5]   ;;  %s7314_s19 = smov [#allocation8]  }
   0x5   :  { %s47_s18 = sshll.u32 %s7313_s17, 4  ;;  %s69_s20 = sshll.u32 %s7314_s19, 4  ;;  %s48_s18 = int_to_ptr.vmem [resolvable:$true] %s47_s18  ;;  %s70_s20 = int_to_ptr.vmem [resolvable:$true] %s69_s20 }
   0x6   :  { %s7149_s23 = scalar_lea.hbm %s8967_s5, 160 }
   0x7   :  { %p7150_p0 = scmp.ne.s32.totalorder %s8967_s5, %s7149_s23  ;;  %p7153_p1 = scmp.lt.u32.totalorder %s7149_s23, %s8967_s5 }
   0x9   :  { %p7155_p2 = pnand %p7153_p1, %p7150_p0 }
   0xb   :  { %7158 = shalt.err (!%p7155_p2)
}
   0xc   :  { %s7159_s28 = scalar_lea.vmem %s48_s18, 160  ;;  %p7164_p4 = scmp.lt.s32.totalorder %s48_s18, %s48_s18 }
   0xd   :  { %p7160_p3 = scmp.ne.s32.totalorder %s48_s18, %s7159_s28  ;;  %p7165_p5 = scmp.lt.s32.totalorder %s7159_s28, %s7159_s28 }
   0xf   :  { %p7166_p6 = por %p7165_p5, %p7164_p4 }
  0x11   :  { %p7167_p7 = pnand %p7166_p6, %p7160_p3 }
  0x13   :  { %7170 = shalt.err (!%p7167_p7)
}
  0x14   :  { %50 = dma.hbm_to_vmem [thread:$0]  %s8967_s5, 160, %s48_s18, [#allocation6]  }
  0x15   :  { %s7171_s14 = scalar_lea.hbm %s8969_s7, 96 }
  0x16   :  { %p7172_p8 = scmp.ne.s32.totalorder %s8969_s7, %s7171_s14  ;;  %p7175_p9 = scmp.lt.u32.totalorder %s7171_s14, %s8969_s7 }
  0x18   :  { %p7177_p10 = pnand %p7175_p9, %p7172_p8 }
  0x1a   :  { %7180 = shalt.err (!%p7177_p10)
}
  0x1b   :  { %s7181_s21 = scalar_lea.vmem %s70_s20, 96  ;;  %p7186_p12 = scmp.lt.s32.totalorder %s70_s20, %s70_s20 }
  0x1c   :  { %p7182_p11 = scmp.ne.s32.totalorder %s70_s20, %s7181_s21  ;;  %p7187_p13 = scmp.lt.s32.totalorder %s7181_s21, %s7181_s21 }
  0x1e   :  { %p7188_p0 = por %p7187_p13, %p7186_p12 }
  0x20   :  { %p7189_p1 = pnand %p7188_p0, %p7182_p11 }
  0x22   :  { %7192 = shalt.err (!%p7189_p1)
}
  0x23   :  { %72 = dma.hbm_to_vmem [thread:$0]  %s8969_s7, 96, %s70_s20, [#allocation9]  }
  0x24   :  { %s7315_s22 = smov [#allocation2]   ;;  %s7193_s26 = scalar_lea.hbm %s8966_s4, 2560 }
  0x25   :  { %s34_s23 = sshll.u32 %s7315_s22, 4  ;;  %p7194_p2 = scmp.ne.s32.totalorder %s8966_s4, %s7193_s26  ;;  %s35_s23 = int_to_ptr.vmem [resolvable:$true] %s34_s23 }
  0x26   :  { %p7197_p3 = scmp.lt.u32.totalorder %s7193_s26, %s8966_s4 }
  0x28   :  { %p7199_p4 = pnand %p7197_p3, %p7194_p2 }
  0x2a   :  { %7202 = shalt.err (!%p7199_p4)
}
  0x2b   :  { %s7203_s12 = scalar_lea.vmem %s35_s23, 2560  ;;  %p7208_p6 = scmp.lt.s32.totalorder %s35_s23, %s35_s23 }
  0x2c   :  { %p7204_p5 = scmp.ne.s32.totalorder %s35_s23, %s7203_s12  ;;  %p7209_p7 = scmp.lt.s32.totalorder %s7203_s12, %s7203_s12 }
  0x2e   :  { %p7210_p8 = por %p7209_p7, %p7208_p6 }
  0x30   :  { %p7211_p9 = pnand %p7210_p8, %p7204_p5 }
  0x32   :  { %7214 = shalt.err (!%p7211_p9)
}
  0x33   :  { %s7316_s7 = smov 640   ;;  %s7317_s20 = smov 40  }
  0x34   :  { %40 = dma.hbm_to_vmem [thread:$0]  %s8966_s4, 2560, %s35_s23, [#allocation3], %s7316_s7, %s7316_s7, %s7317_s20  }
  0x35   :  { %s7318_s15 = smov [#allocation7]   ;;  %s7215_s21 = scalar_lea.hbm %s8968_s6, 36864 }
  0x36   :  { %s56_s16 = sshll.u32 %s7318_s15, 4  ;;  %p7216_p10 = scmp.ne.s32.totalorder %s8968_s6, %s7215_s21  ;;  %s57_s16 = int_to_ptr.vmem [resolvable:$true] %s56_s16 }
  0x37   :  { %p7219_p11 = scmp.lt.u32.totalorder %s7215_s21, %s8968_s6 }
  0x39   :  { %p7221_p12 = pnand %p7219_p11, %p7216_p10 }
  0x3b   :  { %7224 = shalt.err (!%p7221_p12)
}
  0x3c   :  { %s7225_s25 = scalar_lea.vmem %s57_s16, 36864  ;;  %p7230_p0 = scmp.lt.s32.totalorder %s57_s16, %s57_s16 }
  0x3d   :  { %p7226_p13 = scmp.ne.s32.totalorder %s57_s16, %s7225_s25  ;;  %p7231_p1 = scmp.lt.s32.totalorder %s7225_s25, %s7225_s25 }
  0x3f   :  { %p7232_p2 = por %p7231_p1, %p7230_p0 }
  0x41   :  { %p7233_p3 = pnand %p7232_p2, %p7226_p13 }
  0x43   :  { %7236 = shalt.err (!%p7233_p3)
}
  0x44   :  { %s7319_s4 = smov 384   ;;  %s7320_s23 = smov 24  }
  0x45   :  { %62 = dma.hbm_to_vmem [thread:$0]  %s8968_s6, 36864, %s57_s16, [#allocation6], %s7319_s4, %s7319_s4, %s7320_s23  }
  0x46   :  { %s7321_s28 = smov [#allocation10]   ;;  %s7237_s7 = scalar_lea.hbm %s8971_s9, 6144 }
  0x47   :  { %s80_s29 = sshll.u32 %s7321_s28, 4  ;;  %p7238_p4 = scmp.ne.s32.totalorder %s8971_s9, %s7237_s7  ;;  %s81_s29 = int_to_ptr.vmem [resolvable:$true] %s80_s29 }
  0x48   :  { %p7241_p5 = scmp.lt.u32.totalorder %s7237_s7, %s8971_s9 }
  0x4a   :  { %p7243_p6 = pnand %p7241_p5, %p7238_p4 }
  0x4c   :  { %7246 = shalt.err (!%p7243_p6)
}
  0x4d   :  { %s7247_s17 = scalar_lea.vmem %s81_s29, 6144  ;;  %p7252_p8 = scmp.lt.s32.totalorder %s81_s29, %s81_s29 }
  0x4e   :  { %p7248_p7 = scmp.ne.s32.totalorder %s81_s29, %s7247_s17  ;;  %p7253_p9 = scmp.lt.s32.totalorder %s7247_s17, %s7247_s17 }
  0x50   :  { %p7254_p10 = por %p7253_p9, %p7252_p8 }
  0x52   :  { %p7255_p11 = pnand %p7254_p10, %p7248_p7 }
  0x54   :  { %7258 = shalt.err (!%p7255_p11)
}
  0x55   :  { %s7322_s6 = smov 64   ;;  %s7323_s16 = smov 4  }
  0x56   :  { %86 = dma.hbm_to_vmem [thread:$0]  %s8971_s9, 6144, %s81_s29, [#allocation9], %s7322_s6, %s7322_s6, %s7323_s16  }
  0x57   :  { %s7324_s5 = smov [#allocation11]   ;;  %s7259_s25 = scalar_lea.hbm %s8972_s10, 16 }
  0x58   :  { %s93_s18 = sshll.u32 %s7324_s5, 4  ;;  %p7260_p12 = scmp.ne.s32.totalorder %s8972_s10, %s7259_s25  ;;  %s94_s18 = int_to_ptr.vmem [resolvable:$true] %s93_s18 }
  0x59   :  { %p7263_p13 = scmp.lt.u32.totalorder %s7259_s25, %s8972_s10 }
  0x5b   :  { %p7265_p0 = pnand %p7263_p13, %p7260_p12 }
  0x5d   :  { %7268 = shalt.err (!%p7265_p0)
}
  0x5e   :  { %s7269_s28 = scalar_lea.vmem %s94_s18, 16  ;;  %s7273_s9 = scalar_lea.vmem %s94_s18, 32 }
  0x5f   :  { %p7270_p1 = scmp.ne.s32.totalorder %s94_s18, %s7269_s28  ;;  %p7274_p2 = scmp.lt.s32.totalorder %s94_s18, %s94_s18 }
  0x60   :  { %p7275_p3 = scmp.lt.s32.totalorder %s7273_s9, %s7269_s28 }
  0x62   :  { %p7276_p4 = por %p7275_p3, %p7274_p2 }
  0x64   :  { %p7277_p5 = pnand %p7276_p4, %p7270_p1 }
  0x66   :  { %7280 = shalt.err (!%p7277_p5)
}
  0x67   :  { %96 = dma.hbm_to_vmem [thread:$0]  %s8972_s10, 16, %s94_s18, [#allocation12]  }
  0x68   :  { %7303 = dma.done.wait [#allocation3], 2560  }
  0x69   :  { %7304 = vsyncadd [#allocation3], 4294964736 }
  0x6a   :  { %7305 = dma.done.wait [#allocation6], 37024  }
  0x6b   :  { %7306 = vsyncadd [#allocation6], 4294930272 }
  0x6c   :  { %7307 = dma.done.wait [#allocation9], 6240  }
  0x6d   :  { %7308 = vsyncadd [#allocation9], 4294961056 }
  0x6e   :  { %7309 = dma.done.wait [#allocation12], 16  }
  0x6f   :  { %7310 = vsyncadd [#allocation12], 4294967280  ;;  %v8974_v0 = vmov 0   ;;  %v144_v1 = vld [vmem:[%s8964_s2 + $0x10] sm:$0xff]  ;;  %v142_v2 = vld [vmem:[%s8964_s2] sm:$0xff]  ;;  %v8976_v17 = vlaneseq  ;;  %vm1530_vm0 = vcmask 130112  }
  0x70   :  { %6261 = vset.pattern.permute.xlu1 %v8974_v0  ;;  %6260 = vset.pattern.permute.xlu0 %v8974_v0  ;;  %v145_v3 = vld [vmem:[%s8964_s2 + $0x18] sm:$0xff]  ;;  %v143_v4 = vld [vmem:[%s8964_s2 + $0x8] sm:$0xff]  ;;  %v116_v6 = vld [vmem:[%s8965_s3] sm:$0xff]  ;;  %vm1537_vm1 = vcmask 195712   ;;  %vm1544_vm2 = vcmask 261312   ;;  %vm1565_vm3 = vcmask 1041409  }
  0x71   :  { %1704 = vmatprep.mubr.bf16.mxu0 %v8974_v0  ;;  %1745 = vmatprep.mubr.bf16.mxu1 %v8974_v0  ;;  %v117_v5 = vld [vmem:[%s8965_s3 + $0x8] sm:$0xff]  ;;  %v5508_v8 = vld [vmem:[%s8964_s2 + $0x20] sm:$0xff]  ;;  %v119_v9 = vld [vmem:[%s8965_s3 + $0x18] sm:$0xff]  ;;  %v7513_v18 = vshrl.u32 %v8976_v17, 7  ;;  %vm1668_vm4 = vcmask 261120  }
  0x72   :  { %256 = vperm.xlu1 %6261, %v144_v1   ;;  %246 = vperm.xlu0 %6260, %v142_v2   ;;  %v5509_v7 = vld [vmem:[%s8964_s2 + $0x28] sm:$0xff]  ;;  %v118_v10 = vld [vmem:[%s8965_s3 + $0x10] sm:$0xff]  ;;  %v5511_v11 = vld [vmem:[%s8964_s2 + $0x38] sm:$0xff] }
  0x73   :  { %v5510_v12 = vld [vmem:[%s8964_s2 + $0x30] sm:$0xff]  ;;  %v5517_v13 = vld [vmem:[%s8964_s2 + $0x48] sm:$0xff]  ;;  %v5516_v14 = vld [vmem:[%s8964_s2 + $0x40] sm:$0xff]  ;;  %9098 = vst [vmem:[#allocation19_spill] sm:$0xff] %v7513_v18  ;;  %v7522_v21 = vsub.s32 0, %v7513_v18  ;;  %v7525_v22 = vsub.s32 1, %v7513_v18 }
  0x74   :  { %v5519_v15 = vld [vmem:[%s8964_s2 + $0x58] sm:$0xff]  ;;  %v5518_v16 = vld [vmem:[%s8964_s2 + $0x50] sm:$0xff]  ;;  %v5504_v19 = vld.sshfl [vmem:[%s8962_s0] sm:$0xff pattern:$0x75316420]  ;;  %v7528_v23 = vsub.s32 2, %v7513_v18 }
  0x75   :  { %v5505_v20 = vld.sshfl [vmem:[%s8962_s0 + $0x8] sm:$0xff pattern:$0x75316420]  ;;  %9099 = vst [vmem:[#allocation20_spill] sm:$0xff] %v7522_v21  ;;  %9100 = vst [vmem:[#allocation21_spill] sm:$0xff] %v7525_v22  ;;  %v7531_v24 = vsub.s32 3, %v7513_v18 }
  0x76   :  { %261 = vperm.xlu1 %6261, %v145_v3   ;;  %251 = vperm.xlu0 %6260, %v143_v4   ;;  %9101 = vst [vmem:[#allocation22_spill] sm:$0xff] %v7528_v23  ;;  %v7534_v25 = vsub.s32 4, %v7513_v18  ;;  %v7537_v26 = vsub.s32 5, %v7513_v18  ;;  %v5512_v27 = vld.sshfl [vmem:[%s8962_s0 + $0x10] sm:$0xff pattern:$0x75316420]  ;;  %v162_v31 = vcombine.low %v5504_v19, %v5505_v20  ;;  %v163_v38 = vcombine.high %v5504_v19, %v5505_v20 }
  0x77   :  { %9102 = vst [vmem:[#allocation23_spill] sm:$0xff] %v7531_v24  ;;  %v5513_v28 = vld.sshfl [vmem:[%s8962_s0 + $0x18] sm:$0xff pattern:$0x75316420]  ;;  %v7546_v29 = vsub.s32 6, %v7513_v18  ;;  %v7549_v30 = vsub.s32 7, %v7513_v18 }
  0x78   :  { %9103 = vst [vmem:[#allocation24_spill] sm:$0xff] %v7534_v25  ;;  %9104 = vst [vmem:[#allocation25_spill] sm:$0xff] %v7537_v26  ;;  %v5520_v32 = vld.sshfl [vmem:[%s8962_s0 + $0x20] sm:$0xff pattern:$0x75316420]  ;;  %v416_v34 = vcombine.low %v5512_v27, %v5513_v28  ;;  %v7558_v35 = vrot.slane %v162_v31, %v7522_v21  ;;  %v7561_v36 = vrot.slane %v162_v31, %v7525_v22 }
  0x79   :  { %9105 = vst [vmem:[#allocation26_spill] sm:$0xff] %v7546_v29  ;;  %9106 = vst [vmem:[#allocation27_spill] sm:$0xff] %v7549_v30  ;;  %v5521_v33 = vld.sshfl [vmem:[%s8962_s0 + $0x28] sm:$0xff pattern:$0x75316420]  ;;  %v7564_v37 = vrot.slane %v162_v31, %v7528_v23  ;;  %v7567_v39 = vrot.slane %v162_v31, %v7531_v24  ;;  %v7570_v40 = vrot.slane %v162_v31, %v7534_v25 }
  0x7a   :  { %127 = vperm.xlu1 %6261, %v117_v5   ;;  %122 = vperm.xlu0 %6260, %v116_v6   ;;  %9107 = vst [vmem:[#allocation28_spill] sm:$0xff] %v7558_v35  ;;  %9108 = vst [vmem:[#allocation29_spill] sm:$0xff] %v7561_v36  ;;  %v7573_v41 = vrot.slane %v162_v31, %v7537_v26  ;;  %v7576_v42 = vrot.slane %v162_v31, %v7546_v29 }
  0x7b   :  { %9109 = vst [vmem:[#allocation30_spill] sm:$0xff] %v7564_v37  ;;  %9110 = vst [vmem:[#allocation31_spill] sm:$0xff] %v7567_v39  ;;  %v7579_v43 = vrot.slane %v162_v31, %v7549_v30  ;;  %v7582_v44 = vrot.slane %v416_v34, %v7522_v21  ;;  %v7585_v45 = vrot.slane %v416_v34, %v7525_v22 }
  0x7c   :  { %9111 = vst [vmem:[#allocation32_spill] sm:$0xff] %v7570_v40  ;;  %9112 = vst [vmem:[#allocation33_spill] sm:$0xff] %v7573_v41  ;;  %v670_v46 = vcombine.low %v5520_v32, %v5521_v33  ;;  %v7588_v47 = vrot.slane %v416_v34, %v7528_v23  ;;  %v7591_v48 = vrot.slane %v416_v34, %v7531_v24 }
  0x7d   :  { %9113 = vst [vmem:[#allocation34_spill] sm:$0xff] %v7576_v42  ;;  %9114 = vst [vmem:[#allocation35_spill] sm:$0xff] %v7579_v43  ;;  %v7594_v49 = vrot.slane %v416_v34, %v7534_v25  ;;  %v7597_v50 = vrot.slane %v416_v34, %v7537_v26  ;;  %v7600_v51 = vrot.slane %v416_v34, %v7546_v29 }
  0x7e   :  { %505 = vperm.xlu1 %6261, %v5509_v7   ;;  %500 = vperm.xlu0 %6260, %v5508_v8   ;;  %9115 = vst [vmem:[#allocation36_spill] sm:$0xff] %v7582_v44  ;;  %9116 = vst [vmem:[#allocation37_spill] sm:$0xff] %v7585_v45  ;;  %v7603_v52 = vrot.slane %v416_v34, %v7549_v30  ;;  %v7606_v53 = vrot.slane %v163_v38, %v7522_v21 }
  0x7f   :  { %9117 = vst [vmem:[#allocation38_spill] sm:$0xff] %v7588_v47  ;;  %9118 = vst [vmem:[#allocation39_spill] sm:$0xff] %v7591_v48  ;;  %v7609_v54 = vrot.slane %v163_v38, %v7525_v22  ;;  %v7612_v55 = vrot.slane %v163_v38, %v7528_v23  ;;  %v7615_v56 = vrot.slane %v163_v38, %v7531_v24 }
  0x80   :  { %9119 = vst [vmem:[#allocation40_spill] sm:$0xff] %v7594_v49  ;;  %9120 = vst [vmem:[#allocation41_spill] sm:$0xff] %v7597_v50  ;;  %v7618_v57 = vrot.slane %v163_v38, %v7534_v25  ;;  %v417_v58 = vcombine.high %v5512_v27, %v5513_v28  ;;  %v7621_v59 = vrot.slane %v670_v46, %v7522_v21 }
  0x81   :  { %9121 = vst [vmem:[#allocation42_spill] sm:$0xff] %v7600_v51  ;;  %9122 = vst [vmem:[#allocation43_spill] sm:$0xff] %v7603_v52  ;;  %v7624_v60 = vrot.slane %v670_v46, %v7525_v22  ;;  %v7627_v61 = vrot.slane %v163_v38, %v7537_v26  ;;  %v7630_v62 = vrot.slane %v163_v38, %v7546_v29 }
  0x82   :  { %137 = vperm.xlu1 %6261, %v119_v9   ;;  %132 = vperm.xlu0 %6260, %v118_v10   ;;  %9123 = vst [vmem:[#allocation44_spill] sm:$0xff] %v7606_v53  ;;  %9124 = vst [vmem:[#allocation45_spill] sm:$0xff] %v7609_v54  ;;  %v7633_v63 = vrot.slane %v670_v46, %v7528_v23  ;;  %v7636_v1 = vrot.slane %v670_v46, %v7531_v24 }
  0x83   :  { %9125 = vst [vmem:[#allocation46_spill] sm:$0xff] %v7612_v55  ;;  %9126 = vst [vmem:[#allocation47_spill] sm:$0xff] %v7615_v56  ;;  %v7639_v2 = vrot.slane %v670_v46, %v7534_v25  ;;  %v671_v3 = vcombine.high %v5520_v32, %v5521_v33  ;;  %v7642_v4 = vrot.slane %v670_v46, %v7537_v26 }
  0x84   :  { %9127 = vst [vmem:[#allocation48_spill] sm:$0xff] %v7618_v57  ;;  %9128 = vst [vmem:[#allocation49_spill] sm:$0xff] %v7621_v59  ;;  %v7645_v5 = vrot.slane %v670_v46, %v7546_v29  ;;  %v7648_v6 = vrot.slane %v670_v46, %v7549_v30  ;;  %v7651_v7 = vrot.slane %v163_v38, %v7549_v30 }
  0x85   :  { %9129 = vst [vmem:[#allocation50_spill] sm:$0xff] %v7624_v60  ;;  %9130 = vst [vmem:[#allocation51_spill] sm:$0xff] %v7627_v61  ;;  %v7654_v8 = vrot.slane %v417_v58, %v7522_v21  ;;  %v7657_v9 = vrot.slane %v417_v58, %v7525_v22  ;;  %v7660_v10 = vrot.slane %v417_v58, %v7528_v23 }
  0x86   :  { %515 = vperm.xlu1 %6261, %v5511_v11   ;;  %510 = vperm.xlu0 %6260, %v5510_v12   ;;  %9131 = vst [vmem:[#allocation52_spill] sm:$0xff] %v7630_v62  ;;  %9132 = vst [vmem:[#allocation53_spill] sm:$0xff] %v7633_v63  ;;  %v7663_v11 = vrot.slane %v417_v58, %v7531_v24  ;;  %v7666_v12 = vrot.slane %v417_v58, %v7534_v25 }
  0x87   :  { %9133 = vst [vmem:[#allocation54_spill] sm:$0xff] %v7636_v1  ;;  %9134 = vst [vmem:[#allocation55_spill] sm:$0xff] %v7639_v2  ;;  %v7681_v19 = vrot.slane %v671_v3, %v7525_v22  ;;  %v7684_v20 = vrot.slane %v671_v3, %v7528_v23  ;;  %v7687_v27 = vrot.slane %v671_v3, %v7531_v24 }
  0x88   :  { %9135 = vst [vmem:[#allocation56_spill] sm:$0xff] %v7642_v4  ;;  %9136 = vst [vmem:[#allocation57_spill] sm:$0xff] %v7645_v5  ;;  %v7692_v32 = vrot.slane %v671_v3, %v7534_v25  ;;  %v7695_v33 = vrot.slane %v671_v3, %v7537_v26  ;;  %v7698_v34 = vrot.slane %v671_v3, %v7546_v29 }
  0x89   :  { %9137 = vst [vmem:[#allocation58_spill] sm:$0xff] %v7648_v6  ;;  %9138 = vst [vmem:[#allocation59_spill] sm:$0xff] %v7651_v7  ;;  %v7701_v38 = vrot.slane %v671_v3, %v7549_v30 }
  0x8a   :  { %759 = vperm.xlu1 %6261, %v5517_v13   ;;  %754 = vperm.xlu0 %6260, %v5516_v14   ;;  %9139 = vst [vmem:[#allocation60_spill] sm:$0xff] %v7654_v8  ;;  %9140 = vst [vmem:[#allocation61_spill] sm:$0xff] %v7657_v9  ;;  %v7669_v13 = vrot.slane %v417_v58, %v7537_v26  ;;  %v7672_v14 = vrot.slane %v417_v58, %v7546_v29 }
  0x8b   :  { %9141 = vst [vmem:[#allocation62_spill] sm:$0xff] %v7660_v10  ;;  %9142 = vst [vmem:[#allocation63_spill] sm:$0xff] %v7663_v11 }
  0x8c   :  { %9143 = vst [vmem:[#allocation64_spill] sm:$0xff] %v7666_v12  ;;  %9144 = vst [vmem:[#allocation65_spill] sm:$0xff] %v7669_v13 }
  0x8d   :  { %9145 = vst [vmem:[#allocation66_spill] sm:$0xff] %v7672_v14  ;;  %9148 = vst [vmem:[#allocation69_spill] sm:$0xff] %v7681_v19 }
  0x8e   :  { %769 = vperm.xlu1 %6261, %v5519_v15   ;;  %764 = vperm.xlu0 %6260, %v5518_v16   ;;  %v7675_v15 = vrot.slane %v417_v58, %v7549_v30  ;;  %v7678_v16 = vrot.slane %v671_v3, %v7522_v21  ;;  %9149 = vst [vmem:[#allocation70_spill] sm:$0xff] %v7684_v20  ;;  %9150 = vst [vmem:[#allocation71_spill] sm:$0xff] %v7687_v27 }
  0x8f   :  { %9152 = vst [vmem:[#allocation73_spill] sm:$0xff] %v7692_v32  ;;  %9153 = vst [vmem:[#allocation74_spill] sm:$0xff] %v7695_v33 }
  0x90   :  { %9146 = vst [vmem:[#allocation67_spill] sm:$0xff] %v7675_v15  ;;  %9147 = vst [vmem:[#allocation68_spill] sm:$0xff] %v7678_v16 }
  0x91   :  { %9154 = vst [vmem:[#allocation75_spill] sm:$0xff] %v7698_v34  ;;  %9155 = vst [vmem:[#allocation76_spill] sm:$0xff] %v7701_v38 }
  0xf1   :  { %v7689_v28 = vpop.permute.xlu1 %256  ;;  %v247_v31 = vpop.permute.xlu0 %246 }
  0xf2   :  { %9151 = vst [vmem:[#allocation72_spill] sm:$0xff] %v7689_v28  ;;  %v264_v46 = vmul.f32 %v247_v31, %v7558_v35  ;;  %v265_v58 = vmul.f32 %v247_v31, %v7561_v36  ;;  %v266_v0 = vmul.f32 %v247_v31, %v7564_v37  ;;  %v267_v17 = vmul.f32 %v247_v31, %v7567_v39 }
  0xf3   :  { %v268_v25 = vmul.f32 %v247_v31, %v7570_v40  ;;  %v269_v24 = vmul.f32 %v247_v31, %v7573_v41  ;;  %v270_v26 = vmul.f32 %v247_v31, %v7576_v42  ;;  %v271_v29 = vmul.f32 %v247_v31, %v7579_v43 }
  0xf4   :  { %v7712_v22 = vmul.f32 %v247_v31, %v7606_v53  ;;  %v7715_v3 = vmul.f32 %v247_v31, %v7609_v54  ;;  %v7718_v30 = vmul.f32 %v247_v31, %v7612_v55  ;;  %v7721_v23 = vmul.f32 %v247_v31, %v7615_v56 }
  0xf5   :  { %v7723_v21 = vpop.permute.xlu1 %261  ;;  %v7725_v18 = vpop.permute.xlu0 %251  ;;  %v7728_v38 = vmul.f32 %v247_v31, %v7618_v57  ;;  %v7731_v34 = vmul.f32 %v247_v31, %v7627_v61  ;;  %v7734_v53 = vmul.f32 %v247_v31, %v7630_v62  ;;  %v7737_v54 = vmul.f32 %v247_v31, %v7651_v7 }
  0xf6   :  { %9156 = vst [vmem:[#allocation77_spill] sm:$0xff] %v7723_v21  ;;  %9157 = vst [vmem:[#allocation78_spill] sm:$0xff] %v7725_v18  ;;  %v272_v56 = vmul.f32 %v7725_v18, %v7558_v35  ;;  %v273_v21 = vmul.f32 %v7725_v18, %v7561_v36  ;;  %v274_v55 = vmul.f32 %v7725_v18, %v7564_v37 }
  0xf7   :  { %v275_v57 = vmul.f32 %v7725_v18, %v7567_v39  ;;  %v276_v61 = vmul.f32 %v7725_v18, %v7570_v40  ;;  %v277_v62 = vmul.f32 %v7725_v18, %v7573_v41  ;;  %v278_v31 = vmul.f32 %v7725_v18, %v7576_v42 }
  0xf8   :  { %v279_v7 = vmul.f32 %v7725_v18, %v7579_v43  ;;  %v7757_v33 = vmul.f32 %v7689_v28, %v7558_v35  ;;  %v7761_v32 = vmul.f32 %v7689_v28, %v7561_v36  ;;  %v7765_v27 = vmul.f32 %v7689_v28, %v7564_v37 }
  0xf9   :  { %v7769_v20 = vmul.f32 %v7689_v28, %v7567_v39  ;;  %v7771_v19 = vpop.permute.xlu1 %127  ;;  %v7773_v16 = vpop.permute.xlu0 %122  ;;  %v7777_v35 = vmul.f32 %v7689_v28, %v7570_v40  ;;  %v7781_v36 = vmul.f32 %v7689_v28, %v7573_v41  ;;  %v7785_v37 = vmul.f32 %v7689_v28, %v7576_v42 }
  0xfa   :  { %9158 = vst [vmem:[#allocation79_spill] sm:$0xff] %v7757_v33  ;;  %9159 = vst [vmem:[#allocation80_spill] sm:$0xff] %v7761_v32  ;;  %v7789_v39 = vmul.f32 %v7689_v28, %v7579_v43  ;;  %v336_v18 = vadd.f32 %v272_v56, %v7771_v19  ;;  %v339_v40 = vadd.f32 %v275_v57, %v7771_v19 }
  0xfb   :  { %9160 = vst [vmem:[#allocation81_spill] sm:$0xff] %v7765_v27  ;;  %9161 = vst [vmem:[#allocation82_spill] sm:$0xff] %v7769_v20  ;;  %v337_v20 = vadd.f32 %v273_v21, %v7771_v19  ;;  %v338_v27 = vadd.f32 %v274_v55, %v7771_v19  ;;  %v341_v41 = vadd.f32 %v277_v62, %v7771_v19 }
  0xfc   :  { %9162 = vst [vmem:[#allocation83_spill] sm:$0xff] %v7771_v19  ;;  %9163 = vst [vmem:[#allocation84_spill] sm:$0xff] %v7777_v35  ;;  %v340_v35 = vadd.f32 %v276_v61, %v7771_v19  ;;  %v343_v42 = vadd.f32 %v279_v7, %v7771_v19  ;;  %v329_v43 = vadd.f32 %v265_v58, %v7773_v16 }
  0xfd   :  { %9164 = vst [vmem:[#allocation85_spill] sm:$0xff] %v7781_v36  ;;  %9165 = vst [vmem:[#allocation86_spill] sm:$0xff] %v7785_v37  ;;  %v342_v36 = vadd.f32 %v278_v31, %v7771_v19  ;;  %v328_v37 = vadd.f32 %v264_v46, %v7773_v16  ;;  %v330_v56 = vadd.f32 %v266_v0, %v7773_v16  ;;  %v7803_v28 = vpop.permute.xlu1 %505  ;;  %v501_v55 = vpop.permute.xlu0 %500 }
  0xfe   :  { %9166 = vst [vmem:[#allocation87_spill] sm:$0xff] %v7789_v39  ;;  %v331_v21 = vadd.f32 %v267_v17, %v7773_v16  ;;  %9167 = vst [vmem:[#allocation88_spill] sm:$0xff] %v7803_v28  ;;  %v332_v57 = vadd.f32 %v268_v25, %v7773_v16  ;;  %v333_v61 = vadd.f32 %v269_v24, %v7773_v16 }
  0xff   :  { %v334_v62 = vadd.f32 %v270_v26, %v7773_v16  ;;  %v335_v31 = vadd.f32 %v271_v29, %v7773_v16  ;;  %v526_v7 = vmul.f32 %v7803_v28, %v7582_v44  ;;  %v527_v46 = vmul.f32 %v7803_v28, %v7585_v45 }
 0x100   :  { %v528_v0 = vmul.f32 %v7803_v28, %v7588_v47  ;;  %v529_v17 = vmul.f32 %v7803_v28, %v7591_v48  ;;  %v530_v25 = vmul.f32 %v7803_v28, %v7594_v49  ;;  %v531_v24 = vmul.f32 %v7803_v28, %v7597_v50 }
 0x101   :  { %v532_v26 = vmul.f32 %v7803_v28, %v7600_v51  ;;  %v533_v29 = vmul.f32 %v7803_v28, %v7603_v52  ;;  %v590_v58 = vadd.f32 %v526_v7, %v336_v18  ;;  %v591_v19 = vadd.f32 %v527_v46, %v337_v20  ;;  %v7825_v33 = vpop.permute.xlu1 %137  ;;  %v7827_v6 = vpop.permute.xlu0 %132 }
 0x102   :  { %v592_v39 = vadd.f32 %v528_v0, %v338_v27  ;;  %v593_v32 = vadd.f32 %v529_v17, %v339_v40  ;;  %9168 = vst [vmem:[#allocation89_spill] sm:$0xff] %v7825_v33  ;;  %9169 = vst [vmem:[#allocation90_spill] sm:$0xff] %v7827_v6  ;;  %v594_v5 = vadd.f32 %v530_v25, %v340_v35  ;;  %v9177_v33 = vld [vmem:[#allocation56_spill] sm:$0xff] }
 0x103   :  { %v595_v4 = vadd.f32 %v531_v24, %v341_v41  ;;  %v596_v2 = vadd.f32 %v532_v26, %v342_v36  ;;  %v597_v1 = vadd.f32 %v533_v29, %v343_v42  ;;  %v518_v63 = vmul.f32 %v501_v55, %v7582_v44  ;;  %v9174_v26 = vld [vmem:[#allocation53_spill] sm:$0xff] }
 0x104   :  { %v519_v60 = vmul.f32 %v501_v55, %v7585_v45  ;;  %v520_v59 = vmul.f32 %v501_v55, %v7588_v47  ;;  %v521_v28 = vmul.f32 %v501_v55, %v7591_v48  ;;  %v522_v18 = vmul.f32 %v501_v55, %v7594_v49 }
 0x105   :  { %v523_v40 = vmul.f32 %v501_v55, %v7597_v50  ;;  %v524_v20 = vmul.f32 %v501_v55, %v7600_v51  ;;  %v525_v27 = vmul.f32 %v501_v55, %v7603_v52  ;;  %v7837_v35 = vadd.f32 %v518_v63, %v328_v37  ;;  %v7845_v7 = vpop.permute.xlu1 %515  ;;  %v7847_v46 = vpop.permute.xlu0 %510 }
 0x106   :  { %v7839_v36 = vadd.f32 %v519_v60, %v329_v43  ;;  %v7841_v41 = vadd.f32 %v520_v59, %v330_v56  ;;  %v7843_v42 = vadd.f32 %v521_v28, %v331_v21  ;;  %9170 = vst [vmem:[#allocation91_spill] sm:$0xff] %v7845_v7  ;;  %v7849_v0 = vadd.f32 %v522_v18, %v332_v57  ;;  %v9172_v57 = vld [vmem:[#allocation49_spill] sm:$0xff]  ;;  %v9175_v18 = vld [vmem:[#allocation54_spill] sm:$0xff] }
 0x107   :  { %v7851_v17 = vadd.f32 %v523_v40, %v333_v61  ;;  %v7853_v25 = vadd.f32 %v524_v20, %v334_v62  ;;  %v7855_v24 = vadd.f32 %v525_v27, %v335_v31  ;;  %v7859_v37 = vadd.f32 %v7712_v22, %v7773_v16  ;;  %v9173_v62 = vld [vmem:[#allocation50_spill] sm:$0xff]  ;;  %v9176_v27 = vld [vmem:[#allocation55_spill] sm:$0xff] }
 0x108   :  { %v7863_v43 = vadd.f32 %v7715_v3, %v7773_v16  ;;  %v7867_v59 = vadd.f32 %v7718_v30, %v7773_v16  ;;  %v7871_v60 = vadd.f32 %v7721_v23, %v7773_v16  ;;  %v7875_v63 = vadd.f32 %v7728_v38, %v7773_v16 }
 0x109   :  { %v7879_v22 = vadd.f32 %v7731_v34, %v7773_v16  ;;  %v7883_v28 = vadd.f32 %v7734_v53, %v7773_v16  ;;  %v7887_v30 = vadd.f32 %v7737_v54, %v7773_v16  ;;  %v7890_v3 = vmul.f32 %v501_v55, %v7654_v8  ;;  %v7901_v56 = vpop.permute.xlu1 %759  ;;  %v7923_v20 = vpop.permute.xlu0 %754 }
 0x10a   :  { %v7893_v23 = vmul.f32 %v501_v55, %v7657_v9  ;;  %v7896_v38 = vmul.f32 %v501_v55, %v7660_v10  ;;  %v7899_v34 = vmul.f32 %v501_v55, %v7663_v11  ;;  %9171 = vst [vmem:[#allocation92_spill] sm:$0xff] %v7901_v56  ;;  %v7904_v53 = vmul.f32 %v501_v55, %v7666_v12 }
 0x10b   :  { %v7907_v54 = vmul.f32 %v501_v55, %v7669_v13  ;;  %v7910_v16 = vmul.f32 %v501_v55, %v7672_v14  ;;  %v7913_v21 = vmul.f32 %v501_v55, %v7675_v15  ;;  %v780_v61 = vmul.f32 %v7901_v56, %v9172_v57  ;;  %v9178_v15 = vld [vmem:[#allocation57_spill] sm:$0xff]  ;;  %v9179_v13 = vld [vmem:[#allocation58_spill] sm:$0xff] }
 0x10c   :  { %v781_v31 = vmul.f32 %v7901_v56, %v9173_v62  ;;  %v782_v29 = vmul.f32 %v7901_v56, %v9174_v26  ;;  %v783_v40 = vmul.f32 %v7901_v56, %v9175_v18  ;;  %v784_v7 = vmul.f32 %v7901_v56, %v9176_v27 }
 0x10d   :  { %v785_v55 = vmul.f32 %v7901_v56, %v9177_v33  ;;  %v786_v14 = vmul.f32 %v7901_v56, %v9178_v15  ;;  %v787_v12 = vmul.f32 %v7901_v56, %v9179_v13  ;;  %v7933_v11 = vadd.f32 %v780_v61, %v590_v58 }
 0x10e   :  { %v7935_v10 = vadd.f32 %v781_v31, %v591_v19  ;;  %v7937_v9 = vadd.f32 %v782_v29, %v592_v39  ;;  %v7939_v8 = vadd.f32 %v783_v40, %v593_v32  ;;  %v7941_v52 = vadd.f32 %v784_v7, %v594_v5 }
 0x10f   :  { %v7943_v51 = vadd.f32 %v785_v55, %v595_v4  ;;  %v7945_v50 = vadd.f32 %v786_v14, %v596_v2  ;;  %v7947_v49 = vadd.f32 %v787_v12, %v597_v1  ;;  %v5530_v48 = vmul.f32 -1.442695, %v7933_v11 }
 0x110   :  { %v5531_v56 = vmul.f32 -1.442695, %v7935_v10  ;;  %v5532_v58 = vmul.f32 -1.442695, %v7937_v9  ;;  %v772_v39 = vmul.f32 %v7923_v20, %v9172_v57  ;;  %v5533_v19 = vmul.f32 -1.442695, %v7939_v8 }
 0x111   :  { %v5534_v5 = vmul.f32 -1.442695, %v7941_v52  ;;  %v5535_v4 = vmul.f32 -1.442695, %v7943_v51  ;;  %v773_v2 = vmul.f32 %v7923_v20, %v9173_v62  ;;  %6853 = vpow2.f32 %v5530_v48 }
 0x112   :  { %v5536_v1 = vmul.f32 -1.442695, %v7945_v50  ;;  %v5537_v12 = vmul.f32 -1.442695, %v7947_v49  ;;  %v774_v14 = vmul.f32 %v7923_v20, %v9174_v26  ;;  %6855 = vpow2.f32 %v5531_v56 }
 0x113   :  { %v775_v32 = vmul.f32 %v7923_v20, %v9175_v18  ;;  %v776_v7 = vmul.f32 %v7923_v20, %v9176_v27  ;;  %v777_v61 = vmul.f32 %v7923_v20, %v9177_v33  ;;  %6857 = vpow2.f32 %v5532_v58 }
 0x114   :  { %v778_v48 = vmul.f32 %v7923_v20, %v9178_v15  ;;  %v779_v31 = vmul.f32 %v7923_v20, %v9179_v13  ;;  %v7974_v29 = vadd.f32 %v772_v39, %v7837_v35  ;;  %6859 = vpow2.f32 %v5533_v19 }
 0x115   :  { %v7977_v56 = vadd.f32 %v773_v2, %v7839_v36  ;;  %v7980_v40 = vadd.f32 %v774_v14, %v7841_v41  ;;  %v7983_v55 = vadd.f32 %v775_v32, %v7843_v42  ;;  %6861 = vpow2.f32 %v5534_v5 }
 0x116   :  { %v7986_v58 = vadd.f32 %v776_v7, %v7849_v0  ;;  %v7989_v15 = vadd.f32 %v777_v61, %v7851_v17  ;;  %v7992_v35 = vadd.f32 %v778_v48, %v7853_v25  ;;  %6863 = vpow2.f32 %v5535_v4  ;;  %v9183_v7 = vld [vmem:[#allocation71_spill] sm:$0xff]  ;;  %v9185_v48 = vld [vmem:[#allocation74_spill] sm:$0xff] }
 0x117   :  { %v7995_v36 = vadd.f32 %v779_v31, %v7855_v24  ;;  %v5522_v41 = vmul.f32 -1.442695, %v7974_v29  ;;  %v5523_v39 = vmul.f32 -1.442695, %v7977_v56  ;;  %6865 = vpow2.f32 %v5536_v1 }
 0x118   :  { %v5524_v42 = vmul.f32 -1.442695, %v7980_v40  ;;  %v5525_v0 = vmul.f32 -1.442695, %v7983_v55  ;;  %v5526_v19 = vmul.f32 -1.442695, %v7986_v58  ;;  %6867 = vpow2.f32 %v5537_v12 }
 0x119   :  { %v8003_v17 = vmul.f32 -1.442695, %v7989_v15  ;;  %v8006_v25 = vmul.f32 -1.442695, %v7992_v35  ;;  %v8009_v24 = vmul.f32 -1.442695, %v7995_v36  ;;  %6869 = vpow2.f32 %v5522_v41 }
 0x11a   :  { %v614_v5 = vadd.f32 %v7890_v3, %v7859_v37  ;;  %v615_v4 = vadd.f32 %v7893_v23, %v7863_v43  ;;  %v616_v2 = vadd.f32 %v7896_v38, %v7867_v59  ;;  %6871 = vpow2.f32 %v5523_v39  ;;  %v9180_v3 = vld [vmem:[#allocation68_spill] sm:$0xff]  ;;  %v9186_v41 = vld [vmem:[#allocation75_spill] sm:$0xff] }
 0x11b   :  { %v617_v1 = vadd.f32 %v7899_v34, %v7871_v60  ;;  %v618_v12 = vadd.f32 %v7904_v53, %v7875_v63  ;;  %v619_v14 = vadd.f32 %v7907_v54, %v7879_v22  ;;  %v6854_v32 = vpop.eup %6853  ;;  %6873 = vpow2.f32 %v5524_v42  ;;  %v9181_v60 = vld [vmem:[#allocation69_spill] sm:$0xff]  ;;  %v9182_v34 = vld [vmem:[#allocation70_spill] sm:$0xff] }
 0x11c   :  { %v620_v37 = vadd.f32 %v7910_v16, %v7883_v28  ;;  %v621_v43 = vadd.f32 %v7913_v21, %v7887_v30  ;;  %v804_v59 = vmul.f32 %v7923_v20, %v9180_v3  ;;  %v6856_v23 = vpop.eup %6855  ;;  %v1100_v38 = vadd.f32 1.0, %v6854_v32  ;;  %v9184_v16 = vld [vmem:[#allocation73_spill] sm:$0xff]  ;;  %v9187_v32 = vld [vmem:[#allocation76_spill] sm:$0xff] }
 0x11d   :  { %6875 = vpow2.f32 %v5525_v0  ;;  %v805_v63 = vmul.f32 %v7923_v20, %v9181_v60  ;;  %v806_v22 = vmul.f32 %v7923_v20, %v9182_v34  ;;  %v6858_v53 = vpop.eup %6857  ;;  %v1101_v54 = vadd.f32 1.0, %v6856_v23 }
 0x11e   :  { %6877 = vpow2.f32 %v5526_v19  ;;  %v807_v28 = vmul.f32 %v7923_v20, %v9183_v7  ;;  %v808_v30 = vmul.f32 %v7923_v20, %v9184_v16  ;;  %v6860_v21 = vpop.eup %6859  ;;  %v1102_v61 = vadd.f32 1.0, %v6858_v53 }
 0x11f   :  { %6879 = vrcp.f32 %v1100_v38  ;;  %v809_v31 = vmul.f32 %v7923_v20, %v9185_v48  ;;  %v810_v39 = vmul.f32 %v7923_v20, %v9186_v41  ;;  %v6862_v42 = vpop.eup %6861  ;;  %v1103_v0 = vadd.f32 1.0, %v6860_v21 }
 0x120   :  { %6881 = vrcp.f32 %v1101_v54  ;;  %v811_v19 = vmul.f32 %v7923_v20, %v9187_v32  ;;  %v8043_v23 = vadd.f32 %v804_v59, %v614_v5  ;;  %v6864_v7 = vpop.eup %6863  ;;  %v1104_v34 = vadd.f32 1.0, %v6862_v42  ;;  %v9195_v32 = vld [vmem:[#allocation84_spill] sm:$0xff] }
 0x121   :  { %6883 = vrcp.f32 %v1102_v61  ;;  %v8045_v16 = vadd.f32 %v805_v63, %v615_v4  ;;  %v8047_v38 = vadd.f32 %v806_v22, %v616_v2  ;;  %v6866_v53 = vpop.eup %6865  ;;  %v1105_v48 = vadd.f32 1.0, %v6864_v7 }
 0x122   :  { %6885 = vrcp.f32 %v1103_v0  ;;  %v8049_v60 = vadd.f32 %v807_v28, %v617_v1  ;;  %v8051_v41 = vadd.f32 %v808_v30, %v618_v12  ;;  %v6868_v54 = vpop.eup %6867  ;;  %v1106_v21 = vadd.f32 1.0, %v6866_v53  ;;  %v9191_v0 = vld [vmem:[#allocation79_spill] sm:$0xff] }
 0x123   :  { %6887 = vrcp.f32 %v1104_v34  ;;  %v8053_v20 = vadd.f32 %v809_v31, %v619_v14  ;;  %v8055_v5 = vadd.f32 %v810_v39, %v620_v37  ;;  %v6870_v59 = vpop.eup %6869  ;;  %v1107_v61 = vadd.f32 1.0, %v6868_v54  ;;  %v9192_v54 = vld [vmem:[#allocation80_spill] sm:$0xff] }
 0x124   :  { %6889 = vrcp.f32 %v1105_v48  ;;  %v8057_v4 = vadd.f32 %v811_v19, %v621_v43  ;;  %v5554_v2 = vmul.f32 -1.442695, %v8043_v23  ;;  %v6872_v63 = vpop.eup %6871  ;;  %v1092_v1 = vadd.f32 1.0, %v6870_v59  ;;  %v9193_v59 = vld [vmem:[#allocation81_spill] sm:$0xff] }
 0x125   :  { %9188 = vst [vmem:[#allocation93_spill] sm:$0xff] %v8053_v20  ;;  %9189 = vst [vmem:[#allocation94_spill] sm:$0xff] %v8055_v5  ;;  %6891 = vrcp.f32 %v1106_v21  ;;  %v5555_v12 = vmul.f32 -1.442695, %v8045_v16  ;;  %v5556_v22 = vmul.f32 -1.442695, %v8047_v38  ;;  %v6874_v7 = vpop.eup %6873  ;;  %v344_v19 = vadd.f32 %v9191_v0, %v7827_v6 }
 0x126   :  { %9190 = vst [vmem:[#allocation95_spill] sm:$0xff] %v8057_v4  ;;  %6893 = vrcp.f32 %v1107_v61  ;;  %v1093_v14 = vadd.f32 1.0, %v6872_v63  ;;  %v5557_v37 = vmul.f32 -1.442695, %v8049_v60  ;;  %v8064_v34 = vmul.f32 -1.442695, %v8051_v41 }
 0x127   :  { %v6876_v28 = vpop.eup %6875  ;;  %6895 = vpow2.f32 %v8003_v17  ;;  %v1094_v43 = vadd.f32 1.0, %v6874_v7  ;;  %v8068_v30 = vmul.f32 -1.442695, %v8053_v20  ;;  %v8071_v48 = vmul.f32 -1.442695, %v8055_v5  ;;  %v9194_v7 = vld [vmem:[#allocation82_spill] sm:$0xff]  ;;  %v8119_v20 = vpop.permute.xlu0 %764 }
 0x128   :  { %v6878_v31 = vpop.eup %6877  ;;  %6897 = vpow2.f32 %v8006_v25  ;;  %v1095_v39 = vadd.f32 1.0, %v6876_v28  ;;  %v8075_v42 = vmul.f32 -1.442695, %v8057_v4  ;;  %v345_v21 = vadd.f32 %v9192_v54, %v7827_v6  ;;  %v9197_v4 = vld [vmem:[#allocation86_spill] sm:$0xff]  ;;  %9204 = vst [vmem:[#allocation79_spill] sm:$0xff] %v8119_v20 }
 0x129   :  { %v6880_v53 = vpop.eup %6879  ;;  %6899 = vpow2.f32 %v8009_v24  ;;  %v1096_v17 = vadd.f32 1.0, %v6878_v31  ;;  %v346_v61 = vadd.f32 %v9193_v59, %v7827_v6  ;;  %v347_v28 = vadd.f32 %v9194_v7, %v7827_v6  ;;  %v9196_v31 = vld [vmem:[#allocation85_spill] sm:$0xff] }
 0x12a   :  { %v6882_v63 = vpop.eup %6881  ;;  %v1292_v25 = vmul.f32 %v6880_v53, %v7933_v11  ;;  %6901 = vrcp.f32 %v1092_v1  ;;  %v348_v0 = vadd.f32 %v9195_v32, %v7827_v6  ;;  %v349_v54 = vadd.f32 %v9196_v31, %v7827_v6  ;;  %v9198_v1 = vld [vmem:[#allocation87_spill] sm:$0xff] }
 0x12b   :  { %v6884_v3 = vpop.eup %6883  ;;  %v1293_v24 = vmul.f32 %v6882_v63, %v7935_v10  ;;  %6903 = vrcp.f32 %v1093_v14  ;;  %v350_v59 = vadd.f32 %v9197_v4, %v7827_v6  ;;  %v351_v53 = vadd.f32 %v9198_v1, %v7827_v6 }
 0x12c   :  { %v6886_v5 = vpop.eup %6885  ;;  %v1294_v11 = vmul.f32 %v6884_v3, %v7937_v9  ;;  %6905 = vrcp.f32 %v1094_v43  ;;  %v534_v32 = vmul.f32 %v7847_v46, %v7582_v44  ;;  %v535_v63 = vmul.f32 %v7847_v46, %v7585_v45  ;;  %v9199_v3 = vld [vmem:[#allocation39_spill] sm:$0xff] }
 0x12d   :  { %v6888_v7 = vpop.eup %6887  ;;  %v1295_v10 = vmul.f32 %v6886_v5, %v7939_v8  ;;  %v1357_v14 = vadd.f32 %v1293_v24, %v1292_v25  ;;  %6907 = vrcp.f32 %v1095_v39  ;;  %v536_v9 = vmul.f32 %v7847_v46, %v7588_v47  ;;  %v9200_v8 = vld [vmem:[#allocation40_spill] sm:$0xff]  ;;  %v9202_v24 = vld [vmem:[#allocation42_spill] sm:$0xff] }
 0x12e   :  { %v6890_v31 = vpop.eup %6889  ;;  %v1296_v4 = vmul.f32 %v6888_v7, %v7941_v52  ;;  %6909 = vrcp.f32 %v1096_v17  ;;  %v537_v43 = vmul.f32 %v7847_v46, %v9199_v3  ;;  %v538_v5 = vmul.f32 %v7847_v46, %v9200_v8  ;;  %v9201_v52 = vld [vmem:[#allocation41_spill] sm:$0xff] }
 0x12f   :  { %v6892_v1 = vpop.eup %6891  ;;  %v1297_v44 = vmul.f32 %v6890_v31, %v7943_v51  ;;  %v1358_v6 = vadd.f32 %v1357_v14, %v1294_v11  ;;  %6911 = vpow2.f32 %v5554_v2  ;;  %v539_v17 = vmul.f32 %v7847_v46, %v9201_v52  ;;  %v9203_v51 = vld [vmem:[#allocation43_spill] sm:$0xff] }
 0x130   :  { %v6894_v39 = vpop.eup %6893  ;;  %v1298_v25 = vmul.f32 %v6892_v1, %v7945_v50  ;;  %6913 = vpow2.f32 %v5555_v12  ;;  %v540_v7 = vmul.f32 %v7847_v46, %v9202_v24  ;;  %v541_v2 = vmul.f32 %v7847_v46, %v9203_v51 }
 0x131   :  { %v6896_v47 = vpop.eup %6895  ;;  %v1299_v3 = vmul.f32 %v6894_v39, %v7947_v49  ;;  %v1359_v45 = vadd.f32 %v1358_v6, %v1295_v10  ;;  %6915 = vpow2.f32 %v5556_v22  ;;  %v598_v31 = vadd.f32 %v534_v32, %v344_v19 }
 0x132   :  { %v6898_v11 = vpop.eup %6897  ;;  %v1097_v14 = vadd.f32 1.0, %v6896_v47  ;;  %6917 = vpow2.f32 %v5557_v37  ;;  %v599_v50 = vadd.f32 %v535_v63, %v345_v21  ;;  %v600_v52 = vadd.f32 %v536_v9, %v346_v61 }
 0x133   :  { %v6900_v12 = vpop.eup %6899  ;;  %v1360_v1 = vadd.f32 %v1359_v45, %v1296_v4  ;;  %v1098_v8 = vadd.f32 1.0, %v6898_v11  ;;  %6919 = vpow2.f32 %v8064_v34  ;;  %v601_v6 = vadd.f32 %v537_v43, %v347_v28 }
 0x134   :  { %v6902_v24 = vpop.eup %6901  ;;  %v1099_v49 = vadd.f32 1.0, %v6900_v12  ;;  %6921 = vrcp.f32 %v1097_v14  ;;  %v602_v22 = vadd.f32 %v538_v5, %v348_v0  ;;  %v603_v37 = vadd.f32 %v539_v17, %v349_v54 }
 0x135   :  { %v6904_v10 = vpop.eup %6903  ;;  %v1361_v39 = vadd.f32 %v1360_v1, %v1297_v44  ;;  %6923 = vrcp.f32 %v1098_v8  ;;  %v1284_v47 = vmul.f32 %v6902_v24, %v7974_v29  ;;  %v604_v21 = vadd.f32 %v540_v7, %v350_v59 }
 0x136   :  { %v6906_v19 = vpop.eup %6905  ;;  %6925 = vrcp.f32 %v1099_v49  ;;  %v1285_v45 = vmul.f32 %v6904_v10, %v7977_v56  ;;  %v605_v34 = vadd.f32 %v541_v2, %v351_v53  ;;  %v788_v28 = vmul.f32 %v8119_v20, %v9172_v57 }
 0x137   :  { %v6908_v61 = vpop.eup %6907  ;;  %v1362_v32 = vadd.f32 %v1361_v39, %v1298_v25  ;;  %v1286_v63 = vmul.f32 %v6906_v19, %v7980_v40  ;;  %6927 = vpow2.f32 %v8068_v30  ;;  %v789_v56 = vmul.f32 %v8119_v20, %v9173_v62 }
 0x138   :  { %v6910_v44 = vpop.eup %6909  ;;  %v1287_v0 = vmul.f32 %v6908_v61, %v7983_v55  ;;  %v1348_v29 = vadd.f32 %v1285_v45, %v1284_v47  ;;  %6929 = vpow2.f32 %v8071_v48  ;;  %v790_v40 = vmul.f32 %v8119_v20, %v9174_v26 }
 0x139   :  { %v6912_v54 = vpop.eup %6911  ;;  %v1363_v59 = vadd.f32 %v1362_v32, %v1299_v3  ;;  %v1288_v53 = vmul.f32 %v6910_v44, %v7986_v58  ;;  %6931 = vpow2.f32 %v8075_v42  ;;  %v791_v55 = vmul.f32 %v8119_v20, %v9175_v18  ;;  %v9205_v3 = vld [vmem:[#allocation57_spill] sm:$0xff] }
 0x13a   :  { %v6914_v30 = vpop.eup %6913  ;;  %v1349_v4 = vadd.f32 %v1348_v29, %v1286_v63  ;;  %v1124_v9 = vadd.f32 1.0, %v6912_v54  ;;  %v792_v48 = vmul.f32 %v8119_v20, %v9176_v27  ;;  %v793_v58 = vmul.f32 %v8119_v20, %v9177_v33 }
 0x13b   :  { %v6916_v43 = vpop.eup %6915  ;;  %1364 = vadd.xlane.f32.xlu1 %v1363_v59  ;;  %v1125_v8 = vadd.f32 1.0, %v6914_v30  ;;  %v794_v42 = vmul.f32 %v8119_v20, %v9205_v3  ;;  %v795_v5 = vmul.f32 %v8119_v20, %v9179_v13  ;;  %v8145_v7 = vadd.f32 %v788_v28, %v598_v31  ;;  %v9227_v3 = vld [vmem:[#allocation95_spill] sm:$0xff] }
 0x13c   :  { %v6918_v25 = vpop.eup %6917  ;;  %v1350_v17 = vadd.f32 %v1349_v4, %v1287_v0  ;;  %v1126_v24 = vadd.f32 1.0, %v6916_v43  ;;  %6933 = vrcp.f32 %v1124_v9  ;;  %v8147_v14 = vadd.f32 %v789_v56, %v599_v50  ;;  %v9207_v56 = vld [vmem:[#allocation78_spill] sm:$0xff] }
 0x13d   :  { %v6920_v2 = vpop.eup %6919  ;;  %v1127_v11 = vadd.f32 1.0, %v6918_v25  ;;  %6935 = vrcp.f32 %v1125_v8  ;;  %v8149_v12 = vadd.f32 %v790_v40, %v600_v52  ;;  %v8151_v39 = vadd.f32 %v791_v55, %v601_v6  ;;  %v9208_v55 = vld [vmem:[#allocation45_spill] sm:$0xff]  ;;  %v9209_v8 = vld [vmem:[#allocation46_spill] sm:$0xff]  ;;  %v9211_v25 = vld [vmem:[#allocation48_spill] sm:$0xff] }
 0x13e   :  { %v6922_v1 = vpop.eup %6921  ;;  %v1351_v49 = vadd.f32 %v1350_v17, %v1288_v53  ;;  %v1128_v10 = vadd.f32 1.0, %v6920_v2  ;;  %6937 = vrcp.f32 %v1126_v24  ;;  %v8154_v45 = vadd.f32 %v792_v48, %v602_v22 }
 0x13f   :  { %v6924_v47 = vpop.eup %6923  ;;  %v1289_v19 = vmul.f32 %v6922_v1, %v7989_v15  ;;  %6939 = vrcp.f32 %v1127_v11  ;;  %v8156_v31 = vadd.f32 %v793_v58, %v603_v37  ;;  %v8159_v52 = vadd.f32 %v794_v42, %v604_v21  ;;  %v9210_v42 = vld [vmem:[#allocation47_spill] sm:$0xff] }
 0x140   :  { %v6926_v61 = vpop.eup %6925  ;;  %v1290_v50 = vmul.f32 %v6924_v47, %v7992_v35  ;;  %6941 = vrcp.f32 %v1128_v10  ;;  %v8161_v32 = vadd.f32 %v795_v5, %v605_v34  ;;  %v5538_v44 = vmul.f32 -1.442695, %v8145_v7  ;;  %v9206_v35 = vld [vmem:[#allocation44_spill] sm:$0xff]  ;;  %v9212_v11 = vld [vmem:[#allocation51_spill] sm:$0xff] }
 0x141   :  { %v6928_v63 = vpop.eup %6927  ;;  %v1291_v6 = vmul.f32 %v6926_v61, %v7995_v36  ;;  %v1352_v28 = vadd.f32 %v1351_v49, %v1289_v19  ;;  %v5539_v15 = vmul.f32 -1.442695, %v8147_v14  ;;  %v5540_v37 = vmul.f32 -1.442695, %v8149_v12  ;;  %v9213_v49 = vld [vmem:[#allocation52_spill] sm:$0xff]  ;;  %v9214_v61 = vld [vmem:[#allocation59_spill] sm:$0xff] }
 0x142   :  { %v6930_v22 = vpop.eup %6929  ;;  %v1129_v0 = vadd.f32 1.0, %v6928_v63  ;;  %v5541_v29 = vmul.f32 -1.442695, %v8151_v39  ;;  %v304_v21 = vmul.f32 %v9207_v56, %v9206_v35  ;;  %6943 = vpow2.f32 %v5538_v44  ;;  %v9215_v63 = vld [vmem:[#allocation83_spill] sm:$0xff] }
 0x143   :  { %v6932_v54 = vpop.eup %6931  ;;  %v1353_v34 = vadd.f32 %v1352_v28, %v1290_v50  ;;  %v1130_v59 = vadd.f32 1.0, %v6930_v22  ;;  %v5542_v36 = vmul.f32 -1.442695, %v8154_v45  ;;  %v5543_v40 = vmul.f32 -1.442695, %v8156_v31 }
 0x144   :  { %v1131_v53 = vadd.f32 1.0, %v6932_v54  ;;  %6945 = vrcp.f32 %v1129_v0  ;;  %v5544_v30 = vmul.f32 -1.442695, %v8159_v52  ;;  %v5545_v9 = vmul.f32 -1.442695, %v8161_v32 }
 0x145   :  { %v1354_v4 = vadd.f32 %v1353_v34, %v1291_v6  ;;  %6947 = vrcp.f32 %v1130_v59  ;;  %v305_v48 = vmul.f32 %v9207_v56, %v9208_v55  ;;  %v306_v58 = vmul.f32 %v9207_v56, %v9209_v8 }
 0x146   :  { %v6934_v43 = vpop.eup %6933  ;;  %6949 = vrcp.f32 %v1131_v53  ;;  %v307_v5 = vmul.f32 %v9207_v56, %v9210_v42  ;;  %v308_v17 = vmul.f32 %v9207_v56, %v9211_v25  ;;  %v309_v1 = vmul.f32 %v9207_v56, %v9212_v11  ;;  %v9217_v53 = vld [vmem:[#allocation88_spill] sm:$0xff] }
 0x147   :  { %v6936_v24 = vpop.eup %6935  ;;  %1355 = vadd.xlane.f32.xlu0 %v1354_v4  ;;  %v1316_v2 = vmul.f32 %v6934_v43, %v8043_v23  ;;  %6951 = vpow2.f32 %v5539_v15  ;;  %v310_v10 = vmul.f32 %v9207_v56, %v9213_v49  ;;  %v311_v50 = vmul.f32 %v9207_v56, %v9214_v61  ;;  %v9218_v4 = vld [vmem:[#allocation61_spill] sm:$0xff] }
 0x148   :  { %v6938_v47 = vpop.eup %6937  ;;  %v1317_v19 = vmul.f32 %v6936_v24, %v8045_v16  ;;  %6953 = vpow2.f32 %v5540_v37  ;;  %v368_v6 = vadd.f32 %v304_v21, %v9215_v63  ;;  %v369_v23 = vadd.f32 %v305_v48, %v9215_v63  ;;  %v9221_v24 = vld [vmem:[#allocation64_spill] sm:$0xff] }
 0x149   :  { %v6940_v28 = vpop.eup %6939  ;;  %v1318_v44 = vmul.f32 %v6938_v47, %v8047_v38  ;;  %6955 = vpow2.f32 %v5541_v29  ;;  %v370_v15 = vadd.f32 %v306_v58, %v9215_v63  ;;  %v371_v16 = vadd.f32 %v307_v5, %v9215_v63  ;;  %v9223_v47 = vld [vmem:[#allocation65_spill] sm:$0xff] }
 0x14a   :  { %v6942_v22 = vpop.eup %6941  ;;  %v1319_v0 = vmul.f32 %v6940_v28, %v8049_v60  ;;  %v1384_v54 = vadd.f32 %v1317_v19, %v1316_v2  ;;  %6957 = vpow2.f32 %v5542_v36  ;;  %v372_v56 = vadd.f32 %v308_v17, %v9215_v63  ;;  %v9216_v60 = vld [vmem:[#allocation60_spill] sm:$0xff]  ;;  %v9220_v17 = vld [vmem:[#allocation63_spill] sm:$0xff] }
 0x14b   :  { %v1320_v37 = vmul.f32 %v6942_v22, %v8051_v41  ;;  %6959 = vpow2.f32 %v5543_v40  ;;  %v373_v21 = vadd.f32 %v309_v1, %v9215_v63  ;;  %v374_v29 = vadd.f32 %v310_v10, %v9215_v63  ;;  %v9219_v41 = vld [vmem:[#allocation62_spill] sm:$0xff]  ;;  %v9225_v28 = vld [vmem:[#allocation67_spill] sm:$0xff] }
 0x14c   :  { %v1385_v38 = vadd.f32 %v1384_v54, %v1318_v44  ;;  %6961 = vpow2.f32 %v5544_v30  ;;  %v375_v34 = vadd.f32 %v311_v50, %v9215_v63  ;;  %v6944_v59 = vpop.eup %6943  ;;  %v558_v36 = vmul.f32 %v9217_v53, %v9216_v60  ;;  %v9224_v50 = vld [vmem:[#allocation66_spill] sm:$0xff] }
 0x14d   :  { %6963 = vpow2.f32 %v5545_v9  ;;  %v559_v48 = vmul.f32 %v9217_v53, %v9218_v4  ;;  %v560_v40 = vmul.f32 %v9217_v53, %v9219_v41  ;;  %v1108_v5 = vadd.f32 1.0, %v6944_v59  ;;  %v9222_v9 = vld [vmem:[#allocation93_spill] sm:$0xff] }
 0x14e   :  { %v6946_v43 = vpop.eup %6945  ;;  %v1386_v58 = vadd.f32 %v1385_v38, %v1319_v0  ;;  %v561_v30 = vmul.f32 %v9217_v53, %v9220_v17  ;;  %v562_v2 = vmul.f32 %v9217_v53, %v9221_v24  ;;  %v563_v19 = vmul.f32 %v9217_v53, %v9223_v47  ;;  %v9226_v0 = vld [vmem:[#allocation94_spill] sm:$0xff]  ;;  %v9228_v47 = vld [vmem:[#allocation68_spill] sm:$0xff] }
 0x14f   :  { %v6948_v1 = vpop.eup %6947  ;;  %v1321_v10 = vmul.f32 %v6946_v43, %v9222_v9  ;;  %v564_v63 = vmul.f32 %v9217_v53, %v9224_v50  ;;  %v565_v44 = vmul.f32 %v9217_v53, %v9225_v28  ;;  %6965 = vrcp.f32 %v1108_v5  ;;  %v9234_v5 = vld [vmem:[#allocation74_spill] sm:$0xff] }
 0x150   :  { %v6950_v22 = vpop.eup %6949  ;;  %v1322_v54 = vmul.f32 %v6948_v1, %v9226_v0  ;;  %v1387_v38 = vadd.f32 %v1386_v58, %v1320_v37  ;;  %v622_v59 = vadd.f32 %v558_v36, %v368_v6  ;;  %v623_v27 = vadd.f32 %v559_v48, %v369_v23  ;;  %v9229_v1 = vld [vmem:[#allocation92_spill] sm:$0xff] }
 0x151   :  { %v6952_v13 = vpop.eup %6951  ;;  %v1323_v33 = vmul.f32 %v6950_v22, %v9227_v3  ;;  %v624_v43 = vadd.f32 %v560_v40, %v370_v15  ;;  %v625_v9 = vadd.f32 %v561_v30, %v371_v16  ;;  %v626_v57 = vadd.f32 %v562_v2, %v372_v56  ;;  %v9230_v3 = vld [vmem:[#allocation69_spill] sm:$0xff]  ;;  %v9235_v2 = vld [vmem:[#allocation75_spill] sm:$0xff] }
 0x152   :  { %v6954_v18 = vpop.eup %6953  ;;  %v1388_v26 = vadd.f32 %v1387_v38, %v1321_v10  ;;  %v1109_v62 = vadd.f32 1.0, %v6952_v13  ;;  %v627_v51 = vadd.f32 %v563_v19, %v373_v21  ;;  %v628_v53 = vadd.f32 %v564_v63, %v374_v29  ;;  %v9231_v13 = vld [vmem:[#allocation70_spill] sm:$0xff]  ;;  %v9232_v21 = vld [vmem:[#allocation71_spill] sm:$0xff]  ;;  %v9233_v40 = vld [vmem:[#allocation73_spill] sm:$0xff] }
 0x153   :  { %v6956_v20 = vpop.eup %6955  ;;  %v1110_v50 = vadd.f32 1.0, %v6954_v18  ;;  %v629_v28 = vadd.f32 %v565_v44, %v375_v34  ;;  %v812_v37 = vmul.f32 %v9229_v1, %v9228_v47  ;;  %v813_v23 = vmul.f32 %v9229_v1, %v9230_v3 }
 0x154   :  { %v6958_v58 = vpop.eup %6957  ;;  %v1389_v6 = vadd.f32 %v1388_v26, %v1322_v54  ;;  %v1111_v36 = vadd.f32 1.0, %v6956_v20  ;;  %6967 = vrcp.f32 %v1109_v62  ;;  %v814_v56 = vmul.f32 %v9229_v1, %v9231_v13 }
 0x155   :  { %v6960_v15 = vpop.eup %6959  ;;  %v1112_v16 = vadd.f32 1.0, %v6958_v58  ;;  %6969 = vrcp.f32 %v1110_v50  ;;  %v815_v18 = vmul.f32 %v9229_v1, %v9232_v21  ;;  %v816_v26 = vmul.f32 %v9229_v1, %v9233_v40  ;;  %v9236_v50 = vld [vmem:[#allocation76_spill] sm:$0xff] }
 0x156   :  { %v6962_v29 = vpop.eup %6961  ;;  %v1390_v34 = vadd.f32 %v1389_v6, %v1323_v33  ;;  %v1113_v48 = vadd.f32 1.0, %v6960_v15  ;;  %6971 = vrcp.f32 %v1111_v36  ;;  %v817_v30 = vmul.f32 %v9229_v1, %v9234_v5 }
 0x157   :  { %v6964_v62 = vpop.eup %6963  ;;  %v1114_v20 = vadd.f32 1.0, %v6962_v29  ;;  %6973 = vrcp.f32 %v1112_v16  ;;  %v818_v10 = vmul.f32 %v9229_v1, %v9235_v2  ;;  %v819_v33 = vmul.f32 %v9229_v1, %v9236_v50 }
 0x158   :  { %1391 = vadd.xlane.f32.xlu0 %v1390_v34  ;;  %v1115_v19 = vadd.f32 1.0, %v6964_v62  ;;  %6975 = vrcp.f32 %v1113_v48  ;;  %v8236_v63 = vadd.f32 %v812_v37, %v622_v59  ;;  %v8238_v44 = vadd.f32 %v813_v23, %v623_v27 }
 0x159   :  { %6977 = vrcp.f32 %v1114_v20  ;;  %v8240_v22 = vadd.f32 %v814_v56, %v624_v43  ;;  %v8242_v0 = vadd.f32 %v815_v18, %v625_v9  ;;  %v6966_v54 = vpop.eup %6965  ;;  %v8244_v38 = vadd.f32 %v816_v26, %v626_v57  ;;  %v9237_v57 = vld [vmem:[#allocation72_spill] sm:$0xff] }
 0x15a   :  { %6979 = vrcp.f32 %v1115_v19  ;;  %v8246_v58 = vadd.f32 %v817_v30, %v627_v51  ;;  %v8248_v6 = vadd.f32 %v818_v10, %v628_v53  ;;  %v1300_v36 = vmul.f32 %v6966_v54, %v8145_v7 }
 0x15b   :  { %v8251_v1 = vadd.f32 %v819_v33, %v629_v28  ;;  %v5562_v59 = vmul.f32 -1.442695, %v8236_v63  ;;  %v5563_v27 = vmul.f32 -1.442695, %v8238_v44  ;;  %v5564_v43 = vmul.f32 -1.442695, %v8240_v22 }
 0x15c   :  { %v5565_v9 = vmul.f32 -1.442695, %v8242_v0  ;;  %v5566_v37 = vmul.f32 -1.442695, %v8244_v38  ;;  %v312_v51 = vmul.f32 %v9237_v57, %v9206_v35  ;;  %v5567_v53 = vmul.f32 -1.442695, %v8246_v58 }
 0x15d   :  { %6981 = vpow2.f32 %v5562_v59  ;;  %v5568_v7 = vmul.f32 -1.442695, %v8248_v6  ;;  %v5569_v28 = vmul.f32 -1.442695, %v8251_v1  ;;  %v313_v15 = vmul.f32 %v9237_v57, %v9208_v55  ;;  %v9238_v33 = vld [vmem:[#allocation90_spill] sm:$0xff] }
 0x15e   :  { %v6968_v23 = vpop.eup %6967  ;;  %6983 = vpow2.f32 %v5563_v27  ;;  %v314_v16 = vmul.f32 %v9237_v57, %v9209_v8  ;;  %v315_v56 = vmul.f32 %v9237_v57, %v9210_v42  ;;  %v316_v34 = vmul.f32 %v9237_v57, %v9211_v25 }
 0x15f   :  { %v6970_v18 = vpop.eup %6969  ;;  %v1301_v29 = vmul.f32 %v6968_v23, %v8147_v14  ;;  %6985 = vpow2.f32 %v5564_v43  ;;  %v317_v48 = vmul.f32 %v9237_v57, %v9212_v11  ;;  %v318_v20 = vmul.f32 %v9237_v57, %v9213_v49 }
 0x160   :  { %v6972_v26 = vpop.eup %6971  ;;  %v1302_v62 = vmul.f32 %v6970_v18, %v8149_v12  ;;  %6987 = vpow2.f32 %v5565_v9  ;;  %v319_v30 = vmul.f32 %v9237_v57, %v9214_v61  ;;  %v376_v54 = vadd.f32 %v312_v51, %v9238_v33 }
 0x161   :  { %v6974_v10 = vpop.eup %6973  ;;  %v1303_v14 = vmul.f32 %v6972_v26, %v8151_v39  ;;  %v1366_v19 = vadd.f32 %v1301_v29, %v1300_v36  ;;  %6989 = vpow2.f32 %v5566_v37  ;;  %v377_v12 = vadd.f32 %v313_v15, %v9238_v33  ;;  %v9240_v26 = vld [vmem:[#allocation66_spill] sm:$0xff] }
 0x162   :  { %v6976_v59 = vpop.eup %6975  ;;  %v1304_v27 = vmul.f32 %v6974_v10, %v8154_v45  ;;  %6991 = vpow2.f32 %v5567_v53  ;;  %v378_v43 = vadd.f32 %v314_v16, %v9238_v33  ;;  %v379_v57 = vadd.f32 %v315_v56, %v9238_v33  ;;  %v9241_v10 = vld [vmem:[#allocation67_spill] sm:$0xff] }
 0x163   :  { %v6978_v9 = vpop.eup %6977  ;;  %v1305_v23 = vmul.f32 %v6976_v59, %v8156_v31  ;;  %v1367_v18 = vadd.f32 %v1366_v19, %v1302_v62  ;;  %6993 = vpow2.f32 %v5568_v7  ;;  %v380_v37 = vadd.f32 %v316_v34, %v9238_v33  ;;  %v9239_v34 = vld [vmem:[#allocation65_spill] sm:$0xff] }
 0x164   :  { %v6980_v39 = vpop.eup %6979  ;;  %v1306_v36 = vmul.f32 %v6978_v9, %v8159_v52  ;;  %6995 = vpow2.f32 %v5569_v28  ;;  %v381_v45 = vadd.f32 %v317_v48, %v9238_v33  ;;  %v382_v15 = vadd.f32 %v318_v20, %v9238_v33 }
 0x165   :  { %v1307_v51 = vmul.f32 %v6980_v39, %v8161_v32  ;;  %v1368_v53 = vadd.f32 %v1367_v18, %v1303_v14  ;;  %v383_v16 = vadd.f32 %v319_v30, %v9238_v33  ;;  %v566_v31 = vmul.f32 %v7847_v46, %v9216_v60 }
 0x166   :  { %v567_v7 = vmul.f32 %v7847_v46, %v9218_v4  ;;  %v568_v52 = vmul.f32 %v7847_v46, %v9219_v41  ;;  %v569_v28 = vmul.f32 %v7847_v46, %v9220_v17  ;;  %v570_v32 = vmul.f32 %v7847_v46, %v9221_v24 }
 0x167   :  { %v6982_v56 = vpop.eup %6981  ;;  %v1369_v29 = vadd.f32 %v1368_v53, %v1304_v27  ;;  %v571_v48 = vmul.f32 %v7847_v46, %v9239_v34  ;;  %v572_v62 = vmul.f32 %v7847_v46, %v9240_v26  ;;  %v573_v14 = vmul.f32 %v7847_v46, %v9241_v10 }
 0x168   :  { %v6984_v20 = vpop.eup %6983  ;;  %v1132_v30 = vadd.f32 1.0, %v6982_v56  ;;  %v630_v19 = vadd.f32 %v566_v31, %v376_v54  ;;  %v631_v33 = vadd.f32 %v567_v7, %v377_v12  ;;  %v632_v27 = vadd.f32 %v568_v52, %v378_v43  ;;  %v9242_v54 = vld [vmem:[#allocation79_spill] sm:$0xff] }
 0x169   :  { %v6986_v59 = vpop.eup %6985  ;;  %v1370_v9 = vadd.f32 %v1369_v29, %v1305_v23  ;;  %v1133_v18 = vadd.f32 1.0, %v6984_v20  ;;  %v633_v39 = vadd.f32 %v569_v28, %v379_v57  ;;  %v634_v17 = vadd.f32 %v570_v32, %v380_v37 }
 0x16a   :  { %v6988_v53 = vpop.eup %6987  ;;  %v1134_v24 = vadd.f32 1.0, %v6986_v59  ;;  %6997 = vrcp.f32 %v1132_v30  ;;  %v635_v34 = vadd.f32 %v571_v48, %v381_v45  ;;  %v636_v56 = vadd.f32 %v572_v62, %v382_v15  ;;  %v9243_v30 = vld [vmem:[#allocation28_spill] sm:$0xff] }
 0x16b   :  { %v6990_v41 = vpop.eup %6989  ;;  %v1371_v4 = vadd.f32 %v1370_v9, %v1306_v36  ;;  %v1135_v26 = vadd.f32 1.0, %v6988_v53  ;;  %6999 = vrcp.f32 %v1133_v18  ;;  %v637_v46 = vadd.f32 %v573_v14, %v383_v16  ;;  %v9244_v14 = vld [vmem:[#allocation77_spill] sm:$0xff] }
 0x16c   :  { %v6992_v60 = vpop.eup %6991  ;;  %v1136_v61 = vadd.f32 1.0, %v6990_v41  ;;  %7001 = vrcp.f32 %v1134_v24  ;;  %v820_v12 = vmul.f32 %v9242_v54, %v9228_v47  ;;  %v821_v37 = vmul.f32 %v9242_v54, %v9230_v3  ;;  %v9245_v9 = vld [vmem:[#allocation29_spill] sm:$0xff] }
 0x16d   :  { %v6994_v23 = vpop.eup %6993  ;;  %v1372_v43 = vadd.f32 %v1371_v4, %v1307_v51  ;;  %v1137_v57 = vadd.f32 1.0, %v6992_v60  ;;  %7003 = vrcp.f32 %v1135_v26  ;;  %v822_v36 = vmul.f32 %v9242_v54, %v9231_v13 }
 0x16e   :  { %v6996_v45 = vpop.eup %6995  ;;  %v1138_v31 = vadd.f32 1.0, %v6994_v23  ;;  %7005 = vrcp.f32 %v1136_v61  ;;  %v823_v41 = vmul.f32 %v9242_v54, %v9232_v21  ;;  %v824_v4 = vmul.f32 %v9242_v54, %v9233_v40 }
 0x16f   :  { %1373 = vadd.xlane.f32.xlu1 %v1372_v43  ;;  %v1139_v24 = vadd.f32 1.0, %v6996_v45  ;;  %7007 = vrcp.f32 %v1137_v57  ;;  %v825_v60 = vmul.f32 %v9242_v54, %v9234_v5  ;;  %v826_v51 = vmul.f32 %v9242_v54, %v9235_v2  ;;  %v9247_v43 = vld [vmem:[#allocation31_spill] sm:$0xff] }
 0x170   :  { %7009 = vrcp.f32 %v1138_v31  ;;  %v827_v61 = vmul.f32 %v9242_v54, %v9236_v50  ;;  %v8324_v15 = vadd.f32 %v820_v12, %v630_v19  ;;  %v8326_v16 = vadd.f32 %v821_v37, %v631_v33  ;;  %v9246_v12 = vld [vmem:[#allocation30_spill] sm:$0xff] }
 0x171   :  { %7011 = vrcp.f32 %v1139_v24  ;;  %v8328_v7 = vadd.f32 %v822_v36, %v632_v27  ;;  %v8330_v52 = vadd.f32 %v823_v41, %v633_v39  ;;  %v8332_v28 = vadd.f32 %v824_v4, %v634_v17  ;;  %v9249_v36 = vld [vmem:[#allocation33_spill] sm:$0xff] }
 0x172   :  { %v8334_v29 = vadd.f32 %v825_v60, %v635_v34  ;;  %v8336_v32 = vadd.f32 %v826_v51, %v636_v56  ;;  %v8338_v48 = vadd.f32 %v827_v61, %v637_v46  ;;  %v5570_v26 = vmul.f32 -1.442695, %v8324_v15  ;;  %v9250_v60 = vld [vmem:[#allocation34_spill] sm:$0xff] }
 0x173   :  { %v5571_v62 = vmul.f32 -1.442695, %v8326_v16  ;;  %v5572_v20 = vmul.f32 -1.442695, %v8328_v7  ;;  %v288_v19 = vmul.f32 %v9244_v14, %v9243_v30  ;;  %v5573_v59 = vmul.f32 -1.442695, %v8330_v52 }
 0x174   :  { %v6998_v33 = vpop.eup %6997  ;;  %v5574_v17 = vmul.f32 -1.442695, %v8332_v28  ;;  %v5575_v34 = vmul.f32 -1.442695, %v8334_v29  ;;  %v289_v18 = vmul.f32 %v9244_v14, %v9245_v9  ;;  %7013 = vpow2.f32 %v5570_v26 }
 0x175   :  { %v7000_v27 = vpop.eup %6999  ;;  %v1324_v39 = vmul.f32 %v6998_v33, %v8236_v63  ;;  %v5576_v53 = vmul.f32 -1.442695, %v8336_v32  ;;  %v5577_v56 = vmul.f32 -1.442695, %v8338_v48  ;;  %7015 = vpow2.f32 %v5571_v62  ;;  %v9248_v63 = vld [vmem:[#allocation32_spill] sm:$0xff] }
 0x176   :  { %v7002_v46 = vpop.eup %7001  ;;  %v1325_v54 = vmul.f32 %v7000_v27, %v8238_v44  ;;  %v290_v23 = vmul.f32 %v9244_v14, %v9246_v12  ;;  %v291_v57 = vmul.f32 %v9244_v14, %v9247_v43  ;;  %7017 = vpow2.f32 %v5572_v20  ;;  %v9252_v20 = vld [vmem:[#allocation89_spill] sm:$0xff]  ;;  %v9253_v12 = vld [vmem:[#allocation36_spill] sm:$0xff]  ;;  %v9254_v43 = vld [vmem:[#allocation91_spill] sm:$0xff] }
 0x177   :  { %v7004_v37 = vpop.eup %7003  ;;  %v1326_v45 = vmul.f32 %v7002_v46, %v8240_v22  ;;  %v292_v31 = vmul.f32 %v9244_v14, %v9248_v63  ;;  %v293_v41 = vmul.f32 %v9244_v14, %v9249_v36  ;;  %7019 = vpow2.f32 %v5573_v59  ;;  %v9251_v22 = vld [vmem:[#allocation35_spill] sm:$0xff] }
 0x178   :  { %v7006_v24 = vpop.eup %7005  ;;  %v1327_v44 = vmul.f32 %v7004_v37, %v8242_v0  ;;  %v1393_v4 = vadd.f32 %v1325_v54, %v1324_v39  ;;  %v294_v51 = vmul.f32 %v9244_v14, %v9250_v60  ;;  %7021 = vpow2.f32 %v5574_v17  ;;  %v9255_v37 = vld [vmem:[#allocation37_spill] sm:$0xff]  ;;  %v9261_v60 = vld [vmem:[#allocation43_spill] sm:$0xff] }
 0x179   :  { %v7008_v61 = vpop.eup %7007  ;;  %v1328_v26 = vmul.f32 %v7006_v24, %v8244_v38  ;;  %v295_v62 = vmul.f32 %v9244_v14, %v9251_v22  ;;  %v352_v30 = vadd.f32 %v288_v19, %v9252_v20  ;;  %7023 = vpow2.f32 %v5575_v34 }
 0x17a   :  { %v7010_v33 = vpop.eup %7009  ;;  %v1329_v9 = vmul.f32 %v7008_v61, %v8246_v58  ;;  %v1394_v27 = vadd.f32 %v1393_v4, %v1326_v45  ;;  %v353_v0 = vadd.f32 %v289_v18, %v9252_v20  ;;  %7025 = vpow2.f32 %v5576_v53  ;;  %v9257_v45 = vld [vmem:[#allocation39_spill] sm:$0xff] }
 0x17b   :  { %v7012_v59 = vpop.eup %7011  ;;  %v1330_v39 = vmul.f32 %v7010_v33, %v8248_v6  ;;  %v354_v46 = vadd.f32 %v290_v23, %v9252_v20  ;;  %v355_v38 = vadd.f32 %v291_v57, %v9252_v20  ;;  %7027 = vpow2.f32 %v5577_v56  ;;  %v9256_v57 = vld [vmem:[#allocation38_spill] sm:$0xff] }
 0x17c   :  { %v1331_v17 = vmul.f32 %v7012_v59, %v8251_v1  ;;  %v1395_v54 = vadd.f32 %v1394_v27, %v1327_v44  ;;  %v356_v19 = vadd.f32 %v292_v31, %v9252_v20  ;;  %v357_v58 = vadd.f32 %v293_v41, %v9252_v20  ;;  %v9258_v31 = vld [vmem:[#allocation40_spill] sm:$0xff]  ;;  %v9259_v41 = vld [vmem:[#allocation41_spill] sm:$0xff]  ;;  %v9260_v44 = vld [vmem:[#allocation42_spill] sm:$0xff]  ;;  %v8396_v59 = vpop.permute.xlu1 %769 }
 0x17d   :  { %v358_v34 = vadd.f32 %v294_v51, %v9252_v20  ;;  %v359_v18 = vadd.f32 %v295_v62, %v9252_v20  ;;  %v542_v6 = vmul.f32 %v9254_v43, %v9253_v12  ;;  %v543_v23 = vmul.f32 %v9254_v43, %v9255_v37 }
 0x17e   :  { %v1396_v53 = vadd.f32 %v1395_v54, %v1328_v26  ;;  %v544_v1 = vmul.f32 %v9254_v43, %v9256_v57  ;;  %v545_v56 = vmul.f32 %v9254_v43, %v9257_v45  ;;  %v7014_v63 = vpop.eup %7013  ;;  %v546_v36 = vmul.f32 %v9254_v43, %v9258_v31 }
 0x17f   :  { %v547_v24 = vmul.f32 %v9254_v43, %v9259_v41  ;;  %v548_v4 = vmul.f32 %v9254_v43, %v9260_v44  ;;  %v549_v51 = vmul.f32 %v9254_v43, %v9261_v60  ;;  %v7016_v61 = vpop.eup %7015  ;;  %v1140_v22 = vadd.f32 1.0, %v7014_v63 }
 0x180   :  { %v1397_v26 = vadd.f32 %v1396_v53, %v1329_v9  ;;  %v606_v62 = vadd.f32 %v542_v6, %v352_v30  ;;  %v607_v33 = vadd.f32 %v543_v23, %v353_v0  ;;  %v7018_v27 = vpop.eup %7017  ;;  %v1141_v54 = vadd.f32 1.0, %v7016_v61  ;;  %v9262_v6 = vld [vmem:[#allocation49_spill] sm:$0xff]  ;;  %v9269_v61 = vld [vmem:[#allocation58_spill] sm:$0xff] }
 0x181   :  { %v608_v12 = vadd.f32 %v544_v1, %v354_v46  ;;  %v609_v37 = vadd.f32 %v545_v56, %v355_v38  ;;  %v610_v57 = vadd.f32 %v546_v36, %v356_v19  ;;  %v7020_v45 = vpop.eup %7019  ;;  %v1142_v41 = vadd.f32 1.0, %v7018_v27  ;;  %v9263_v19 = vld [vmem:[#allocation50_spill] sm:$0xff]  ;;  %v9264_v1 = vld [vmem:[#allocation53_spill] sm:$0xff] }
 0x182   :  { %v1398_v31 = vadd.f32 %v1397_v26, %v1330_v39  ;;  %7029 = vrcp.f32 %v1140_v22  ;;  %v611_v44 = vadd.f32 %v547_v24, %v357_v58  ;;  %v7022_v50 = vpop.eup %7021  ;;  %v1143_v2 = vadd.f32 1.0, %v7020_v45  ;;  %v9267_v24 = vld [vmem:[#allocation56_spill] sm:$0xff] }
 0x183   :  { %7031 = vrcp.f32 %v1141_v54  ;;  %v612_v60 = vadd.f32 %v548_v4, %v358_v34  ;;  %v613_v9 = vadd.f32 %v549_v51, %v359_v18  ;;  %v7024_v53 = vpop.eup %7023  ;;  %v1144_v0 = vadd.f32 1.0, %v7022_v50  ;;  %v9265_v18 = vld [vmem:[#allocation54_spill] sm:$0xff]  ;;  %v9268_v4 = vld [vmem:[#allocation57_spill] sm:$0xff] }
 0x184   :  { %v1399_v30 = vadd.f32 %v1398_v31, %v1331_v17  ;;  %7033 = vrcp.f32 %v1142_v41  ;;  %v796_v23 = vmul.f32 %v8396_v59, %v9262_v6  ;;  %v7026_v46 = vpop.eup %7025  ;;  %v1145_v38 = vadd.f32 1.0, %v7024_v53  ;;  %v9266_v17 = vld [vmem:[#allocation55_spill] sm:$0xff] }
 0x185   :  { %7035 = vrcp.f32 %v1143_v2  ;;  %v797_v39 = vmul.f32 %v8396_v59, %v9263_v19  ;;  %v798_v58 = vmul.f32 %v8396_v59, %v9264_v1  ;;  %v7028_v56 = vpop.eup %7027  ;;  %v1146_v34 = vadd.f32 1.0, %v7026_v46 }
 0x186   :  { %1400 = vadd.xlane.f32.xlu0 %v1399_v30  ;;  %7037 = vrcp.f32 %v1144_v0  ;;  %v799_v50 = vmul.f32 %v8396_v59, %v9265_v18  ;;  %v800_v63 = vmul.f32 %v8396_v59, %v9266_v17  ;;  %v1147_v36 = vadd.f32 1.0, %v7028_v56 }
 0x187   :  { %7039 = vrcp.f32 %v1145_v38  ;;  %v801_v2 = vmul.f32 %v8396_v59, %v9267_v24  ;;  %v802_v51 = vmul.f32 %v8396_v59, %v9268_v4  ;;  %v803_v26 = vmul.f32 %v8396_v59, %v9269_v61 }
 0x188   :  { %7041 = vrcp.f32 %v1146_v34  ;;  %v8414_v22 = vadd.f32 %v796_v23, %v606_v62  ;;  %v8416_v27 = vadd.f32 %v797_v39, %v607_v33  ;;  %v8418_v54 = vadd.f32 %v798_v58, %v608_v12 }
 0x189   :  { %7043 = vrcp.f32 %v1147_v36  ;;  %v8420_v45 = vadd.f32 %v799_v50, %v609_v37  ;;  %v8422_v31 = vadd.f32 %v800_v63, %v610_v57  ;;  %v8424_v41 = vadd.f32 %v801_v2, %v611_v44  ;;  %v9270_v63 = vld [vmem:[#allocation59_spill] sm:$0xff] }
 0x18a   :  { %v8426_v53 = vadd.f32 %v802_v51, %v612_v60  ;;  %v8428_v30 = vadd.f32 %v803_v26, %v613_v9  ;;  %v5546_v0 = vmul.f32 -1.442695, %v8414_v22  ;;  %v5547_v62 = vmul.f32 -1.442695, %v8416_v27  ;;  %v9271_v26 = vld [vmem:[#allocation60_spill] sm:$0xff] }
 0x18b   :  { %v5548_v33 = vmul.f32 -1.442695, %v8418_v54  ;;  %v5549_v6 = vmul.f32 -1.442695, %v8420_v45  ;;  %v5550_v37 = vmul.f32 -1.442695, %v8422_v31  ;;  %v320_v57 = vmul.f32 %v9244_v14, %v9206_v35 }
 0x18c   :  { %v7030_v12 = vpop.eup %7029  ;;  %7045 = vpow2.f32 %v5546_v0  ;;  %v5551_v9 = vmul.f32 -1.442695, %v8424_v41  ;;  %v5552_v23 = vmul.f32 -1.442695, %v8426_v53  ;;  %v5553_v19 = vmul.f32 -1.442695, %v8428_v30 }
 0x18d   :  { %v7032_v44 = vpop.eup %7031  ;;  %v1332_v60 = vmul.f32 %v7030_v12, %v8324_v15  ;;  %7047 = vpow2.f32 %v5547_v62  ;;  %v321_v39 = vmul.f32 %v9244_v14, %v9208_v55  ;;  %v322_v15 = vmul.f32 %v9244_v14, %v9209_v8  ;;  %v9273_v12 = vld [vmem:[#allocation62_spill] sm:$0xff] }
 0x18e   :  { %v7034_v46 = vpop.eup %7033  ;;  %v1333_v38 = vmul.f32 %v7032_v44, %v8326_v16  ;;  %7049 = vpow2.f32 %v5548_v33  ;;  %v323_v58 = vmul.f32 %v9244_v14, %v9210_v42  ;;  %v324_v16 = vmul.f32 %v9244_v14, %v9211_v25 }
 0x18f   :  { %v7036_v1 = vpop.eup %7035  ;;  %v1334_v35 = vmul.f32 %v7034_v46, %v8328_v7  ;;  %7051 = vpow2.f32 %v5549_v6  ;;  %v325_v18 = vmul.f32 %v9244_v14, %v9212_v11  ;;  %v326_v8 = vmul.f32 %v9244_v14, %v9213_v49 }
 0x190   :  { %v7038_v56 = vpop.eup %7037  ;;  %v1402_v34 = vadd.f32 %v1333_v38, %v1332_v60  ;;  %7053 = vpow2.f32 %v5550_v37  ;;  %v1335_v50 = vmul.f32 %v7036_v1, %v8330_v52  ;;  %v327_v36 = vmul.f32 %v9244_v14, %v9270_v63  ;;  %v9274_v60 = vld [vmem:[#allocation63_spill] sm:$0xff]  ;;  %v9276_v38 = vld [vmem:[#allocation65_spill] sm:$0xff] }
 0x191   :  { %v7040_v55 = vpop.eup %7039  ;;  %v1336_v7 = vmul.f32 %v7038_v56, %v8332_v28  ;;  %7055 = vpow2.f32 %v5551_v9  ;;  %v384_v25 = vadd.f32 %v320_v57, %v9252_v20  ;;  %v385_v52 = vadd.f32 %v321_v39, %v9252_v20 }
 0x192   :  { %v7042_v17 = vpop.eup %7041  ;;  %v1403_v42 = vadd.f32 %v1402_v34, %v1334_v35  ;;  %7057 = vpow2.f32 %v5552_v23  ;;  %v1337_v11 = vmul.f32 %v7040_v55, %v8334_v29  ;;  %v386_v49 = vadd.f32 %v322_v15, %v9252_v20  ;;  %v9272_v29 = vld [vmem:[#allocation61_spill] sm:$0xff]  ;;  %v9275_v23 = vld [vmem:[#allocation64_spill] sm:$0xff]  ;;  %v9277_v15 = vld [vmem:[#allocation66_spill] sm:$0xff] }
 0x193   :  { %v7044_v24 = vpop.eup %7043  ;;  %v1338_v2 = vmul.f32 %v7042_v17, %v8336_v32  ;;  %7059 = vpow2.f32 %v5553_v19  ;;  %v387_v51 = vadd.f32 %v323_v58, %v9252_v20  ;;  %v388_v61 = vadd.f32 %v324_v16, %v9252_v20 }
 0x194   :  { %v1339_v28 = vmul.f32 %v7044_v24, %v8338_v48  ;;  %v1404_v4 = vadd.f32 %v1403_v42, %v1335_v50  ;;  %v389_v14 = vadd.f32 %v325_v18, %v9252_v20  ;;  %v574_v0 = vmul.f32 %v9254_v43, %v9271_v26 }
 0x195   :  { %v575_v32 = vmul.f32 %v9254_v43, %v9272_v29  ;;  %v390_v6 = vadd.f32 %v326_v8, %v9252_v20  ;;  %v391_v48 = vadd.f32 %v327_v36, %v9252_v20  ;;  %v576_v37 = vmul.f32 %v9254_v43, %v9273_v12 }
 0x196   :  { %v7046_v62 = vpop.eup %7045  ;;  %v1405_v33 = vadd.f32 %v1404_v4, %v1336_v7  ;;  %v577_v9 = vmul.f32 %v9254_v43, %v9274_v60  ;;  %v578_v46 = vmul.f32 %v9254_v43, %v9275_v23  ;;  %v579_v19 = vmul.f32 %v9254_v43, %v9276_v38 }
 0x197   :  { %v7048_v57 = vpop.eup %7047  ;;  %v1116_v44 = vadd.f32 1.0, %v7046_v62  ;;  %v580_v20 = vmul.f32 %v9254_v43, %v9277_v15  ;;  %v581_v58 = vmul.f32 %v9254_v43, %v9241_v10  ;;  %v638_v16 = vadd.f32 %v574_v0, %v384_v25 }
 0x198   :  { %v7050_v39 = vpop.eup %7049  ;;  %v1406_v1 = vadd.f32 %v1405_v33, %v1337_v11  ;;  %v1117_v35 = vadd.f32 1.0, %v7048_v57  ;;  %v639_v18 = vadd.f32 %v575_v32, %v385_v52  ;;  %v640_v8 = vadd.f32 %v576_v37, %v386_v49 }
 0x199   :  { %v7052_v56 = vpop.eup %7051  ;;  %v1118_v34 = vadd.f32 1.0, %v7050_v39  ;;  %7061 = vrcp.f32 %v1116_v44  ;;  %v641_v63 = vadd.f32 %v577_v9, %v387_v51  ;;  %v642_v36 = vadd.f32 %v578_v46, %v388_v61 }
 0x19a   :  { %v7054_v55 = vpop.eup %7053  ;;  %v1407_v50 = vadd.f32 %v1406_v1, %v1338_v2  ;;  %v1119_v7 = vadd.f32 1.0, %v7052_v56  ;;  %7063 = vrcp.f32 %v1117_v35  ;;  %v643_v10 = vadd.f32 %v579_v19, %v389_v14 }
 0x19b   :  { %v7056_v17 = vpop.eup %7055  ;;  %v1120_v42 = vadd.f32 1.0, %v7054_v55  ;;  %7065 = vrcp.f32 %v1118_v34  ;;  %v644_v26 = vadd.f32 %v580_v20, %v390_v6  ;;  %v645_v29 = vadd.f32 %v581_v58, %v391_v48 }
 0x19c   :  { %v7058_v24 = vpop.eup %7057  ;;  %v1408_v11 = vadd.f32 %v1407_v50, %v1339_v28  ;;  %v1121_v4 = vadd.f32 1.0, %v7056_v17  ;;  %7067 = vrcp.f32 %v1119_v7  ;;  %v828_v25 = vmul.f32 %v8396_v59, %v9228_v47  ;;  %v9278_v47 = vld [vmem:[#allocation75_spill] sm:$0xff] }
 0x19d   :  { %v7060_v43 = vpop.eup %7059  ;;  %v829_v2 = vmul.f32 %v8396_v59, %v9230_v3  ;;  %v1122_v52 = vadd.f32 1.0, %v7058_v24  ;;  %7069 = vrcp.f32 %v1120_v42  ;;  %v830_v49 = vmul.f32 %v8396_v59, %v9231_v13  ;;  %v9279_v3 = vld [vmem:[#allocation76_spill] sm:$0xff] }
 0x19e   :  { %1409 = vadd.xlane.f32.xlu1 %v1408_v11  ;;  %v831_v28 = vmul.f32 %v8396_v59, %v9232_v21  ;;  %v1123_v51 = vadd.f32 1.0, %v7060_v43  ;;  %v832_v61 = vmul.f32 %v8396_v59, %v9233_v40  ;;  %v833_v14 = vmul.f32 %v8396_v59, %v9234_v5 }
 0x19f   :  { %v834_v0 = vmul.f32 %v8396_v59, %v9278_v47  ;;  %7071 = vrcp.f32 %v1121_v4  ;;  %v835_v32 = vmul.f32 %v8396_v59, %v9279_v3  ;;  %v8502_v62 = vadd.f32 %v828_v25, %v638_v16 }
 0x1a0   :  { %v8504_v13 = vadd.f32 %v829_v2, %v639_v18  ;;  %v8506_v33 = vadd.f32 %v830_v49, %v640_v8  ;;  %v8508_v21 = vadd.f32 %v831_v28, %v641_v63  ;;  %v8510_v6 = vadd.f32 %v832_v61, %v642_v36 }
 0x1a1   :  { %v8512_v40 = vadd.f32 %v833_v14, %v643_v10  ;;  %7073 = vrcp.f32 %v1122_v52  ;;  %v8514_v5 = vadd.f32 %v834_v0, %v644_v26  ;;  %v5578_v48 = vmul.f32 -1.442695, %v8502_v62 }
 0x1a2   :  { %v5579_v12 = vmul.f32 -1.442695, %v8504_v13  ;;  %7075 = vrcp.f32 %v1123_v51  ;;  %v8518_v37 = vadd.f32 %v835_v32, %v645_v29  ;;  %v5580_v57 = vmul.f32 -1.442695, %v8506_v33 }
 0x1a3   :  { %v7062_v59 = vpop.eup %7061  ;;  %v5581_v44 = vmul.f32 -1.442695, %v8508_v21  ;;  %7077 = vpow2.f32 %v5578_v48  ;;  %v5582_v23 = vmul.f32 -1.442695, %v8510_v6  ;;  %v5583_v19 = vmul.f32 -1.442695, %v8512_v40 }
 0x1a4   :  { %v7064_v60 = vpop.eup %7063  ;;  %v1308_v9 = vmul.f32 %v7062_v59, %v8414_v22  ;;  %7079 = vpow2.f32 %v5579_v12  ;;  %v5584_v1 = vmul.f32 -1.442695, %v8514_v5  ;;  %v5585_v20 = vmul.f32 -1.442695, %v8518_v37 }
 0x1a5   :  { %v7066_v46 = vpop.eup %7065  ;;  %v1309_v38 = vmul.f32 %v7064_v60, %v8416_v27  ;;  %7081 = vpow2.f32 %v5580_v57 }
 0x1a6   :  { %v7068_v39 = vpop.eup %7067  ;;  %v1310_v35 = vmul.f32 %v7066_v46, %v8418_v54  ;;  %7083 = vpow2.f32 %v5581_v44 }
 0x1a7   :  { %v1375_v15 = vadd.f32 %v1309_v38, %v1308_v9  ;;  %v7070_v22 = vpop.eup %7069  ;;  %7085 = vpow2.f32 %v5582_v23  ;;  %v1311_v58 = vmul.f32 %v7068_v39, %v8420_v45  ;;  %v6262_v39 = vld [vmem:[#allocation2 + $0xc] ss:$40 sps:$4 sm:$0xff]  }
 0x1a8   :  { %7087 = vpow2.f32 %v5583_v19  ;;  %v1312_v34 = vmul.f32 %v7070_v22, %v8422_v31  ;;  %1713 = vmatprep.subr.bf16.mxu1 %v6262_v39  ;;  %v6279_v22 = vld [vmem:[#allocation2 + $0x14] ss:$40 sps:$4 sm:$0xff]  }
 0x1a9   :  { %v1376_v56 = vadd.f32 %v1375_v15, %v1310_v35  ;;  %v7072_v27 = vpop.eup %7071  ;;  %7089 = vpow2.f32 %v5584_v1  ;;  %v6266_v1 = vld [vmem:[#allocation2 + $0x8] ss:$40 sps:$4 sm:$0xff]   ;;  %v6268_v15 = vld [vmem:[#allocation2 + $0x5c] ss:$40 sps:$4 sm:$0xff]  }
 0x1aa   :  { %7091 = vpow2.f32 %v5585_v20  ;;  %v1313_v54 = vmul.f32 %v7072_v27, %v8424_v41  ;;  %v6267_v35 = vld [vmem:[#allocation2] ss:$40 sps:$4 sm:$0xff]   ;;  %1714 = vmatpush1.bf16.msra.mxu1 %v6266_v1  ;;  %v6273_v20 = vld [vmem:[#allocation2 + $0x50] ss:$40 sps:$4 sm:$0xff]  }
 0x1ab   :  { %v1377_v16 = vadd.f32 %v1376_v56, %v1311_v58  ;;  %v7074_v18 = vpop.eup %7073  ;;  %1715 = vmatprep.subr.bf16.mxu1 %v6268_v15  ;;  %v8553_v1 = vld [vmem:[%s8963_s1] sm:$0xff] }
 0x1ac   :  { %v7076_v55 = vpop.eup %7075  ;;  %v1314_v17 = vmul.f32 %v7074_v18, %v8426_v53 }
 0x1ad   :  { %v1378_v50 = vadd.f32 %v1377_v16, %v1312_v34  ;;  %v7078_v7 = vpop.eup %7077  ;;  %v1315_v11 = vmul.f32 %v7076_v55, %v8428_v30  ;;  %v9280_v16 = vlaneseq }
 0x1ae   :  { %v7080_v8 = vpop.eup %7079  ;;  %v1148_v63 = vadd.f32 1.0, %v7078_v7 }
 0x1af   :  { %v1379_v42 = vadd.f32 %v1378_v50, %v1313_v54  ;;  %v7082_v45 = vpop.eup %7081  ;;  %v1149_v36 = vadd.f32 1.0, %v7080_v8  ;;  %v1520_v18 = vand.u32 127, %v9280_v16 }
 0x1b0   :  { %v7084_v24 = vpop.eup %7083  ;;  %v1150_v31 = vadd.f32 1.0, %v7082_v45  ;;  %7093 = vrcp.f32 %v1148_v63 }
 0x1b1   :  { %v1380_v4 = vadd.f32 %v1379_v42, %v1314_v17  ;;  %v7086_v10 = vpop.eup %7085  ;;  %v1151_v43 = vadd.f32 1.0, %v7084_v24  ;;  %7095 = vrcp.f32 %v1149_v36  ;;  %v1525_v17 = vadd.s32 4294967288, %v1520_v18 }
 0x1b2   :  { %v7088_v26 = vpop.eup %7087  ;;  %v1152_v29 = vadd.f32 1.0, %v7086_v10  ;;  %7097 = vrcp.f32 %v1150_v31  ;;  %v1532_v36 = vadd.s32 4294967280, %v1520_v18 }
 0x1b3   :  { %v1381_v41 = vadd.f32 %v1380_v4, %v1315_v11  ;;  %v7090_v25 = vpop.eup %7089  ;;  %v1153_v2 = vadd.f32 1.0, %v7088_v26  ;;  %7099 = vrcp.f32 %v1151_v43  ;;  %v9281_v4 = vld [vmem:[#allocation19_spill] sm:$0xff] }
 0x1b4   :  { %v7092_v53 = vpop.eup %7091  ;;  %v1154_v52 = vadd.f32 1.0, %v7090_v25  ;;  %7101 = vrcp.f32 %v1152_v29  ;;  %v1523_v31 = vsub.s32 %v1520_v18, %v9281_v4  ;;  %v1528_v10 = vsub.s32 %v1525_v17, %v9281_v4  ;;  %v6295_v17 = vld [vmem:[#allocation2 + $0x70] ss:$40 sps:$4 sm:$0xff]  }
 0x1b5   :  { %1382 = vadd.xlane.f32.xlu0 %v1381_v41  ;;  %v1155_v49 = vadd.f32 1.0, %v7092_v53  ;;  %7103 = vrcp.f32 %v1153_v2  ;;  %v1539_v29 = vadd.s32 4294967272, %v1520_v18  ;;  %v1535_v25 = vsub.s32 %v1532_v36, %v9281_v4  ;;  %v6286_v18 = vld [vmem:[#allocation7] ss:$24 sps:$4 sm:$0xff]  }
 0x1b6   :  { %7105 = vrcp.f32 %v1154_v52  ;;  %v6316_v36 = vld [vmem:[#allocation7 + $0x8] ss:$24 sps:$4 sm:$0xff]  }
 0x1b7   :  { %7107 = vrcp.f32 %v1155_v49 }
 0x1ba   :  { %v7094_v30 = vpop.eup %7093 }
 0x1bb   :  { %v7096_v28 = vpop.eup %7095  ;;  %v1340_v51 = vmul.f32 %v7094_v30, %v8502_v62 }
 0x1bc   :  { %v7098_v61 = vpop.eup %7097  ;;  %v1341_v14 = vmul.f32 %v7096_v28, %v8504_v13 }
 0x1bd   :  { %v7100_v47 = vpop.eup %7099  ;;  %v1342_v0 = vmul.f32 %v7098_v61, %v8506_v33 }
 0x1be   :  { %v1411_v3 = vadd.f32 %v1341_v14, %v1340_v51  ;;  %v7102_v32 = vpop.eup %7101  ;;  %v1343_v48 = vmul.f32 %v7100_v47, %v8508_v21  ;;  %v6264_v21 = vld [vmem:[#allocation2 + $0x4] ss:$40 sps:$4 sm:$0xff]   ;;  %v7326_v51 = vmov 1983009808  }
 0x1bf   :  { %v7104_v59 = vpop.eup %7103  ;;  %v1344_v57 = vmul.f32 %v7102_v32, %v8510_v6  ;;  %v6270_v6 = vld [vmem:[#allocation2 + $0x54] ss:$40 sps:$4 sm:$0xff]   ;;  %1672 = vmatprep.subr.bf16.mxu0 %v6264_v21  ;;  %v1953_v61 = vunpack.c.l.s4 %v7326_v51 }
 0x1c0   :  { %v1412_v12 = vadd.f32 %v1411_v3, %v1342_v0  ;;  %v7106_v60 = vpop.eup %7105  ;;  %v1345_v9 = vmul.f32 %v7104_v59, %v8512_v40  ;;  %1673 = vmatpush1.bf16.msra.mxu0 %v6267_v35  ;;  %v6272_v40 = vld [vmem:[#allocation2 + $0x58] ss:$40 sps:$4 sm:$0xff]   ;;  %v1542_v0 = vsub.s32 %v1539_v29, %v9281_v4 }
 0x1c1   :  { %v7108_v62 = vpop.eup %7107  ;;  %v1346_v46 = vmul.f32 %v7106_v60, %v8514_v5  ;;  %1674 = vmatprep.subr.bf16.mxu0 %v6270_v6  ;;  %v6276_v5 = vld [vmem:[#allocation2 + $0x1c] ss:$40 sps:$4 sm:$0xff]   ;;  %1716 = vmatpush1.bf16.msra.mxu1 %v6272_v40  ;;  %v1954_v60 = vunpack.c.0.s8 %v1953_v61  ;;  %v6274_v35 = vld [vmem:[#allocation2 + $0x18] ss:$40 sps:$4 sm:$0xff]  }
 0x1c2   :  { %v1413_v44 = vadd.f32 %v1412_v12, %v1343_v48  ;;  %v1347_v38 = vmul.f32 %v7108_v62, %v8518_v37  ;;  %1795 = vmatprep.subr.bf16.mxu1 %v6276_v5  ;;  %v6277_v6 = vld [vmem:[#allocation2 + $0x10] ss:$40 sps:$4 sm:$0xff]   ;;  %v6285_v5 = vld [vmem:[#allocation2 + $0x64] ss:$40 sps:$4 sm:$0xff]  }
 0x1c3   :  { %v6309_v29 = vld [vmem:[#allocation7 + $0xf4] ss:$24 sps:$4 sm:$0xff]  }
 0x1c4   :  { %v1414_v23 = vadd.f32 %v1413_v44, %v1344_v57  ;;  %1675 = vmatpush1.bf16.msra.mxu0 %v6273_v20  ;;  %v6282_v20 = vld [vmem:[#allocation2 + $0x6c] ss:$40 sps:$4 sm:$0xff]   ;;  %v6348_v61 = vld [vmem:[#allocation7 + $0xfc] ss:$24 sps:$4 sm:$0xff]  }
 0x1c5   :  { %1754 = vmatprep.subr.bf16.mxu0 %v6279_v22  ;;  %v6315_v51 = vld [vmem:[#allocation7 + $0x154] ss:$24 sps:$4 sm:$0xff]  }
 0x1c6   :  { %v1415_v13 = vadd.f32 %v1414_v23, %v1345_v9 }
 0x1c8   :  { %v1416_v33 = vadd.f32 %v1415_v13, %v1346_v46  ;;  %v1365_v27 = vpop.xlane.xlu1 %1364 }
 0x1c9   :  { %v1422_v55 = vmul.f32 0.0009765625, %v1365_v27  ;;  %v6291_v27 = vld [vmem:[#allocation2 + $0x24] ss:$40 sps:$4 sm:$0xff]  }
 0x1ca   :  { %v1417_v19 = vadd.f32 %v1416_v33, %v1347_v38 }
 0x1cc   :  { %1418 = vadd.xlane.f32.xlu0 %v1417_v19  ;;  %v8548_v19 = vsub.s32 %v1954_v60, %v9281_v4  ;;  %v6301_v4 = vld [vmem:[#allocation7 + $0x90] ss:$24 sps:$4 sm:$0xff]   ;;  %v6333_v60 = vld [vmem:[#allocation7 + $0x1e4] ss:$24 sps:$4 sm:$0xff]  }
 0x1ce   :  { %v8557_v22 = vrot.slane %v8553_v1, %v8548_v19 }
 0x1d0   :  { %v1966_v16 = vcombine.high %v8557_v22, %v8557_v22 }
 0x1d4   :  { %v1356_v37 = vpop.xlane.xlu0 %1355 }
 0x1d5   :  { %v1421_v54 = vmul.f32 0.0009765625, %v1356_v37  ;;  %v6280_v37 = vld [vmem:[#allocation2 + $0x68] ss:$40 sps:$4 sm:$0xff]  }
 0x1d7   :  { %v1429_v63 = vpack.c.bf16 %v1422_v55, %v1421_v54  ;;  %v6289_v55 = vld [vmem:[#allocation2 + $0x20] ss:$40 sps:$4 sm:$0xff]  }
 0x1d8   :  { %v6294_v54 = vld [vmem:[#allocation7 + $0x34] ss:$24 sps:$4 sm:$0xff]  }
 0x1d9   :  { %v1511_v43 = vunpack.c.l.b16 %v1429_v63  ;;  %v1512_v26 = vunpack.c.h.b16 %v1429_v63  ;;  %v6318_v63 = vld [vmem:[#allocation7 + $0xc] ss:$24 sps:$4 sm:$0xff]  }
 0x1db   :  { %v1524_v14 = vrot.slane %v1511_v43, %v1523_v31  ;;  %v1529_v47 = vrot.slane %v1512_v26, %v1528_v10  ;;  %v6330_v43 = vld [vmem:[#allocation7 + $0x6c] ss:$24 sps:$4 sm:$0xff]   ;;  %v6304_v26 = vld [vmem:[#allocation7 + $0xc0] ss:$24 sps:$4 sm:$0xff]  }
 0x1dd   :  { %v1531_v9 = vsel %vm1530_vm0, %v1529_v47, %v1524_v14  ;;  %v6313_v14 = vld [vmem:[#allocation7 + $0x150] ss:$24 sps:$4 sm:$0xff]  }
 0x1de   :  { %v6346_v47 = vld [vmem:[#allocation7 + $0xf8] ss:$24 sps:$4 sm:$0xff]  }
 0x1e5   :  { %v1392_v58 = vpop.xlane.xlu0 %1391 }
 0x1e6   :  { %v1425_v45 = vmul.f32 0.0009765625, %v1392_v58  ;;  %v6283_v58 = vld [vmem:[#allocation2 + $0x60] ss:$40 sps:$4 sm:$0xff]  }
 0x1fc   :  { %v1374_v50 = vpop.xlane.xlu1 %1373 }
 0x1fd   :  { %v1423_v42 = vmul.f32 0.0009765625, %v1374_v50  ;;  %v6297_v50 = vld [vmem:[#allocation2 + $0x74] ss:$40 sps:$4 sm:$0xff]  }
 0x213   :  { %v1401_v56 = vpop.xlane.xlu0 %1400 }
 0x214   :  { %v1426_v8 = vmul.f32 0.0009765625, %v1401_v56  ;;  %v6288_v56 = vld [vmem:[#allocation7 + $0x4] ss:$24 sps:$4 sm:$0xff]  }
 0x216   :  { %v1431_v11 = vpack.c.bf16 %v1426_v8, %v1425_v45  ;;  %v6292_v8 = vld [vmem:[#allocation7 + $0x30] ss:$24 sps:$4 sm:$0xff]   ;;  %v6298_v45 = vld [vmem:[#allocation7 + $0x60] ss:$24 sps:$4 sm:$0xff]  }
 0x218   :  { %v1515_v53 = vunpack.c.l.b16 %v1431_v11  ;;  %v1516_v52 = vunpack.c.h.b16 %v1431_v11  ;;  %v6324_v11 = vld [vmem:[#allocation7 + $0x3c] ss:$24 sps:$4 sm:$0xff]  }
 0x21a   :  { %v1549_v12 = vrot.slane %v1515_v53, %v1523_v31  ;;  %v1553_v59 = vrot.slane %v1516_v52, %v1528_v10  ;;  %v6322_v31 = vld [vmem:[#allocation7 + $0x38] ss:$24 sps:$4 sm:$0xff]   ;;  %v6306_v10 = vld [vmem:[#allocation7 + $0xc4] ss:$24 sps:$4 sm:$0xff]  }
 0x21b   :  { %v6334_v53 = vld [vmem:[#allocation7 + $0x98] ss:$24 sps:$4 sm:$0xff]   ;;  %v6312_v52 = vld [vmem:[#allocation7 + $0x124] ss:$24 sps:$4 sm:$0xff]  }
 0x21c   :  { %v1554_v38 = vsel %vm1530_vm0, %v1553_v59, %v1549_v12  ;;  %v6327_v12 = vld [vmem:[#allocation7 + $0x1b4] ss:$24 sps:$4 sm:$0xff]  }
 0x21d   :  { %v6360_v59 = vld [vmem:[#allocation7 + $0x15c] ss:$24 sps:$4 sm:$0xff]  }
 0x22b   :  { %v1410_v41 = vpop.xlane.xlu1 %1409 }
 0x22c   :  { %v1427_v30 = vmul.f32 0.0009765625, %v1410_v41  ;;  %v6328_v41 = vld [vmem:[#allocation7 + $0x68] ss:$24 sps:$4 sm:$0xff]  }
 0x242   :  { %v1383_v34 = vpop.xlane.xlu0 %1382 }
 0x243   :  { %v1424_v7 = vmul.f32 0.0009765625, %v1383_v34  ;;  %v9282_v34 = vmov 0  }
 0x245   :  { %v1430_v24 = vpack.c.bf16 %v1424_v7, %v1423_v42  ;;  %v8565_v7 = vpack.c.bf16 %v1966_v16, %v1966_v16  ;;  %v6300_v42 = vld [vmem:[#allocation7 + $0x64] ss:$24 sps:$4 sm:$0xff]   ;;  %v6363_v16 = vld [vmem:[#allocation7 + $0x2d4] ss:$24 sps:$4 sm:$0xff]  }
 0x247   :  { %v1513_v2 = vunpack.c.l.b16 %v1430_v24  ;;  %v1514_v3 = vunpack.c.h.b16 %v1430_v24  ;;  %v6303_v24 = vld [vmem:[#allocation7 + $0x94] ss:$24 sps:$4 sm:$0xff]  }
 0x249   :  { %v1536_v32 = vrot.slane %v1513_v2, %v1535_v25  ;;  %v1543_v23 = vrot.slane %v1514_v3, %v1542_v0  ;;  %v6307_v2 = vld [vmem:[#allocation7 + $0xf0] ss:$24 sps:$4 sm:$0xff]   ;;  %v6354_v3 = vld [vmem:[#allocation7 + $0x12c] ss:$24 sps:$4 sm:$0xff]  }
 0x24b   :  { %v1538_v62 = vsel %vm1537_vm1, %v1536_v32, %v1531_v9  ;;  %v6319_v32 = vld [vmem:[#allocation7 + $0x180] ss:$24 sps:$4 sm:$0xff]   ;;  %v6366_v9 = vld [vmem:[#allocation7 + $0x18c] ss:$24 sps:$4 sm:$0xff]  }
 0x24c   :  { %v1545_v39 = vsel %vm1544_vm2, %v1543_v23, %v1538_v62  ;;  %v6331_v23 = vld [vmem:[#allocation7 + $0x1e0] ss:$24 sps:$4 sm:$0xff]  }
 0x24d   :  { %v6364_v62 = vld [vmem:[#allocation7 + $0x188] ss:$24 sps:$4 sm:$0xff]  }
 0x259   :  { %v1419_v49 = vpop.xlane.xlu0 %1418 }
 0x25a   :  { %v1428_v28 = vmul.f32 0.0009765625, %v1419_v49  ;;  %v6342_v49 = vld [vmem:[#allocation7 + $0xcc] ss:$24 sps:$4 sm:$0xff]  }
 0x25c   :  { %v1432_v48 = vpack.c.bf16 %v1428_v28, %v1427_v30  ;;  %v6310_v30 = vld [vmem:[#allocation7 + $0x120] ss:$24 sps:$4 sm:$0xff]  }
 0x25d   :  { %v6340_v28 = vld [vmem:[#allocation7 + $0xc8] ss:$24 sps:$4 sm:$0xff]  }
 0x25e   :  { %v1517_v57 = vunpack.c.l.b16 %v1432_v48  ;;  %v1518_v44 = vunpack.c.h.b16 %v1432_v48  ;;  %v6352_v48 = vld [vmem:[#allocation7 + $0x128] ss:$24 sps:$4 sm:$0xff]  }
 0x260   :  { %v1558_v46 = vrot.slane %v1517_v57, %v1535_v25  ;;  %v1563_v13 = vrot.slane %v1518_v44, %v1542_v0  ;;  %v6336_v25 = vld [vmem:[#allocation7 + $0x9c] ss:$24 sps:$4 sm:$0xff]   ;;  %v6325_v57 = vld [vmem:[#allocation7 + $0x1b0] ss:$24 sps:$4 sm:$0xff]  }
 0x261   :  { %v6321_v0 = vld [vmem:[#allocation7 + $0x184] ss:$24 sps:$4 sm:$0xff]   ;;  %v6358_v44 = vld [vmem:[#allocation7 + $0x158] ss:$24 sps:$4 sm:$0xff]  }
 0x262   :  { %v1559_v33 = vsel %vm1537_vm1, %v1558_v46, %v1554_v38  ;;  %v6339_v46 = vld [vmem:[#allocation7 + $0x214] ss:$24 sps:$4 sm:$0xff]   ;;  %v6337_v38 = vld [vmem:[#allocation7 + $0x210] ss:$24 sps:$4 sm:$0xff]  }
 0x263   :  { %v1564_v21 = vsel %vm1544_vm2, %v1563_v13, %v1559_v33  ;;  %v6372_v13 = vld [vmem:[#allocation7 + $0x1bc] ss:$24 sps:$4 sm:$0xff]   ;;  %v6370_v33 = vld [vmem:[#allocation7 + $0x1b8] ss:$24 sps:$4 sm:$0xff]  }
 0x264   :  { %v1566_v15 = vsel %vm1565_vm3, %v1564_v21, %v1545_v39  ;;  %v6345_v39 = vld [vmem:[#allocation7 + $0x244] ss:$24 sps:$4 sm:$0xff]  }
 0x265   :  { %v1567_v40 = vpack.c.b16 %v1566_v15, %v1566_v15  ;;  %v6378_v21 = vld [vmem:[#allocation7 + $0x1ec] ss:$24 sps:$4 sm:$0xff]   ;;  %v6376_v15 = vld [vmem:[#allocation7 + $0x1e8] ss:$24 sps:$4 sm:$0xff]  }
 0x267   :  { %5606 = vmatmul.mubr.msk.bf16.vlgmr.msra.gmra.mrb[0].mxu0 %vm1668_vm4, %v1567_v40  ;;  %5607 = vmatmul.mubr.msk.bf16.vlgmr.msra.gmra.mrb[0].mxu1 %vm1668_vm4, %v1567_v40 }
 0x268   :  { %1796 = vmatpush1.bf16.msra.mxu1 %v6274_v35  ;;  %1755 = vmatpush1.bf16.msra.mxu0 %v6277_v6  ;;  %v6343_v35 = vld [vmem:[#allocation7 + $0x240] ss:$24 sps:$4 sm:$0xff]   ;;  %v6351_v6 = vld [vmem:[#allocation7 + $0x274] ss:$24 sps:$4 sm:$0xff]  }
 0x269   :  { %1797 = vmatprep.subr.bf16.mxu1 %v6282_v20  ;;  %1756 = vmatprep.subr.bf16.mxu0 %v6285_v5  ;;  %v6349_v20 = vld [vmem:[#allocation7 + $0x270] ss:$24 sps:$4 sm:$0xff]  }
 0x26a   :  { %1786 = vmatprep.mubr.bf16.mxu0 %v9282_v34  ;;  %1827 = vmatprep.mubr.bf16.mxu1 %v9282_v34  ;;  %v6382_v5 = vld [vmem:[#allocation7 + $0x218] ss:$24 sps:$4 sm:$0xff]  }
 0x26c   :  { %1798 = vmatpush1.bf16.msra.mxu1 %v6280_v37  ;;  %1757 = vmatpush1.bf16.msra.mxu0 %v6283_v58  ;;  %v6357_v37 = vld [vmem:[#allocation7 + $0x2a4] ss:$24 sps:$4 sm:$0xff]  }
 0x26d   :  { %3748 = vmatprep.subr.bf16.mxu1 %v6288_v56  ;;  %1836 = vmatprep.subr.bf16.mxu0 %v6291_v27  ;;  %v6390_v58 = vld [vmem:[#allocation7 + $0x24c] ss:$24 sps:$4 sm:$0xff]   ;;  %v1951_v56 = vcombine.high %v8553_v1, %v8553_v1  ;;  %v6355_v27 = vld [vmem:[#allocation7 + $0x2a0] ss:$24 sps:$4 sm:$0xff]  }
 0x26f   :  { %5608 = vmatmul.mubr.msk.bf16.vlgmr.msra.gmra.mrb[4].mxu0 %vm1668_vm4, %v1567_v40  ;;  %5609 = vmatmul.mubr.msk.bf16.vlgmr.msra.gmra.mrb[4].mxu1 %vm1668_vm4, %v1567_v40 }
 0x270   :  { %3749 = vmatpush1.bf16.msra.mxu1 %v6286_v18  ;;  %1837 = vmatpush1.bf16.msra.mxu0 %v6289_v55  ;;  %v6396_v18 = vld [vmem:[#allocation7 + $0x27c] ss:$24 sps:$4 sm:$0xff]   ;;  %v8576_v55 = vrot.slane %v1951_v56, %v8548_v19  ;;  %v6400_v19 = vld [vmem:[#allocation7 + $0x2a8] ss:$24 sps:$4 sm:$0xff]  }
 0x271   :  { %3750 = vmatprep.subr.bf16.mxu1 %v6294_v54  ;;  %1838 = vmatprep.subr.bf16.mxu0 %v6297_v50  ;;  %v6361_v54 = vld [vmem:[#allocation7 + $0x2d0] ss:$24 sps:$4 sm:$0xff]   ;;  %v6447_v56 = vld [vmem:[#allocation7 + $0x574] ss:$24 sps:$4 sm:$0xff]  }
 0x272   :  { %1868 = vmatprep.mubr.bf16.mxu0 %v9282_v34  ;;  %3780 = vmatprep.mubr.bf16.mxu1 %v8565_v7  ;;  %v6388_v34 = vld [vmem:[#allocation7 + $0x248] ss:$24 sps:$4 sm:$0xff]   ;;  %v6394_v50 = vld [vmem:[#allocation7 + $0x278] ss:$24 sps:$4 sm:$0xff]   ;;  %v1967_v1 = vcombine.high %v8576_v55, %v8576_v55 }
 0x274   :  { %3751 = vmatpush1.bf16.msra.mxu1 %v6292_v8  ;;  %1839 = vmatpush1.bf16.msra.mxu0 %v6295_v17  ;;  %v6369_v8 = vld [vmem:[#allocation7 + $0x304] ss:$24 sps:$4 sm:$0xff]  }
 0x275   :  { %3752 = vmatprep.subr.bf16.mxu1 %v6300_v42  ;;  %3871 = vmatprep.subr.bf16.mxu0 %v6318_v63  ;;  %v6402_v17 = vld [vmem:[#allocation7 + $0x2ac] ss:$24 sps:$4 sm:$0xff]   ;;  %v8582_v42 = vpack.c.bf16 %v8557_v22, %v8557_v22  ;;  %v6367_v63 = vld [vmem:[#allocation7 + $0x300] ss:$24 sps:$4 sm:$0xff]  }
 0x276   :  { %v6414_v22 = vld [vmem:[#allocation7 + $0x30c] ss:$24 sps:$4 sm:$0xff]  }
 0x277   :  { %5610 = vmatmul.mubr.msk.bf16.vlgmr.msra.gmra.mrb[8].mxu0 %vm1668_vm4, %v1567_v40  ;;  %v6384_v40 = vld [vmem:[#allocation7 + $0x21c] ss:$24 sps:$4 sm:$0xff]  }
 0x278   :  { %3753 = vmatpush1.bf16.msra.mxu1 %v6298_v45  ;;  %3872 = vmatpush1.bf16.msra.mxu0 %v6316_v36  ;;  %v6375_v45 = vld [vmem:[#allocation7 + $0x334] ss:$24 sps:$4 sm:$0xff]  }
 0x279   :  { %3754 = vmatprep.subr.bf16.mxu1 %v6303_v24  ;;  %3873 = vmatprep.subr.bf16.mxu0 %v6324_v11  ;;  %v6408_v36 = vld [vmem:[#allocation7 + $0x2dc] ss:$24 sps:$4 sm:$0xff]   ;;  %v8584_v24 = vpack.c.bf16 %v1967_v1, %v1967_v1  ;;  %v6373_v11 = vld [vmem:[#allocation7 + $0x330] ss:$24 sps:$4 sm:$0xff]  }
 0x27a   :  { %3903 = vmatprep.mubr.bf16.mxu0 %v8565_v7  ;;  %v6493_v1 = vld [vmem:[#allocation7 + $0x57c] ss:$24 sps:$4 sm:$0xff]  }
 0x27c   :  { %3755 = vmatpush1.bf16.msra.mxu1 %v6301_v4  ;;  %3874 = vmatpush1.bf16.msra.mxu0 %v6322_v31  ;;  %v6406_v4 = vld [vmem:[#allocation7 + $0x2d8] ss:$24 sps:$4 sm:$0xff]   ;;  %v6381_v31 = vld [vmem:[#allocation7 + $0x364] ss:$24 sps:$4 sm:$0xff]  }
 0x27d   :  { %3756 = vmatprep.subr.bf16.mxu1 %v6306_v10  ;;  %3875 = vmatprep.subr.bf16.mxu0 %v6330_v43  ;;  %v6379_v10 = vld [vmem:[#allocation7 + $0x360] ss:$24 sps:$4 sm:$0xff]  }
 0x27e   :  { %v6412_v43 = vld [vmem:[#allocation7 + $0x308] ss:$24 sps:$4 sm:$0xff]  }
 0x280   :  { %3757 = vmatpush1.bf16.msra.mxu1 %v6304_v26  ;;  %3876 = vmatpush1.bf16.msra.mxu0 %v6328_v41  ;;  %v6387_v26 = vld [vmem:[#allocation7 + $0x394] ss:$24 sps:$4 sm:$0xff]  }
 0x281   :  { %3758 = vmatprep.subr.bf16.mxu1 %v6309_v29  ;;  %3877 = vmatprep.subr.bf16.mxu0 %v6336_v25  ;;  %v6420_v41 = vld [vmem:[#allocation7 + $0x33c] ss:$24 sps:$4 sm:$0xff]   ;;  %v6385_v29 = vld [vmem:[#allocation7 + $0x390] ss:$24 sps:$4 sm:$0xff]  }
 0x282   :  { %v6418_v25 = vld [vmem:[#allocation7 + $0x338] ss:$24 sps:$4 sm:$0xff]  }
 0x284   :  { %3759 = vmatpush1.bf16.msra.mxu1 %v6307_v2  ;;  %3878 = vmatpush1.bf16.msra.mxu0 %v6334_v53  ;;  %v6393_v2 = vld [vmem:[#allocation7 + $0x3c4] ss:$24 sps:$4 sm:$0xff]  }
 0x285   :  { %3760 = vmatprep.subr.bf16.mxu1 %v6312_v52  ;;  %3879 = vmatprep.subr.bf16.mxu0 %v6342_v49  ;;  %v6426_v53 = vld [vmem:[#allocation7 + $0x36c] ss:$24 sps:$4 sm:$0xff]   ;;  %v6391_v52 = vld [vmem:[#allocation7 + $0x3c0] ss:$24 sps:$4 sm:$0xff]  }
 0x286   :  { %v6424_v49 = vld [vmem:[#allocation7 + $0x368] ss:$24 sps:$4 sm:$0xff]  }
 0x288   :  { %3761 = vmatpush1.bf16.msra.mxu1 %v6310_v30  ;;  %3880 = vmatpush1.bf16.msra.mxu0 %v6340_v28  ;;  %v6399_v30 = vld [vmem:[#allocation7 + $0x3f4] ss:$24 sps:$4 sm:$0xff]  }
 0x289   :  { %3762 = vmatprep.subr.bf16.mxu1 %v6315_v51  ;;  %3881 = vmatprep.subr.bf16.mxu0 %v6348_v61  ;;  %v6432_v28 = vld [vmem:[#allocation7 + $0x39c] ss:$24 sps:$4 sm:$0xff]   ;;  %v6397_v51 = vld [vmem:[#allocation7 + $0x3f0] ss:$24 sps:$4 sm:$0xff]  }
 0x28a   :  { %v6430_v61 = vld [vmem:[#allocation7 + $0x398] ss:$24 sps:$4 sm:$0xff]  }
 0x28c   :  { %3763 = vmatpush1.bf16.msra.mxu1 %v6313_v14  ;;  %3882 = vmatpush1.bf16.msra.mxu0 %v6346_v47  ;;  %v6405_v14 = vld [vmem:[#allocation7 + $0x424] ss:$24 sps:$4 sm:$0xff]  }
 0x28d   :  { %3764 = vmatprep.subr.bf16.mxu1 %v6321_v0  ;;  %3883 = vmatprep.subr.bf16.mxu0 %v6354_v3  ;;  %v6438_v47 = vld [vmem:[#allocation7 + $0x3cc] ss:$24 sps:$4 sm:$0xff]   ;;  %v6403_v0 = vld [vmem:[#allocation7 + $0x420] ss:$24 sps:$4 sm:$0xff]  }
 0x28e   :  { %v6436_v3 = vld [vmem:[#allocation7 + $0x3c8] ss:$24 sps:$4 sm:$0xff]  }
 0x290   :  { %3765 = vmatpush1.bf16.msra.mxu1 %v6319_v32  ;;  %3884 = vmatpush1.bf16.msra.mxu0 %v6352_v48  ;;  %v6411_v32 = vld [vmem:[#allocation7 + $0x454] ss:$24 sps:$4 sm:$0xff]  }
 0x291   :  { %3766 = vmatprep.subr.bf16.mxu1 %v6327_v12  ;;  %3885 = vmatprep.subr.bf16.mxu0 %v6360_v59  ;;  %v6444_v48 = vld [vmem:[#allocation7 + $0x3fc] ss:$24 sps:$4 sm:$0xff]   ;;  %v6409_v12 = vld [vmem:[#allocation7 + $0x450] ss:$24 sps:$4 sm:$0xff]  }
 0x292   :  { %v6442_v59 = vld [vmem:[#allocation7 + $0x3f8] ss:$24 sps:$4 sm:$0xff]  }
 0x294   :  { %3767 = vmatpush1.bf16.msra.mxu1 %v6325_v57  ;;  %3886 = vmatpush1.bf16.msra.mxu0 %v6358_v44  ;;  %v6417_v57 = vld [vmem:[#allocation7 + $0x484] ss:$24 sps:$4 sm:$0xff]  }
 0x295   :  { %3768 = vmatprep.subr.bf16.mxu1 %v6333_v60  ;;  %3887 = vmatprep.subr.bf16.mxu0 %v6366_v9  ;;  %v6450_v44 = vld [vmem:[#allocation7 + $0x42c] ss:$24 sps:$4 sm:$0xff]   ;;  %v6415_v60 = vld [vmem:[#allocation7 + $0x480] ss:$24 sps:$4 sm:$0xff]  }
 0x296   :  { %v6448_v9 = vld [vmem:[#allocation7 + $0x428] ss:$24 sps:$4 sm:$0xff]  }
 0x298   :  { %3769 = vmatpush1.bf16.msra.mxu1 %v6331_v23  ;;  %3888 = vmatpush1.bf16.msra.mxu0 %v6364_v62  ;;  %v6423_v23 = vld [vmem:[#allocation7 + $0x4b4] ss:$24 sps:$4 sm:$0xff]  }
 0x299   :  { %3770 = vmatprep.subr.bf16.mxu1 %v6339_v46  ;;  %3889 = vmatprep.subr.bf16.mxu0 %v6372_v13  ;;  %v6456_v62 = vld [vmem:[#allocation7 + $0x45c] ss:$24 sps:$4 sm:$0xff]   ;;  %v6421_v46 = vld [vmem:[#allocation7 + $0x4b0] ss:$24 sps:$4 sm:$0xff]  }
 0x29a   :  { %v6454_v13 = vld [vmem:[#allocation7 + $0x458] ss:$24 sps:$4 sm:$0xff]  }
 0x29c   :  { %3771 = vmatpush1.bf16.msra.mxu1 %v6337_v38  ;;  %3890 = vmatpush1.bf16.msra.mxu0 %v6370_v33  ;;  %v6429_v38 = vld [vmem:[#allocation7 + $0x4e4] ss:$24 sps:$4 sm:$0xff]  }
 0x29d   :  { %3772 = vmatprep.subr.bf16.mxu1 %v6345_v39  ;;  %3891 = vmatprep.subr.bf16.mxu0 %v6378_v21  ;;  %v6462_v33 = vld [vmem:[#allocation7 + $0x48c] ss:$24 sps:$4 sm:$0xff]   ;;  %v6427_v39 = vld [vmem:[#allocation7 + $0x4e0] ss:$24 sps:$4 sm:$0xff]  }
 0x29e   :  { %v6460_v21 = vld [vmem:[#allocation7 + $0x488] ss:$24 sps:$4 sm:$0xff]  }
 0x2a0   :  { %3773 = vmatpush1.bf16.msra.mxu1 %v6343_v35  ;;  %3892 = vmatpush1.bf16.msra.mxu0 %v6376_v15  ;;  %v6435_v35 = vld [vmem:[#allocation7 + $0x514] ss:$24 sps:$4 sm:$0xff]  }
 0x2a1   :  { %3774 = vmatprep.subr.bf16.mxu1 %v6351_v6  ;;  %3893 = vmatprep.subr.bf16.mxu0 %v6384_v40  ;;  %v6469_v15 = vld [vmem:[#allocation7 + $0x4bc] ss:$24 sps:$4 sm:$0xff]   ;;  %v6433_v6 = vld [vmem:[#allocation7 + $0x510] ss:$24 sps:$4 sm:$0xff]  }
 0x2a2   :  { %v6467_v40 = vld [vmem:[#allocation7 + $0x4b8] ss:$24 sps:$4 sm:$0xff]  }
 0x2a4   :  { %3775 = vmatpush1.bf16.msra.mxu1 %v6349_v20  ;;  %3894 = vmatpush1.bf16.msra.mxu0 %v6382_v5  ;;  %v6441_v20 = vld [vmem:[#allocation7 + $0x544] ss:$24 sps:$4 sm:$0xff]  }
 0x2a5   :  { %3776 = vmatprep.subr.bf16.mxu1 %v6357_v37  ;;  %3895 = vmatprep.subr.bf16.mxu0 %v6390_v58  ;;  %v6475_v5 = vld [vmem:[#allocation7 + $0x4ec] ss:$24 sps:$4 sm:$0xff]   ;;  %v6439_v37 = vld [vmem:[#allocation7 + $0x540] ss:$24 sps:$4 sm:$0xff]  }
 0x2a6   :  { %v6473_v58 = vld [vmem:[#allocation7 + $0x4e8] ss:$24 sps:$4 sm:$0xff]  }
 0x2a8   :  { %3777 = vmatpush1.bf16.msra.mxu1 %v6355_v27  ;;  %3896 = vmatpush1.bf16.msra.mxu0 %v6388_v34  ;;  %v6481_v27 = vld [vmem:[#allocation7 + $0x51c] ss:$24 sps:$4 sm:$0xff]   ;;  %v6445_v34 = vld [vmem:[#allocation7 + $0x570] ss:$24 sps:$4 sm:$0xff]  }
 0x2a9   :  { %3778 = vmatprep.subr.bf16.mxu1 %v6363_v16  ;;  %3897 = vmatprep.subr.bf16.mxu0 %v6396_v18  ;;  %v6479_v16 = vld [vmem:[#allocation7 + $0x518] ss:$24 sps:$4 sm:$0xff]   ;;  %v6453_v18 = vld [vmem:[#allocation7 + $0x5a4] ss:$24 sps:$4 sm:$0xff]  }
 0x2ac   :  { %3779 = vmatpush1.bf16.msra.mxu1 %v6361_v54  ;;  %3898 = vmatpush1.bf16.msra.mxu0 %v6394_v50  ;;  %v6487_v54 = vld [vmem:[#allocation7 + $0x54c] ss:$24 sps:$4 sm:$0xff]   ;;  %v6451_v50 = vld [vmem:[#allocation7 + $0x5a0] ss:$24 sps:$4 sm:$0xff]  }
 0x2ad   :  { %3789 = vmatprep.subr.bf16.mxu1 %v6369_v8  ;;  %3899 = vmatprep.subr.bf16.mxu0 %v6402_v17  ;;  %v6485_v8 = vld [vmem:[#allocation7 + $0x548] ss:$24 sps:$4 sm:$0xff]   ;;  %v6459_v17 = vld [vmem:[#allocation7 + $0x5d4] ss:$24 sps:$4 sm:$0xff]  }
 0x2af   :  { %3781 = vmatmul.mubr.bf16.vlgmr.msra.gmra.mrb[8].mxu1 %v8582_v42 }
 0x2b0   :  { %3790 = vmatpush1.bf16.msra.mxu1 %v6367_v63  ;;  %3900 = vmatpush1.bf16.msra.mxu0 %v6400_v19  ;;  %v8593_v63 = vld.sshfl [vmem:[%s8963_s1 + $0x8] sm:$0x33 pattern:$0x76325410]  ;;  %v6457_v19 = vld [vmem:[#allocation7 + $0x5d0] ss:$24 sps:$4 sm:$0xff]  }
 0x2b1   :  { %3791 = vmatprep.subr.bf16.mxu1 %v6375_v45  ;;  %3901 = vmatprep.subr.bf16.mxu0 %v6408_v36  ;;  %v6491_v45 = vld [vmem:[#allocation7 + $0x578] ss:$24 sps:$4 sm:$0xff]   ;;  %v6466_v36 = vld [vmem:[#allocation7 + $0x604] ss:$24 sps:$4 sm:$0xff]  }
 0x2b2   :  { %3821 = vmatprep.mubr.bf16.mxu1 %v8584_v24 }
 0x2b4   :  { %3792 = vmatpush1.bf16.msra.mxu1 %v6373_v11  ;;  %3902 = vmatpush1.bf16.msra.mxu0 %v6406_v4  ;;  %v6499_v11 = vld [vmem:[#allocation7 + $0x5ac] ss:$24 sps:$4 sm:$0xff]   ;;  %v1975_v4 = vcombine.high %v8593_v63, %v8593_v63 }
 0x2b5   :  { %3793 = vmatprep.subr.bf16.mxu1 %v6381_v31  ;;  %3912 = vmatprep.subr.bf16.mxu0 %v6414_v22  ;;  %v8599_v31 = vpack.c.bf16 %v8576_v55, %v8576_v55  ;;  %v6464_v22 = vld [vmem:[#allocation7 + $0x600] ss:$24 sps:$4 sm:$0xff]   ;;  %v6511_v55 = vld [vmem:[#allocation7 + $0x60c] ss:$24 sps:$4 sm:$0xff]  }
 0x2b7   :  { %3904 = vmatmul.mubr.bf16.vlgmr.msra.gmra.mrb[12].mxu0 %v8582_v42 }
 0x2b8   :  { %3794 = vmatpush1.bf16.msra.mxu1 %v6379_v10  ;;  %3913 = vmatpush1.bf16.msra.mxu0 %v6412_v43  ;;  %v6497_v10 = vld [vmem:[#allocation7 + $0x5a8] ss:$24 sps:$4 sm:$0xff]   ;;  %v6472_v43 = vld [vmem:[#allocation7 + $0x634] ss:$24 sps:$4 sm:$0xff]  }
 0x2b9   :  { %3795 = vmatprep.subr.bf16.mxu1 %v6387_v26  ;;  %3914 = vmatprep.subr.bf16.mxu0 %v6420_v41  ;;  %v6505_v26 = vld [vmem:[#allocation7 + $0x5dc] ss:$24 sps:$4 sm:$0xff]   ;;  %v8601_v41 = vpack.c.bf16 %v1975_v4, %v1975_v4  ;;  %v6581_v4 = vld [vmem:[#allocation7 + $0x848] ss:$24 sps:$4 sm:$0xff]  }
 0x2ba   :  { %3944 = vmatprep.mubr.bf16.mxu0 %v8584_v24 }
 0x2bc   :  { %3796 = vmatpush1.bf16.msra.mxu1 %v6385_v29  ;;  %3915 = vmatpush1.bf16.msra.mxu0 %v6418_v25  ;;  %v6470_v29 = vld [vmem:[#allocation7 + $0x630] ss:$24 sps:$4 sm:$0xff]  }
 0x2bd   :  { %3797 = vmatprep.subr.bf16.mxu1 %v6393_v2  ;;  %3916 = vmatprep.subr.bf16.mxu0 %v6426_v53  ;;  %v6503_v25 = vld [vmem:[#allocation7 + $0x5d8] ss:$24 sps:$4 sm:$0xff]   ;;  %v6478_v2 = vld [vmem:[#allocation7 + $0x664] ss:$24 sps:$4 sm:$0xff]  }
 0x2be   :  { %v6476_v53 = vld [vmem:[#allocation7 + $0x660] ss:$24 sps:$4 sm:$0xff]  }
 0x2c0   :  { %3798 = vmatpush1.bf16.msra.mxu1 %v6391_v52  ;;  %3917 = vmatpush1.bf16.msra.mxu0 %v6424_v49  ;;  %v6509_v52 = vld [vmem:[#allocation7 + $0x608] ss:$24 sps:$4 sm:$0xff]   ;;  %v6484_v49 = vld [vmem:[#allocation7 + $0x694] ss:$24 sps:$4 sm:$0xff]  }
 0x2c1   :  { %3799 = vmatprep.subr.bf16.mxu1 %v6399_v30  ;;  %3918 = vmatprep.subr.bf16.mxu0 %v6432_v28  ;;  %v6517_v30 = vld [vmem:[#allocation7 + $0x63c] ss:$24 sps:$4 sm:$0xff]   ;;  %v6482_v28 = vld [vmem:[#allocation7 + $0x690] ss:$24 sps:$4 sm:$0xff]  }
 0x2c4   :  { %3800 = vmatpush1.bf16.msra.mxu1 %v6397_v51  ;;  %3919 = vmatpush1.bf16.msra.mxu0 %v6430_v61  ;;  %v6515_v51 = vld [vmem:[#allocation7 + $0x638] ss:$24 sps:$4 sm:$0xff]   ;;  %v6490_v61 = vld [vmem:[#allocation7 + $0x6c4] ss:$24 sps:$4 sm:$0xff]  }
 0x2c5   :  { %3801 = vmatprep.subr.bf16.mxu1 %v6405_v14  ;;  %3920 = vmatprep.subr.bf16.mxu0 %v6438_v47  ;;  %v6523_v14 = vld [vmem:[#allocation7 + $0x66c] ss:$24 sps:$4 sm:$0xff]   ;;  %v6488_v47 = vld [vmem:[#allocation7 + $0x6c0] ss:$24 sps:$4 sm:$0xff]  }
 0x2c8   :  { %3802 = vmatpush1.bf16.msra.mxu1 %v6403_v0  ;;  %3921 = vmatpush1.bf16.msra.mxu0 %v6436_v3  ;;  %v6521_v0 = vld [vmem:[#allocation7 + $0x668] ss:$24 sps:$4 sm:$0xff]   ;;  %v6496_v3 = vld [vmem:[#allocation7 + $0x6f4] ss:$24 sps:$4 sm:$0xff]  }
 0x2c9   :  { %3803 = vmatprep.subr.bf16.mxu1 %v6411_v32  ;;  %3922 = vmatprep.subr.bf16.mxu0 %v6444_v48  ;;  %v6529_v32 = vld [vmem:[#allocation7 + $0x69c] ss:$24 sps:$4 sm:$0xff]   ;;  %v6494_v48 = vld [vmem:[#allocation7 + $0x6f0] ss:$24 sps:$4 sm:$0xff]  }
 0x2cc   :  { %3804 = vmatpush1.bf16.msra.mxu1 %v6409_v12  ;;  %3923 = vmatpush1.bf16.msra.mxu0 %v6442_v59  ;;  %v6527_v12 = vld [vmem:[#allocation7 + $0x698] ss:$24 sps:$4 sm:$0xff]   ;;  %v6502_v59 = vld [vmem:[#allocation7 + $0x724] ss:$24 sps:$4 sm:$0xff]  }
 0x2cd   :  { %3805 = vmatprep.subr.bf16.mxu1 %v6417_v57  ;;  %3924 = vmatprep.subr.bf16.mxu0 %v6450_v44  ;;  %v6535_v57 = vld [vmem:[#allocation7 + $0x6cc] ss:$24 sps:$4 sm:$0xff]   ;;  %v6500_v44 = vld [vmem:[#allocation7 + $0x720] ss:$24 sps:$4 sm:$0xff]  }
 0x2d0   :  { %3806 = vmatpush1.bf16.msra.mxu1 %v6415_v60  ;;  %3925 = vmatpush1.bf16.msra.mxu0 %v6448_v9  ;;  %v6533_v60 = vld [vmem:[#allocation7 + $0x6c8] ss:$24 sps:$4 sm:$0xff]   ;;  %v6508_v9 = vld [vmem:[#allocation7 + $0x754] ss:$24 sps:$4 sm:$0xff]  }
 0x2d1   :  { %3807 = vmatprep.subr.bf16.mxu1 %v6423_v23  ;;  %3926 = vmatprep.subr.bf16.mxu0 %v6456_v62  ;;  %v6541_v23 = vld [vmem:[#allocation7 + $0x6fc] ss:$24 sps:$4 sm:$0xff]   ;;  %v6506_v62 = vld [vmem:[#allocation7 + $0x750] ss:$24 sps:$4 sm:$0xff]  }
 0x2d4   :  { %3808 = vmatpush1.bf16.msra.mxu1 %v6421_v46  ;;  %3927 = vmatpush1.bf16.msra.mxu0 %v6454_v13  ;;  %v6539_v46 = vld [vmem:[#allocation7 + $0x6f8] ss:$24 sps:$4 sm:$0xff]   ;;  %v6514_v13 = vld [vmem:[#allocation7 + $0x784] ss:$24 sps:$4 sm:$0xff]  }
 0x2d5   :  { %3809 = vmatprep.subr.bf16.mxu1 %v6429_v38  ;;  %3928 = vmatprep.subr.bf16.mxu0 %v6462_v33  ;;  %v6547_v38 = vld [vmem:[#allocation7 + $0x72c] ss:$24 sps:$4 sm:$0xff]   ;;  %v6512_v33 = vld [vmem:[#allocation7 + $0x780] ss:$24 sps:$4 sm:$0xff]  }
 0x2d8   :  { %3810 = vmatpush1.bf16.msra.mxu1 %v6427_v39  ;;  %3929 = vmatpush1.bf16.msra.mxu0 %v6460_v21  ;;  %v6545_v39 = vld [vmem:[#allocation7 + $0x728] ss:$24 sps:$4 sm:$0xff]   ;;  %v6520_v21 = vld [vmem:[#allocation7 + $0x7b4] ss:$24 sps:$4 sm:$0xff]  }
 0x2d9   :  { %3811 = vmatprep.subr.bf16.mxu1 %v6435_v35  ;;  %3930 = vmatprep.subr.bf16.mxu0 %v6469_v15  ;;  %v6553_v35 = vld [vmem:[#allocation7 + $0x75c] ss:$24 sps:$4 sm:$0xff]   ;;  %v6518_v15 = vld [vmem:[#allocation7 + $0x7b0] ss:$24 sps:$4 sm:$0xff]  }
 0x2dc   :  { %3812 = vmatpush1.bf16.msra.mxu1 %v6433_v6  ;;  %3931 = vmatpush1.bf16.msra.mxu0 %v6467_v40  ;;  %v6551_v6 = vld [vmem:[#allocation7 + $0x758] ss:$24 sps:$4 sm:$0xff]   ;;  %v6526_v40 = vld [vmem:[#allocation7 + $0x7e4] ss:$24 sps:$4 sm:$0xff]  }
 0x2dd   :  { %3813 = vmatprep.subr.bf16.mxu1 %v6441_v20  ;;  %3932 = vmatprep.subr.bf16.mxu0 %v6475_v5  ;;  %v6559_v20 = vld [vmem:[#allocation7 + $0x78c] ss:$24 sps:$4 sm:$0xff]   ;;  %v6524_v5 = vld [vmem:[#allocation7 + $0x7e0] ss:$24 sps:$4 sm:$0xff]  }
 0x2e0   :  { %3814 = vmatpush1.bf16.msra.mxu1 %v6439_v37  ;;  %3933 = vmatpush1.bf16.msra.mxu0 %v6473_v58  ;;  %v6557_v37 = vld [vmem:[#allocation7 + $0x788] ss:$24 sps:$4 sm:$0xff]   ;;  %v6532_v58 = vld [vmem:[#allocation7 + $0x814] ss:$24 sps:$4 sm:$0xff]  }
 0x2e1   :  { %3815 = vmatprep.subr.bf16.mxu1 %v6447_v56  ;;  %3934 = vmatprep.subr.bf16.mxu0 %v6481_v27  ;;  %v6565_v56 = vld [vmem:[#allocation7 + $0x7bc] ss:$24 sps:$4 sm:$0xff]   ;;  %v6530_v27 = vld [vmem:[#allocation7 + $0x810] ss:$24 sps:$4 sm:$0xff]  }
 0x2e4   :  { %3816 = vmatpush1.bf16.msra.mxu1 %v6445_v34  ;;  %3935 = vmatpush1.bf16.msra.mxu0 %v6479_v16  ;;  %v6563_v34 = vld [vmem:[#allocation7 + $0x7b8] ss:$24 sps:$4 sm:$0xff]   ;;  %v6538_v16 = vld [vmem:[#allocation7 + $0x844] ss:$24 sps:$4 sm:$0xff]  }
 0x2e5   :  { %3817 = vmatprep.subr.bf16.mxu1 %v6453_v18  ;;  %3936 = vmatprep.subr.bf16.mxu0 %v6487_v54  ;;  %v6571_v18 = vld [vmem:[#allocation7 + $0x7ec] ss:$24 sps:$4 sm:$0xff]   ;;  %v6536_v54 = vld [vmem:[#allocation7 + $0x840] ss:$24 sps:$4 sm:$0xff]  }
 0x2e8   :  { %3818 = vmatpush1.bf16.msra.mxu1 %v6451_v50  ;;  %3937 = vmatpush1.bf16.msra.mxu0 %v6485_v8  ;;  %v6569_v50 = vld [vmem:[#allocation7 + $0x7e8] ss:$24 sps:$4 sm:$0xff]   ;;  %v6544_v8 = vld [vmem:[#allocation7 + $0x874] ss:$24 sps:$4 sm:$0xff]  }
 0x2e9   :  { %3819 = vmatprep.subr.bf16.mxu1 %v6459_v17  ;;  %3938 = vmatprep.subr.bf16.mxu0 %v6493_v1  ;;  %v6577_v17 = vld [vmem:[#allocation7 + $0x81c] ss:$24 sps:$4 sm:$0xff]   ;;  %v6542_v1 = vld [vmem:[#allocation7 + $0x870] ss:$24 sps:$4 sm:$0xff]  }
 0x2ec   :  { %3820 = vmatpush1.bf16.msra.mxu1 %v6457_v19  ;;  %3939 = vmatpush1.bf16.msra.mxu0 %v6491_v45  ;;  %v6575_v19 = vld [vmem:[#allocation7 + $0x818] ss:$24 sps:$4 sm:$0xff]   ;;  %v6550_v45 = vld [vmem:[#allocation7 + $0x8a4] ss:$24 sps:$4 sm:$0xff]  }
 0x2ed   :  { %3830 = vmatprep.subr.bf16.mxu1 %v6466_v36  ;;  %3940 = vmatprep.subr.bf16.mxu0 %v6499_v11  ;;  %v6583_v36 = vld [vmem:[#allocation7 + $0x84c] ss:$24 sps:$4 sm:$0xff]   ;;  %v6548_v11 = vld [vmem:[#allocation7 + $0x8a0] ss:$24 sps:$4 sm:$0xff]  }
 0x2ef   :  { %3822 = vmatmul.mubr.bf16.vlgmr.msra.gmra.mrb[8].mxu1 %v8599_v31 }
 0x2f0   :  { %3831 = vmatpush1.bf16.msra.mxu1 %v6464_v22  ;;  %3941 = vmatpush1.bf16.msra.mxu0 %v6497_v10  ;;  %v6556_v22 = vld [vmem:[#allocation7 + $0x8d4] ss:$24 sps:$4 sm:$0xff]  }
 0x2f1   :  { %3832 = vmatprep.subr.bf16.mxu1 %v6472_v43  ;;  %3942 = vmatprep.subr.bf16.mxu0 %v6505_v26  ;;  %v6589_v10 = vld [vmem:[#allocation7 + $0x87c] ss:$24 sps:$4 sm:$0xff]   ;;  %v6554_v43 = vld [vmem:[#allocation7 + $0x8d0] ss:$24 sps:$4 sm:$0xff]  }
 0x2f2   :  { %3862 = vmatprep.mubr.bf16.mxu1 %v8601_v41  ;;  %v6587_v26 = vld [vmem:[#allocation7 + $0x878] ss:$24 sps:$4 sm:$0xff]  }
 0x2f4   :  { %3833 = vmatpush1.bf16.msra.mxu1 %v6470_v29  ;;  %3943 = vmatpush1.bf16.msra.mxu0 %v6503_v25  ;;  %v6562_v29 = vld [vmem:[#allocation7 + $0x14] ss:$24 sps:$4 sm:$0xff]  }
 0x2f5   :  { %3834 = vmatprep.subr.bf16.mxu1 %v6478_v2  ;;  %3953 = vmatprep.subr.bf16.mxu0 %v6511_v55  ;;  %v6595_v25 = vld [vmem:[#allocation7 + $0x8ac] ss:$24 sps:$4 sm:$0xff]   ;;  %v8609_v2 = vpack.c.bf16 %v8593_v63, %v8593_v63  ;;  %v6560_v55 = vld [vmem:[#allocation7 + $0x10] ss:$24 sps:$4 sm:$0xff]  }
 0x2f6   :  { %v6572_v63 = vld [vmem:[#allocation7 + $0x70] ss:$24 sps:$4 sm:$0xff]  }
 0x2f7   :  { %3945 = vmatmul.mubr.bf16.vlgmr.msra.gmra.mrb[12].mxu0 %v8599_v31 }
 0x2f8   :  { %3835 = vmatpush1.bf16.msra.mxu1 %v6476_v53  ;;  %3954 = vmatpush1.bf16.msra.mxu0 %v6509_v52  ;;  %v6593_v53 = vld [vmem:[#allocation7 + $0x8a8] ss:$24 sps:$4 sm:$0xff]   ;;  %v6568_v52 = vld [vmem:[#allocation7 + $0x44] ss:$24 sps:$4 sm:$0xff]  }
 0x2f9   :  { %3836 = vmatprep.subr.bf16.mxu1 %v6484_v49  ;;  %3955 = vmatprep.subr.bf16.mxu0 %v6517_v30  ;;  %v6601_v49 = vld [vmem:[#allocation7 + $0x8dc] ss:$24 sps:$4 sm:$0xff]   ;;  %v6566_v30 = vld [vmem:[#allocation7 + $0x40] ss:$24 sps:$4 sm:$0xff]  }
 0x2fa   :  { %3985 = vmatprep.mubr.bf16.mxu0 %v8601_v41 }
 0x2fc   :  { %3837 = vmatpush1.bf16.msra.mxu1 %v6482_v28  ;;  %3956 = vmatpush1.bf16.msra.mxu0 %v6515_v51  ;;  %v6599_v28 = vld [vmem:[#allocation7 + $0x8d8] ss:$24 sps:$4 sm:$0xff]   ;;  %v6574_v51 = vld [vmem:[#allocation7 + $0x74] ss:$24 sps:$4 sm:$0xff]  }
 0x2fd   :  { %3838 = vmatprep.subr.bf16.mxu1 %v6490_v61  ;;  %3957 = vmatprep.subr.bf16.mxu0 %v6523_v14  ;;  %v8613_v61 = vld [vmem:[#allocation5] sm:$0xff] }
 0x2fe   :  { %v6580_v14 = vld [vmem:[#allocation7 + $0xa4] ss:$24 sps:$4 sm:$0xff]  }
 0x300   :  { %3839 = vmatpush1.bf16.msra.mxu1 %v6488_v47  ;;  %3958 = vmatpush1.bf16.msra.mxu0 %v6521_v0  ;;  %v9283_v47 = vld [vmem:[#allocation20_spill] sm:$0xff] }
 0x301   :  { %3840 = vmatprep.subr.bf16.mxu1 %v6496_v3  ;;  %3959 = vmatprep.subr.bf16.mxu0 %v6529_v32  ;;  %v1460_v0 = vrot.slane %v8613_v61, %v9283_v47  ;;  %v9284_v3 = vld [vmem:[#allocation22_spill] sm:$0xff] }
 0x302   :  { %v1468_v32 = vrot.slane %v8613_v61, %v9284_v3 }
 0x304   :  { %3841 = vmatpush1.bf16.msra.mxu1 %v6494_v48  ;;  %3960 = vmatpush1.bf16.msra.mxu0 %v6527_v12  ;;  %v6578_v48 = vld [vmem:[#allocation7 + $0xa0] ss:$24 sps:$4 sm:$0xff]  }
 0x305   :  { %3842 = vmatprep.subr.bf16.mxu1 %v6502_v59  ;;  %3961 = vmatprep.subr.bf16.mxu0 %v6535_v57  ;;  %v9285_v12 = vld [vmem:[#allocation21_spill] sm:$0xff]  ;;  %v9286_v59 = vld [vmem:[#allocation23_spill] sm:$0xff] }
 0x306   :  { %v1472_v57 = vrot.slane %v8613_v61, %v9286_v59 }
 0x308   :  { %3843 = vmatpush1.bf16.msra.mxu1 %v6500_v44  ;;  %3962 = vmatpush1.bf16.msra.mxu0 %v6533_v60  ;;  %v6586_v44 = vld [vmem:[#allocation7 + $0xd4] ss:$24 sps:$4 sm:$0xff]  }
 0x309   :  { %3844 = vmatprep.subr.bf16.mxu1 %v6508_v9  ;;  %3963 = vmatprep.subr.bf16.mxu0 %v6541_v23 }
 0x30c   :  { %3845 = vmatpush1.bf16.msra.mxu1 %v6506_v62  ;;  %3964 = vmatpush1.bf16.msra.mxu0 %v6539_v46 }
 0x30d   :  { %3846 = vmatprep.subr.bf16.mxu1 %v6514_v13  ;;  %3965 = vmatprep.subr.bf16.mxu0 %v6547_v38 }
 0x310   :  { %3847 = vmatpush1.bf16.msra.mxu1 %v6512_v33  ;;  %3966 = vmatpush1.bf16.msra.mxu0 %v6545_v39 }
 0x311   :  { %3848 = vmatprep.subr.bf16.mxu1 %v6520_v21  ;;  %3967 = vmatprep.subr.bf16.mxu0 %v6553_v35  ;;  %v6584_v35 = vld [vmem:[#allocation7 + $0xd0] ss:$24 sps:$4 sm:$0xff]  }
 0x314   :  { %3849 = vmatpush1.bf16.msra.mxu1 %v6518_v15  ;;  %3968 = vmatpush1.bf16.msra.mxu0 %v6551_v6 }
 0x315   :  { %3850 = vmatprep.subr.bf16.mxu1 %v6526_v40  ;;  %3969 = vmatprep.subr.bf16.mxu0 %v6559_v20  ;;  %v6592_v40 = vld [vmem:[#allocation7 + $0x104] ss:$24 sps:$4 sm:$0xff]   ;;  %v9287_v20 = vld [vmem:[#allocation24_spill] sm:$0xff] }
 0x318   :  { %3851 = vmatpush1.bf16.msra.mxu1 %v6524_v5  ;;  %3970 = vmatpush1.bf16.msra.mxu0 %v6557_v37  ;;  %v1476_v5 = vrot.slane %v8613_v61, %v9287_v20  ;;  %v6590_v37 = vld [vmem:[#allocation7 + $0x100] ss:$24 sps:$4 sm:$0xff]  }
 0x319   :  { %3852 = vmatprep.subr.bf16.mxu1 %v6532_v58  ;;  %3971 = vmatprep.subr.bf16.mxu0 %v6565_v56  ;;  %v9288_v58 = vld [vmem:[#allocation25_spill] sm:$0xff] }
 0x31a   :  { %v1480_v56 = vrot.slane %v8613_v61, %v9288_v58 }
 0x31c   :  { %3853 = vmatpush1.bf16.msra.mxu1 %v6530_v27  ;;  %3972 = vmatpush1.bf16.msra.mxu0 %v6563_v34  ;;  %v6598_v27 = vld [vmem:[#allocation7 + $0x134] ss:$24 sps:$4 sm:$0xff]  }
 0x31d   :  { %3854 = vmatprep.subr.bf16.mxu1 %v6538_v16  ;;  %3973 = vmatprep.subr.bf16.mxu0 %v6571_v18 }
 0x320   :  { %3855 = vmatpush1.bf16.msra.mxu1 %v6536_v54  ;;  %3974 = vmatpush1.bf16.msra.mxu0 %v6569_v50 }
 0x321   :  { %3856 = vmatprep.subr.bf16.mxu1 %v6544_v8  ;;  %3975 = vmatprep.subr.bf16.mxu0 %v6577_v17 }
 0x324   :  { %3857 = vmatpush1.bf16.msra.mxu1 %v6542_v1  ;;  %3976 = vmatpush1.bf16.msra.mxu0 %v6575_v19  ;;  %v6596_v19 = vld [vmem:[#allocation7 + $0x130] ss:$24 sps:$4 sm:$0xff]  }
 0x325   :  { %3858 = vmatprep.subr.bf16.mxu1 %v6550_v45  ;;  %3977 = vmatprep.subr.bf16.mxu0 %v6583_v36 }
 0x328   :  { %3859 = vmatpush1.bf16.msra.mxu1 %v6548_v11  ;;  %3978 = vmatpush1.bf16.msra.mxu0 %v6581_v4  ;;  %v6604_v11 = vld [vmem:[#allocation7 + $0x164] ss:$24 sps:$4 sm:$0xff]   ;;  %v6602_v4 = vld [vmem:[#allocation7 + $0x160] ss:$24 sps:$4 sm:$0xff]  }
 0x329   :  { %3860 = vmatprep.subr.bf16.mxu1 %v6556_v22  ;;  %3979 = vmatprep.subr.bf16.mxu0 %v6589_v10  ;;  %v6607_v22 = vld [vmem:[#allocation7 + $0x194] ss:$24 sps:$4 sm:$0xff]  }
 0x32c   :  { %3861 = vmatpush1.bf16.msra.mxu1 %v6554_v43  ;;  %3980 = vmatpush1.bf16.msra.mxu0 %v6587_v26 }
 0x32d   :  { %3994 = vmatprep.subr.bf16.mxu1 %v6562_v29  ;;  %3981 = vmatprep.subr.bf16.mxu0 %v6595_v25  ;;  %v6605_v29 = vld [vmem:[#allocation7 + $0x190] ss:$24 sps:$4 sm:$0xff]  }
 0x32f   :  { %3863 = vmatmul.mubr.bf16.vlgmr.msra.gmra.mrb[8].mxu1 %v8609_v2 }
 0x330   :  { %3995 = vmatpush1.bf16.msra.mxu1 %v6560_v55  ;;  %3982 = vmatpush1.bf16.msra.mxu0 %v6593_v53  ;;  %v6610_v55 = vld [vmem:[#allocation7 + $0x1c4] ss:$24 sps:$4 sm:$0xff]   ;;  %v6608_v53 = vld [vmem:[#allocation7 + $0x1c0] ss:$24 sps:$4 sm:$0xff]  }
 0x331   :  { %3996 = vmatprep.subr.bf16.mxu1 %v6568_v52  ;;  %3983 = vmatprep.subr.bf16.mxu0 %v6601_v49  ;;  %v6613_v52 = vld [vmem:[#allocation7 + $0x1f4] ss:$24 sps:$4 sm:$0xff]   ;;  %v6611_v49 = vld [vmem:[#allocation7 + $0x1f0] ss:$24 sps:$4 sm:$0xff]  }
 0x332   :  { %4026 = vmatprep.mubr.bf16.mxu1 %v8565_v7  ;;  %v1464_v7 = vrot.slane %v8613_v61, %v9285_v12 }
 0x334   :  { %3997 = vmatpush1.bf16.msra.mxu1 %v6566_v30  ;;  %3984 = vmatpush1.bf16.msra.mxu0 %v6599_v28  ;;  %v6616_v30 = vld [vmem:[#allocation7 + $0x224] ss:$24 sps:$4 sm:$0xff]   ;;  %v6614_v28 = vld [vmem:[#allocation7 + $0x220] ss:$24 sps:$4 sm:$0xff]  }
 0x335   :  { %3998 = vmatprep.subr.bf16.mxu1 %v6574_v51  ;;  %v6619_v51 = vld [vmem:[#allocation7 + $0x254] ss:$24 sps:$4 sm:$0xff]  }
 0x337   :  { %3986 = vmatmul.mubr.bf16.vlgmr.msra.gmra.mrb[12].mxu0 %v8609_v2 }
 0x338   :  { %3999 = vmatpush1.bf16.msra.mxu1 %v6572_v63  ;;  %v6617_v63 = vld [vmem:[#allocation7 + $0x250] ss:$24 sps:$4 sm:$0xff]  }
 0x339   :  { %4000 = vmatprep.subr.bf16.mxu1 %v6580_v14  ;;  %v6622_v14 = vld [vmem:[#allocation7 + $0x284] ss:$24 sps:$4 sm:$0xff]  }
 0x33a   :  { %v1706_v60 = vpop.f32.mrb[0].mxu0  ;;  %v1747_v9 = vpop.f32.mrb[0].mxu1 }
 0x33b   :  { %v8624_v23 = vadd.f32 %v1706_v60, %v1460_v0  ;;  %v8626_v62 = vadd.f32 %v1747_v9, %v1468_v32  ;;  %v1708_v46 = vpop.f32.mrb[1].mxu0  ;;  %v1749_v13 = vpop.f32.mrb[1].mxu1  ;;  %v6620_v0 = vld [vmem:[#allocation7 + $0x280] ss:$24 sps:$4 sm:$0xff]   ;;  %v6625_v32 = vld [vmem:[#allocation7 + $0x2b4] ss:$24 sps:$4 sm:$0xff]  }
 0x33c   :  { %v8628_v38 = vadd.f32 %v1708_v46, %v1464_v7  ;;  %v8630_v33 = vadd.f32 %v1749_v13, %v1472_v57  ;;  %4001 = vmatpush1.bf16.msra.mxu1 %v6578_v48  ;;  %v1710_v39 = vpop.f32.mrb[2].mxu0  ;;  %v1751_v21 = vpop.f32.mrb[2].mxu1  ;;  %v6623_v48 = vld [vmem:[#allocation7 + $0x2b0] ss:$24 sps:$4 sm:$0xff]   ;;  %v6628_v7 = vld [vmem:[#allocation7 + $0x2e4] ss:$24 sps:$4 sm:$0xff]  }
 0x33d   :  { %v1711_v15 = vpop.f32.mrb[3].mxu0  ;;  %v1752_v6 = vpop.f32.mrb[3].mxu1  ;;  %4002 = vmatprep.subr.bf16.mxu1 %v6586_v44  ;;  %v6626_v57 = vld [vmem:[#allocation7 + $0x2e0] ss:$24 sps:$4 sm:$0xff]   ;;  %v6722_v44 = vld [vmem:[#allocation10 + $0x40] sm:$0xff]   ;;  %v6727_v13 = vld [vmem:[#allocation10 + $0x48] sm:$0xff]  }
 0x33e   :  { %v6723_v60 = vld [vmem:[#allocation10] sm:$0xff]   ;;  %6039 = vmatprep.subr.bf16.mxu0 %v6722_v44  ;;  %v6728_v39 = vld [vmem:[#allocation10 + $0x8] sm:$0xff]   ;;  %v6632_v15 = vld [vmem:[#allocation7 + $0x340] ss:$24 sps:$4 sm:$0xff]  }
 0x33f   :  { %v6631_v9 = vld [vmem:[#allocation7 + $0x314] ss:$24 sps:$4 sm:$0xff]   ;;  %6040 = vmatpush3.bf16.msra.mxu0 %v6723_v60  ;;  %v6629_v46 = vld [vmem:[#allocation7 + $0x310] ss:$24 sps:$4 sm:$0xff]   ;;  %v6634_v21 = vld [vmem:[#allocation7 + $0x344] ss:$24 sps:$4 sm:$0xff]  }
 0x340   :  { %4003 = vmatpush1.bf16.msra.mxu1 %v6584_v35  ;;  %6041 = vmatprep.subr.bf16.mxu0 %v6727_v13  ;;  %v6730_v35 = vld [vmem:[#allocation10 + $0x50] sm:$0xff]  }
 0x341   :  { %4004 = vmatprep.subr.bf16.mxu1 %v6592_v40  ;;  %v6732_v6 = vld [vmem:[#allocation10 + $0x10] sm:$0xff]  }
 0x342   :  { %v1788_v34 = vpop.f32.mrb[4].mxu0  ;;  %v8636_v16 = vpop.f32.mrb[4].mxu1  ;;  %v6637_v40 = vld [vmem:[#allocation7 + $0x374] ss:$24 sps:$4 sm:$0xff]   ;;  %v6668_v44 = vld [vmem:[#allocation7 + $0x580] ss:$24 sps:$4 sm:$0xff]  }
 0x343   :  { %v8638_v18 = vadd.f32 %v1788_v34, %v1476_v5  ;;  %v1790_v54 = vpop.f32.mrb[5].mxu0  ;;  %v8640_v50 = vpop.f32.mrb[5].mxu1  ;;  %6042 = vmatpush3.bf16.msra.mxu0 %v6728_v39  ;;  %v6734_v5 = vld [vmem:[#allocation10 + $0x58] sm:$0xff]   ;;  %v6738_v34 = vld [vmem:[#allocation10 + $0x60] sm:$0xff]  }
 0x344   :  { %v8642_v8 = vadd.f32 %v1790_v54, %v1480_v56  ;;  %4005 = vmatpush1.bf16.msra.mxu1 %v6590_v37  ;;  %v1792_v17 = vpop.f32.mrb[6].mxu0  ;;  %v1833_v1 = vpop.f32.mrb[6].mxu1  ;;  %6043 = vmatprep.subr.bf16.mxu0 %v6730_v35  ;;  %v6635_v37 = vld [vmem:[#allocation7 + $0x370] ss:$24 sps:$4 sm:$0xff]   ;;  %v6736_v56 = vld [vmem:[#allocation10 + $0x18] sm:$0xff]  }
 0x345   :  { %v1793_v45 = vpop.f32.mrb[7].mxu0  ;;  %v1834_v36 = vpop.f32.mrb[7].mxu1  ;;  %4006 = vmatprep.subr.bf16.mxu1 %v6598_v27  ;;  %v6640_v27 = vld [vmem:[#allocation7 + $0x3a4] ss:$24 sps:$4 sm:$0xff]   ;;  %v6742_v17 = vld [vmem:[#allocation10 + $0x68] sm:$0xff]  }
 0x346   :  { %v6740_v54 = vld [vmem:[#allocation10 + $0x20] sm:$0xff]   ;;  %v6746_v36 = vld [vmem:[#allocation10 + $0x70] sm:$0xff]  }
 0x347   :  { %6044 = vmatpush3.bf16.msra.mxu0 %v6732_v6  ;;  %v6641_v1 = vld [vmem:[#allocation7 + $0x3d0] ss:$24 sps:$4 sm:$0xff]   ;;  %v6646_v45 = vld [vmem:[#allocation7 + $0x404] ss:$24 sps:$4 sm:$0xff]   ;;  %v6673_v60 = vld [vmem:[#allocation7 + $0x5b4] ss:$24 sps:$4 sm:$0xff]  }
 0x348   :  { %4007 = vmatpush1.bf16.msra.mxu1 %v6596_v19  ;;  %6045 = vmatprep.subr.bf16.mxu0 %v6734_v5  ;;  %v6744_v19 = vld [vmem:[#allocation10 + $0x28] sm:$0xff]   ;;  %v6674_v13 = vld [vmem:[#allocation7 + $0x5e0] ss:$24 sps:$4 sm:$0xff]   ;;  %v6682_v35 = vld [vmem:[#allocation7 + $0x644] ss:$24 sps:$4 sm:$0xff]  }
 0x349   :  { %4008 = vmatprep.subr.bf16.mxu1 %v6604_v11  ;;  %v6644_v11 = vld [vmem:[#allocation7 + $0x400] ss:$24 sps:$4 sm:$0xff]   ;;  %v6679_v39 = vld [vmem:[#allocation7 + $0x614] ss:$24 sps:$4 sm:$0xff]   ;;  %v6688_v5 = vld [vmem:[#allocation7 + $0x6a4] ss:$24 sps:$4 sm:$0xff]  }
 0x34a   :  { %v8644_v10 = vpop.f32.mrb[8].mxu0  ;;  %v6685_v6 = vld [vmem:[#allocation7 + $0x674] ss:$24 sps:$4 sm:$0xff]  }
 0x34b   :  { %v8646_v43 = vpop.f32.mrb[9].mxu0  ;;  %6046 = vmatpush3.bf16.msra.mxu0 %v6736_v56  ;;  %v6691_v56 = vld [vmem:[#allocation7 + $0x6d4] ss:$24 sps:$4 sm:$0xff]  }
 0x34c   :  { %4009 = vmatpush1.bf16.msra.mxu1 %v6602_v4  ;;  %v1874_v26 = vpop.f32.mrb[10].mxu0  ;;  %6047 = vmatprep.subr.bf16.mxu0 %v6738_v34  ;;  %v6748_v4 = vld [vmem:[#allocation10 + $0x30] sm:$0xff]  }
 0x34d   :  { %v1875_v25 = vpop.f32.mrb[11].mxu0  ;;  %4010 = vmatprep.subr.bf16.mxu1 %v6607_v22  ;;  %v6649_v22 = vld [vmem:[#allocation7 + $0x434] ss:$24 sps:$4 sm:$0xff]   ;;  %v6647_v26 = vld [vmem:[#allocation7 + $0x430] ss:$24 sps:$4 sm:$0xff]  }
 0x34e   :  { %v6750_v25 = vld [vmem:[#allocation10 + $0x78] sm:$0xff]  }
 0x34f   :  { %6048 = vmatpush3.bf16.msra.mxu0 %v6740_v54  ;;  %v6694_v34 = vld [vmem:[#allocation7 + $0x704] ss:$24 sps:$4 sm:$0xff]   ;;  %v6692_v54 = vld [vmem:[#allocation7 + $0x700] ss:$24 sps:$4 sm:$0xff]  }
 0x350   :  { %4011 = vmatpush1.bf16.msra.mxu1 %v6605_v29  ;;  %6049 = vmatprep.subr.bf16.mxu0 %v6742_v17  ;;  %v6652_v29 = vld [vmem:[#allocation7 + $0x464] ss:$24 sps:$4 sm:$0xff]   ;;  %v6695_v17 = vld [vmem:[#allocation7 + $0x730] ss:$24 sps:$4 sm:$0xff]  }
 0x351   :  { %4012 = vmatprep.subr.bf16.mxu1 %v6610_v55  ;;  %v6752_v55 = vld [vmem:[#allocation10 + $0x38] sm:$0xff]  }
 0x353   :  { %6050 = vmatpush3.bf16.msra.mxu0 %v6744_v19 }
 0x354   :  { %4013 = vmatpush1.bf16.msra.mxu1 %v6608_v53  ;;  %6051 = vmatprep.subr.bf16.mxu0 %v6746_v36  ;;  %v6650_v53 = vld [vmem:[#allocation7 + $0x460] ss:$24 sps:$4 sm:$0xff]   ;;  %v6703_v36 = vld [vmem:[#allocation7 + $0x794] ss:$24 sps:$4 sm:$0xff]  }
 0x355   :  { %4014 = vmatprep.subr.bf16.mxu1 %v6613_v52  ;;  %v6754_v52 = vld [vmem:[#allocation10 + $0xc0] sm:$0xff]  }
 0x357   :  { %6052 = vmatpush3.bf16.msra.mxu0 %v6748_v4  ;;  %v6706_v4 = vld [vmem:[#allocation7 + $0x7c4] ss:$24 sps:$4 sm:$0xff]  }
 0x358   :  { %4015 = vmatpush1.bf16.msra.mxu1 %v6611_v49  ;;  %6053 = vmatprep.subr.bf16.mxu0 %v6750_v25  ;;  %v6655_v49 = vld [vmem:[#allocation7 + $0x494] ss:$24 sps:$4 sm:$0xff]  }
 0x359   :  { %4016 = vmatprep.subr.bf16.mxu1 %v6616_v30  ;;  %v6653_v30 = vld [vmem:[#allocation7 + $0x490] ss:$24 sps:$4 sm:$0xff]  }
 0x35b   :  { %6054 = vmatpush3.bf16.msra.mxu0 %v6752_v55  ;;  %v6710_v55 = vld [vmem:[#allocation7 + $0x820] ss:$24 sps:$4 sm:$0xff]  }
 0x35c   :  { %4017 = vmatpush1.bf16.msra.mxu1 %v6614_v28  ;;  %6061 = vmatprep.subr.bf16.mxu0 %v6754_v52  ;;  %v6658_v28 = vld [vmem:[#allocation7 + $0x4c4] ss:$24 sps:$4 sm:$0xff]   ;;  %v6715_v52 = vld [vmem:[#allocation7 + $0x854] ss:$24 sps:$4 sm:$0xff]  }
 0x35d   :  { %4018 = vmatprep.subr.bf16.mxu1 %v6619_v51  ;;  %v6656_v51 = vld [vmem:[#allocation7 + $0x4c0] ss:$24 sps:$4 sm:$0xff]  }
 0x360   :  { %4019 = vmatpush1.bf16.msra.mxu1 %v6617_v63  ;;  %v6661_v63 = vld [vmem:[#allocation7 + $0x4f4] ss:$24 sps:$4 sm:$0xff]  }
 0x361   :  { %4020 = vmatprep.subr.bf16.mxu1 %v6622_v14  ;;  %v6659_v14 = vld [vmem:[#allocation7 + $0x4f0] ss:$24 sps:$4 sm:$0xff]  }
 0x364   :  { %4021 = vmatpush1.bf16.msra.mxu1 %v6620_v0  ;;  %v6664_v0 = vld [vmem:[#allocation7 + $0x524] ss:$24 sps:$4 sm:$0xff]  }
 0x365   :  { %4022 = vmatprep.subr.bf16.mxu1 %v6625_v32  ;;  %v6662_v32 = vld [vmem:[#allocation7 + $0x520] ss:$24 sps:$4 sm:$0xff]  }
 0x368   :  { %4023 = vmatpush1.bf16.msra.mxu1 %v6623_v48  ;;  %v6667_v48 = vld [vmem:[#allocation7 + $0x554] ss:$24 sps:$4 sm:$0xff]  }
 0x369   :  { %4024 = vmatprep.subr.bf16.mxu1 %v6628_v7  ;;  %v6665_v7 = vld [vmem:[#allocation7 + $0x550] ss:$24 sps:$4 sm:$0xff]  }
 0x36c   :  { %4025 = vmatpush1.bf16.msra.mxu1 %v6626_v57  ;;  %v6670_v57 = vld [vmem:[#allocation7 + $0x584] ss:$24 sps:$4 sm:$0xff]  }
 0x36d   :  { %4035 = vmatprep.subr.bf16.mxu1 %v6631_v9  ;;  %v6671_v9 = vld [vmem:[#allocation7 + $0x5b0] ss:$24 sps:$4 sm:$0xff]  }
 0x36f   :  { %4027 = vmatmul.mubr.bf16.vlgmr.msra.gmra.mrb[12].mxu1 %v8582_v42  ;;  %v6638_v42 = vld [vmem:[#allocation7 + $0x3a0] ss:$24 sps:$4 sm:$0xff]  }
 0x370   :  { %4036 = vmatpush1.bf16.msra.mxu1 %v6629_v46  ;;  %4067 = vmatprep.mubr.bf16.mxu1 %v8584_v24  ;;  %v6643_v24 = vld [vmem:[#allocation7 + $0x3d4] ss:$24 sps:$4 sm:$0xff]   ;;  %v6676_v46 = vld [vmem:[#allocation7 + $0x5e4] ss:$24 sps:$4 sm:$0xff]  }
 0x371   :  { %4037 = vmatprep.subr.bf16.mxu1 %v6634_v21  ;;  %v6677_v21 = vld [vmem:[#allocation7 + $0x610] ss:$24 sps:$4 sm:$0xff]  }
 0x374   :  { %4038 = vmatpush1.bf16.msra.mxu1 %v6632_v15  ;;  %v6680_v15 = vld [vmem:[#allocation7 + $0x640] ss:$24 sps:$4 sm:$0xff]  }
 0x375   :  { %4039 = vmatprep.subr.bf16.mxu1 %v6637_v40  ;;  %v6683_v40 = vld [vmem:[#allocation7 + $0x670] ss:$24 sps:$4 sm:$0xff]  }
 0x378   :  { %4040 = vmatpush1.bf16.msra.mxu1 %v6635_v37  ;;  %v6686_v37 = vld [vmem:[#allocation7 + $0x6a0] ss:$24 sps:$4 sm:$0xff]  }
 0x379   :  { %4041 = vmatprep.subr.bf16.mxu1 %v6640_v27  ;;  %v6689_v27 = vld [vmem:[#allocation7 + $0x6d0] ss:$24 sps:$4 sm:$0xff]  }
 0x37c   :  { %4042 = vmatpush1.bf16.msra.mxu1 %v6638_v42  ;;  %v9289_v42 = vld [vmem:[#allocation27_spill] sm:$0xff] }
 0x37d   :  { %4043 = vmatprep.subr.bf16.mxu1 %v6643_v24 }
 0x380   :  { %4044 = vmatpush1.bf16.msra.mxu1 %v6641_v1  ;;  %v6700_v1 = vld [vmem:[#allocation7 + $0x764] ss:$24 sps:$4 sm:$0xff]  }
 0x381   :  { %4045 = vmatprep.subr.bf16.mxu1 %v6646_v45  ;;  %v6698_v45 = vld [vmem:[#allocation7 + $0x760] ss:$24 sps:$4 sm:$0xff]  }
 0x384   :  { %4046 = vmatpush1.bf16.msra.mxu1 %v6644_v11  ;;  %v6701_v11 = vld [vmem:[#allocation7 + $0x790] ss:$24 sps:$4 sm:$0xff]  }
 0x385   :  { %4047 = vmatprep.subr.bf16.mxu1 %v6649_v22  ;;  %v6704_v22 = vld [vmem:[#allocation7 + $0x7c0] ss:$24 sps:$4 sm:$0xff]  }
 0x388   :  { %4048 = vmatpush1.bf16.msra.mxu1 %v6647_v26  ;;  %v6709_v26 = vld [vmem:[#allocation7 + $0x7f4] ss:$24 sps:$4 sm:$0xff]  }
 0x389   :  { %4049 = vmatprep.subr.bf16.mxu1 %v6652_v29  ;;  %v6712_v29 = vld [vmem:[#allocation7 + $0x824] ss:$24 sps:$4 sm:$0xff]  }
 0x38c   :  { %4050 = vmatpush1.bf16.msra.mxu1 %v6650_v53 }
 0x38d   :  { %4051 = vmatprep.subr.bf16.mxu1 %v6655_v49  ;;  %v6713_v49 = vld [vmem:[#allocation7 + $0x850] ss:$24 sps:$4 sm:$0xff]  }
 0x390   :  { %4052 = vmatpush1.bf16.msra.mxu1 %v6653_v30  ;;  %v6718_v30 = vld [vmem:[#allocation7 + $0x884] ss:$24 sps:$4 sm:$0xff]  }
 0x391   :  { %4053 = vmatprep.subr.bf16.mxu1 %v6658_v28  ;;  %v9290_v28 = vld [vmem:[#allocation26_spill] sm:$0xff] }
 0x394   :  { %4054 = vmatpush1.bf16.msra.mxu1 %v6656_v51  ;;  %v1484_v51 = vrot.slane %v8613_v61, %v9290_v28 }
 0x395   :  { %4055 = vmatprep.subr.bf16.mxu1 %v6661_v63  ;;  %v6716_v63 = vld [vmem:[#allocation7 + $0x880] ss:$24 sps:$4 sm:$0xff]  }
 0x398   :  { %4056 = vmatpush1.bf16.msra.mxu1 %v6659_v14  ;;  %v6721_v14 = vld [vmem:[#allocation7 + $0x8b4] ss:$24 sps:$4 sm:$0xff]  }
 0x399   :  { %4057 = vmatprep.subr.bf16.mxu1 %v6664_v0  ;;  %v8658_v0 = vadd.f32 %v8636_v16, %v1484_v51  ;;  %v6731_v16 = vld [vmem:[%s8970_s8 + $0x180] sm:$0xff]  }
 0x39c   :  { %4058 = vmatpush1.bf16.msra.mxu1 %v6662_v32  ;;  %v6719_v32 = vld [vmem:[#allocation7 + $0x8b0] ss:$24 sps:$4 sm:$0xff]  }
 0x39d   :  { %4059 = vmatprep.subr.bf16.mxu1 %v6667_v48  ;;  %v6726_v48 = vld [vmem:[#allocation7 + $0x8e4] ss:$24 sps:$4 sm:$0xff]  }
 0x3a0   :  { %4060 = vmatpush1.bf16.msra.mxu1 %v6665_v7 }
 0x3a1   :  { %4061 = vmatprep.subr.bf16.mxu1 %v6670_v57  ;;  %v5617_v57 = vmul.f32 -1.442695, %v8658_v0 }
 0x3a4   :  { %4062 = vmatpush1.bf16.msra.mxu1 %v6668_v44  ;;  %v6724_v44 = vld [vmem:[#allocation7 + $0x8e0] ss:$24 sps:$4 sm:$0xff]  }
 0x3a5   :  { %4063 = vmatprep.subr.bf16.mxu1 %v6673_v60 }
 0x3a8   :  { %4064 = vmatpush1.bf16.msra.mxu1 %v6671_v9  ;;  %v6733_v9 = vld [vmem:[%s8970_s8 + $0x1c8] sm:$0xff]  }
 0x3a9   :  { %4065 = vmatprep.subr.bf16.mxu1 %v6676_v46 }
 0x3ac   :  { %4066 = vmatpush1.bf16.msra.mxu1 %v6674_v13  ;;  %v6735_v13 = vld [vmem:[%s8970_s8 + $0x188] sm:$0xff]  }
 0x3ad   :  { %4076 = vmatprep.subr.bf16.mxu1 %v6679_v39  ;;  %v6737_v39 = vld [vmem:[%s8970_s8 + $0x1d0] sm:$0xff]  }
 0x3af   :  { %4068 = vmatmul.mubr.bf16.vlgmr.msra.gmra.mrb[12].mxu1 %v8599_v31  ;;  %v1488_v31 = vrot.slane %v8613_v61, %v9289_v42  ;;  %v6729_v61 = vld [vmem:[%s8970_s8 + $0x1c0] sm:$0xff]   ;;  %v6751_v42 = vld [vmem:[%s8970_s8 + $0x1a8] sm:$0xff]  }
 0x3b0   :  { %4077 = vmatpush1.bf16.msra.mxu1 %v6677_v21  ;;  %4108 = vmatprep.mubr.bf16.mxu1 %v8601_v41  ;;  %v6697_v41 = vld [vmem:[#allocation7 + $0x734] ss:$24 sps:$4 sm:$0xff]  }
 0x3b1   :  { %4078 = vmatprep.subr.bf16.mxu1 %v6682_v35  ;;  %v1832_v24 = vadd.f32 %v8640_v50, %v1488_v31  ;;  %v6707_v50 = vld [vmem:[#allocation7 + $0x7f0] ss:$24 sps:$4 sm:$0xff]  }
 0x3b2   :  { %v6739_v21 = vld [vmem:[%s8970_s8 + $0x190] sm:$0xff]  }
 0x3b3   :  { %v5618_v19 = vmul.f32 -1.442695, %v1832_v24  ;;  %v6753_v31 = vld [vmem:[%s8970_s8 + $0x1f0] sm:$0xff]  }
 0x3b4   :  { %4079 = vmatpush1.bf16.msra.mxu1 %v6680_v15 }
 0x3b5   :  { %4080 = vmatprep.subr.bf16.mxu1 %v6685_v6  ;;  %7109 = vpow2.f32 %v5618_v19  ;;  %v6743_v6 = vld [vmem:[%s8970_s8 + $0x198] sm:$0xff]   ;;  %v6755_v19 = vld [vmem:[%s8970_s8 + $0x1b0] sm:$0xff]  }
 0x3b8   :  { %4081 = vmatpush1.bf16.msra.mxu1 %v6683_v40  ;;  %v6745_v40 = vld [vmem:[%s8970_s8 + $0x1e0] sm:$0xff]  }
 0x3b9   :  { %4082 = vmatprep.subr.bf16.mxu1 %v6688_v5  ;;  %v6747_v5 = vld [vmem:[%s8970_s8 + $0x1a0] sm:$0xff]  }
 0x3bc   :  { %4083 = vmatpush1.bf16.msra.mxu1 %v6686_v37  ;;  %v8692_v37 = vld [vmem:[#allocation8] sm:$0x3f] }
 0x3bd   :  { %4084 = vmatprep.subr.bf16.mxu1 %v6691_v56  ;;  %v6749_v56 = vld [vmem:[%s8970_s8 + $0x1e8] sm:$0xff]  }
 0x3bf   :  { %v7110_v25 = vpop.eup %7109 }
 0x3c0   :  { %4085 = vmatpush1.bf16.msra.mxu1 %v6689_v27  ;;  %v1914_v53 = vadd.f32 1.0, %v7110_v25  ;;  %v2281_v27 = vrot.slane %v8692_v37, %v9283_v47  ;;  %v2293_v25 = vrot.slane %v8692_v37, %v9286_v59  ;;  %v6763_v59 = vld [vmem:[#allocation10 + $0xd8] sm:$0xff]  }
 0x3c1   :  { %4086 = vmatprep.subr.bf16.mxu1 %v6694_v34  ;;  %v2285_v34 = vrot.slane %v8692_v37, %v9285_v12 }
 0x3c2   :  { %7111 = vrcp.f32 %v1914_v53  ;;  %v6760_v53 = vld [vmem:[#allocation10 + $0x88] sm:$0xff]  }
 0x3c3   :  { %7113 = vpow2.f32 %v5617_v57  ;;  %v6766_v57 = vld [vmem:[#allocation10 + $0xa0] sm:$0xff]  }
 0x3c4   :  { %4087 = vmatpush1.bf16.msra.mxu1 %v6692_v54 }
 0x3c5   :  { %4088 = vmatprep.subr.bf16.mxu1 %v6697_v41 }
 0x3c8   :  { %4089 = vmatpush1.bf16.msra.mxu1 %v6695_v17 }
 0x3c9   :  { %4090 = vmatprep.subr.bf16.mxu1 %v6700_v1 }
 0x3cc   :  { %4091 = vmatpush1.bf16.msra.mxu1 %v6698_v45  ;;  %v7112_v7 = vpop.eup %7111 }
 0x3cd   :  { %4092 = vmatprep.subr.bf16.mxu1 %v6703_v36  ;;  %v1944_v60 = vmul.f32 %v7112_v7, %v1832_v24  ;;  %v7114_v35 = vpop.eup %7113  ;;  %v6757_v36 = vld [vmem:[%s8970_s8 + $0x1f8] sm:$0xff]   ;;  %v6765_v7 = vld [vmem:[#allocation10 + $0xe0] sm:$0xff]  }
 0x3ce   :  { %v1913_v15 = vadd.f32 1.0, %v7114_v35 }
 0x3cf   :  { %v4124_v46 = vpack.c.bf16 %v1944_v60, %v1944_v60  ;;  %v6769_v60 = vld [vmem:[#allocation10 + $0xf0] sm:$0xff]  }
 0x3d0   :  { %4093 = vmatpush1.bf16.msra.mxu1 %v6701_v11  ;;  %7115 = vrcp.f32 %v1913_v15  ;;  %v6775_v15 = vld [vmem:[#allocation10 + $0x148] sm:$0xff]  }
 0x3d1   :  { %4094 = vmatprep.subr.bf16.mxu1 %v6706_v4 }
 0x3d4   :  { %4095 = vmatpush1.bf16.msra.mxu1 %v6704_v22  ;;  %v6756_v22 = vld [vmem:[#allocation10 + $0x80] sm:$0xff]  }
 0x3d5   :  { %4096 = vmatprep.subr.bf16.mxu1 %v6709_v26 }
 0x3d8   :  { %4097 = vmatpush1.bf16.msra.mxu1 %v6707_v50  ;;  %v6758_v50 = vld [vmem:[#allocation10 + $0xc8] sm:$0xff]  }
 0x3d9   :  { %4098 = vmatprep.subr.bf16.mxu1 %v6712_v29  ;;  %v6759_v29 = vld [vmem:[%s8970_s8 + $0x1b8] sm:$0xff]  }
 0x3da   :  { %v7116_v11 = vpop.eup %7115 }
 0x3dc   :  { %4099 = vmatpush1.bf16.msra.mxu1 %v6710_v55  ;;  %v1943_v55 = vmul.f32 %v7116_v11, %v8658_v0  ;;  %v6764_v0 = vld [vmem:[#allocation10 + $0x98] sm:$0xff]   ;;  %v2297_v11 = vrot.slane %v8692_v37, %v9287_v20  ;;  %v6790_v20 = vld [vmem:[%s8970_s8] sm:$0xff]  }
 0x3dd   :  { %4100 = vmatprep.subr.bf16.mxu1 %v6715_v52 }
 0x3e0   :  { %4101 = vmatpush1.bf16.msra.mxu1 %v6713_v49  ;;  %v6761_v49 = vld [vmem:[#allocation10 + $0xd0] sm:$0xff]  }
 0x3e1   :  { %4102 = vmatprep.subr.bf16.mxu1 %v6718_v30 }
 0x3e4   :  { %4103 = vmatpush1.bf16.msra.mxu1 %v6716_v63  ;;  %v4123_v63 = vpack.c.bf16 %v1943_v55, %v1943_v55 }
 0x3e5   :  { %4104 = vmatprep.subr.bf16.mxu1 %v6721_v14 }
 0x3e8   :  { %4105 = vmatpush1.bf16.msra.mxu1 %v6719_v32  ;;  %v6762_v32 = vld [vmem:[#allocation10 + $0x90] sm:$0xff]  }
 0x3e9   :  { %4106 = vmatprep.subr.bf16.mxu1 %v6726_v48 }
 0x3ec   :  { %4107 = vmatpush1.bf16.msra.mxu1 %v6724_v44  ;;  %v6767_v44 = vld [vmem:[#allocation10 + $0xe8] sm:$0xff]  }
 0x3ed   :  { %6171 = vmatprep.subr.bf16.mxu1 %v6729_v61  ;;  %v6768_v61 = vld [vmem:[#allocation10 + $0xa8] sm:$0xff]  }
 0x3ef   :  { %4109 = vmatmul.mubr.bf16.vlgmr.msra.gmra.mrb[12].mxu1 %v8609_v2  ;;  %v6741_v2 = vld [vmem:[%s8970_s8 + $0x1d8] sm:$0xff]  }
 0x3f0   :  { %6172 = vmatpush3.bf16.msra.mxu1 %v6731_v16  ;;  %5429 = vmatprep.mubr.bf16.mxu1 %v4124_v46  ;;  %v2289_v16 = vrot.slane %v8692_v37, %v9284_v3  ;;  %v6771_v46 = vld [vmem:[#allocation10 + $0xf8] sm:$0xff]   ;;  %v6778_v3 = vld [vmem:[#allocation10 + $0x110] sm:$0xff]  }
 0x3f1   :  { %6173 = vmatprep.subr.bf16.mxu1 %v6733_v9  ;;  %v6770_v9 = vld [vmem:[#allocation10 + $0xb0] sm:$0xff]  }
 0x3f4   :  { %6174 = vmatpush3.bf16.msra.mxu1 %v6735_v13 }
 0x3f5   :  { %6175 = vmatprep.subr.bf16.mxu1 %v6737_v39  ;;  %v6772_v39 = vld [vmem:[#allocation10 + $0xb8] sm:$0xff]  }
 0x3f8   :  { %6176 = vmatpush3.bf16.msra.mxu1 %v6739_v21  ;;  %v6773_v21 = vld [vmem:[#allocation10 + $0x140] sm:$0xff]  }
 0x3f9   :  { %6177 = vmatprep.subr.bf16.mxu1 %v6741_v2  ;;  %v6774_v2 = vld [vmem:[#allocation10 + $0x100] sm:$0xff]  }
 0x3fc   :  { %6178 = vmatpush3.bf16.msra.mxu1 %v6743_v6  ;;  %v6776_v6 = vld [vmem:[#allocation10 + $0x108] sm:$0xff]  }
 0x3fd   :  { %6179 = vmatprep.subr.bf16.mxu1 %v6745_v40  ;;  %v6777_v40 = vld [vmem:[#allocation10 + $0x150] sm:$0xff]  }
 0x400   :  { %6180 = vmatpush3.bf16.msra.mxu1 %v6747_v5  ;;  %v6779_v5 = vld [vmem:[#allocation10 + $0x158] sm:$0xff]  }
 0x401   :  { %6181 = vmatprep.subr.bf16.mxu1 %v6749_v56  ;;  %v6780_v56 = vld [vmem:[#allocation10 + $0x118] sm:$0xff]  }
 0x402   :  { %v3864_v54 = vpop.f32.mrb[8].mxu1 }
 0x403   :  { %v6215_v41 = vadd.f32 %v3864_v54, %v2281_v27  ;;  %v3866_v24 = vpop.f32.mrb[9].mxu1  ;;  %v6781_v27 = vld [vmem:[#allocation10 + $0x160] sm:$0xff]   ;;  %v6785_v54 = vld [vmem:[#allocation10 + $0x170] sm:$0xff]  }
 0x404   :  { %v6216_v17 = vadd.f32 %v3866_v24, %v2285_v34  ;;  %v3868_v1 = vpop.f32.mrb[10].mxu1  ;;  %6182 = vmatpush3.bf16.msra.mxu1 %v6751_v42  ;;  %v6782_v34 = vld [vmem:[#allocation10 + $0x120] sm:$0xff]   ;;  %v6783_v42 = vld [vmem:[#allocation10 + $0x168] sm:$0xff]   ;;  %v6787_v24 = vld [vmem:[#allocation10 + $0x178] sm:$0xff]  }
 0x405   :  { %v3869_v45 = vpop.f32.mrb[11].mxu1  ;;  %6183 = vmatprep.subr.bf16.mxu1 %v6753_v31  ;;  %v4287_v26 = vpack.c.bf16 %v6215_v41, %v6215_v41  ;;  %v6784_v31 = vld [vmem:[#allocation10 + $0x128] sm:$0xff]   ;;  %v6786_v41 = vld [vmem:[#allocation10 + $0x130] sm:$0xff]  }
 0x406   :  { %v4288_v4 = vpack.c.bf16 %v6216_v17, %v6216_v17  ;;  %v6788_v17 = vld [vmem:[#allocation10 + $0x138] sm:$0xff]   ;;  %v6789_v1 = vld [vmem:[%s8970_s8 + $0x40] sm:$0xff]  }
 0x408   :  { %4709 = vmatprep.mubr.bf16.mxu0 %v4288_v4  ;;  %6184 = vmatpush3.bf16.msra.mxu1 %v6755_v19  ;;  %v5612_v19 = vmul.f32 -1.442695, %v8628_v38  ;;  %v2301_v4 = vrot.slane %v8692_v37, %v9288_v58  ;;  %v6791_v37 = vld [vmem:[%s8970_s8 + $0x48] sm:$0xff]  }
 0x409   :  { %4710 = vmatmul.mubr.bf16.vlgmr.msra.gmra.mrb[16].mxu0 %v4287_v26  ;;  %6185 = vmatprep.subr.bf16.mxu1 %v6757_v36  ;;  %v5611_v26 = vmul.f32 -1.442695, %v8624_v23 }
 0x40a   :  { %6062 = vmatpush3.bf16.msra.mxu0 %v6756_v22  ;;  %v3987_v52 = vpop.f32.mrb[12].mxu0  ;;  %7117 = vpow2.f32 %v5612_v19  ;;  %v6807_v19 = vld [vmem:[%s8970_s8 + $0xc8] sm:$0xff]  }
 0x40b   :  { %6063 = vmatprep.subr.bf16.mxu0 %v6758_v50  ;;  %v3989_v30 = vpop.f32.mrb[13].mxu0  ;;  %v6217_v13 = vadd.f32 %v3987_v52, %v2289_v16  ;;  %v5614_v50 = vmul.f32 -1.442695, %v8630_v33  ;;  %v6800_v16 = vld [vmem:[%s8970_s8 + $0x28] sm:$0xff]  }
 0x40c   :  { %6186 = vmatpush3.bf16.msra.mxu1 %v6759_v29  ;;  %v6218_v28 = vadd.f32 %v3989_v30, %v2293_v25  ;;  %v3991_v51 = vpop.f32.mrb[14].mxu0 }
 0x40d   :  { %v3992_v14 = vpop.f32.mrb[15].mxu0  ;;  %v4289_v35 = vpack.c.bf16 %v6217_v13, %v6217_v13 }
 0x40e   :  { %6064 = vmatpush3.bf16.msra.mxu0 %v6760_v53  ;;  %v4290_v48 = vpack.c.bf16 %v6218_v28, %v6218_v28  ;;  %v6794_v14 = vld [vmem:[%s8970_s8 + $0x10] sm:$0xff]  }
 0x40f   :  { %5430 = vmatmul.mubr.bf16.vlgmr.msra.gmra.mrb[16].mxu1 %v4123_v63  ;;  %6065 = vmatprep.subr.bf16.mxu0 %v6761_v49  ;;  %v6793_v63 = vld [vmem:[%s8970_s8 + $0x50] sm:$0xff]  }
 0x410   :  { %4749 = vmatprep.mubr.bf16.mxu0 %v4290_v48  ;;  %v6795_v48 = vld [vmem:[%s8970_s8 + $0x58] sm:$0xff]  }
 0x412   :  { %6066 = vmatpush3.bf16.msra.mxu0 %v6762_v32 }
 0x413   :  { %6067 = vmatprep.subr.bf16.mxu0 %v6763_v59 }
 0x414   :  { %v7118_v45 = vpop.eup %7117 }
 0x415   :  { %v1908_v36 = vadd.f32 1.0, %v7118_v45 }
 0x416   :  { %6068 = vmatpush3.bf16.msra.mxu0 %v6764_v0 }
 0x417   :  { %6069 = vmatprep.subr.bf16.mxu0 %v6765_v7  ;;  %7119 = vrcp.f32 %v1908_v36  ;;  %v6796_v7 = vld [vmem:[%s8970_s8 + $0x18] sm:$0xff]   ;;  %v6809_v36 = vld [vmem:[%s8970_s8 + $0xd0] sm:$0xff]  }
 0x418   :  { %7121 = vpow2.f32 %v5611_v26 }
 0x419   :  { %7123 = vpow2.f32 %v5614_v50 }
 0x41a   :  { %6070 = vmatpush3.bf16.msra.mxu0 %v6766_v57 }
 0x41b   :  { %6071 = vmatprep.subr.bf16.mxu0 %v6767_v44  ;;  %v6797_v44 = vld [vmem:[%s8970_s8 + $0x60] sm:$0xff]  }
 0x41e   :  { %6072 = vmatpush3.bf16.msra.mxu0 %v6768_v61  ;;  %v6798_v61 = vld [vmem:[%s8970_s8 + $0x20] sm:$0xff]  }
 0x41f   :  { %6073 = vmatprep.subr.bf16.mxu0 %v6769_v60  ;;  %v6799_v60 = vld [vmem:[%s8970_s8 + $0x68] sm:$0xff]  }
 0x421   :  { %v7120_v22 = vpop.eup %7119 }
 0x422   :  { %6074 = vmatpush3.bf16.msra.mxu0 %v6770_v9  ;;  %v1938_v53 = vmul.f32 %v7120_v22, %v8628_v38  ;;  %v6792_v38 = vld [vmem:[%s8970_s8 + $0x8] sm:$0xff]   ;;  %v7122_v32 = vpop.eup %7121  ;;  %v6801_v9 = vld [vmem:[%s8970_s8 + $0x70] sm:$0xff]   ;;  %v6811_v22 = vld [vmem:[%s8970_s8 + $0xd8] sm:$0xff]  }
 0x423   :  { %6075 = vmatprep.subr.bf16.mxu0 %v6771_v46  ;;  %v7124_v59 = vpop.eup %7123  ;;  %v1907_v0 = vadd.f32 1.0, %v7122_v32  ;;  %v6819_v32 = vld [vmem:[%s8970_s8 + $0xf8] sm:$0xff]  }
 0x424   :  { %v4118_v51 = vpack.c.bf16 %v1938_v53, %v1938_v53  ;;  %v1910_v57 = vadd.f32 1.0, %v7124_v59  ;;  %v6814_v53 = vld [vmem:[%s8970_s8 + $0xa0] sm:$0xff]  }
 0x425   :  { %7125 = vrcp.f32 %v1907_v0 }
 0x426   :  { %6076 = vmatpush3.bf16.msra.mxu0 %v6772_v39  ;;  %7127 = vrcp.f32 %v1910_v57  ;;  %v6820_v57 = vld [vmem:[%s8970_s8 + $0xb8] sm:$0xff]  }
 0x427   :  { %6083 = vmatprep.subr.bf16.mxu0 %v6773_v21 }
 0x429   :  { %4750 = vmatmul.mubr.bf16.vlgmr.msra.gmra.mrb[20].mxu0 %v4289_v35  ;;  %v6802_v35 = vld [vmem:[%s8970_s8 + $0x30] sm:$0xff]  }
 0x42a   :  { %6084 = vmatpush3.bf16.msra.mxu0 %v6774_v2 }
 0x42b   :  { %6085 = vmatprep.subr.bf16.mxu0 %v6775_v15  ;;  %v6803_v15 = vld [vmem:[%s8970_s8 + $0x78] sm:$0xff]  }
 0x42e   :  { %6086 = vmatpush3.bf16.msra.mxu0 %v6776_v6 }
 0x42f   :  { %6087 = vmatprep.subr.bf16.mxu0 %v6777_v40  ;;  %v7126_v6 = vpop.eup %7125 }
 0x430   :  { %v7128_v40 = vpop.eup %7127 }
 0x432   :  { %6088 = vmatpush3.bf16.msra.mxu0 %v6778_v3  ;;  %v5613_v3 = vmul.f32 -1.442695, %v8626_v62 }
 0x433   :  { %6089 = vmatprep.subr.bf16.mxu0 %v6779_v5  ;;  %v5616_v5 = vmul.f32 -1.442695, %v8642_v8 }
 0x434   :  { %7129 = vpow2.f32 %v5613_v3  ;;  %v6829_v3 = vld [vmem:[%s8970_s8 + $0x160] sm:$0xff]  }
 0x435   :  { %7131 = vpow2.f32 %v5616_v5  ;;  %v6830_v5 = vld [vmem:[%s8970_s8 + $0x120] sm:$0xff]  }
 0x436   :  { %6090 = vmatpush3.bf16.msra.mxu0 %v6780_v56 }
 0x437   :  { %6091 = vmatprep.subr.bf16.mxu0 %v6781_v27  ;;  %v6804_v27 = vld [vmem:[%s8970_s8 + $0x38] sm:$0xff]  }
 0x43a   :  { %6092 = vmatpush3.bf16.msra.mxu0 %v6782_v34  ;;  %v1937_v34 = vmul.f32 %v7126_v6, %v8624_v23  ;;  %v6828_v6 = vld [vmem:[%s8970_s8 + $0x118] sm:$0xff]  }
 0x43b   :  { %6093 = vmatprep.subr.bf16.mxu0 %v6783_v42 }
 0x43c   :  { %v4117_v23 = vpack.c.bf16 %v1937_v34, %v1937_v34  ;;  %v6832_v34 = vld [vmem:[%s8970_s8 + $0x128] sm:$0xff]  }
 0x43e   :  { %6094 = vmatpush3.bf16.msra.mxu0 %v6784_v31  ;;  %v6805_v31 = vld [vmem:[%s8970_s8 + $0xc0] sm:$0xff]  }
 0x43f   :  { %6095 = vmatprep.subr.bf16.mxu0 %v6785_v54  ;;  %v1940_v54 = vmul.f32 %v7128_v40, %v8630_v33  ;;  %v6808_v33 = vld [vmem:[%s8970_s8 + $0x88] sm:$0xff]  }
 0x441   :  { %v4120_v45 = vpack.c.bf16 %v1940_v54, %v1940_v54  ;;  %v6834_v54 = vld [vmem:[%s8970_s8 + $0x130] sm:$0xff]  }
 0x442   :  { %6096 = vmatpush3.bf16.msra.mxu0 %v6786_v41 }
 0x443   :  { %6097 = vmatprep.subr.bf16.mxu0 %v6787_v24 }
 0x446   :  { %6098 = vmatpush3.bf16.msra.mxu0 %v6788_v17 }
 0x447   :  { %6105 = vmatprep.subr.bf16.mxu0 %v6789_v1  ;;  %v6806_v1 = vld [vmem:[%s8970_s8 + $0x80] sm:$0xff]  }
 0x4c2   :  { %v4110_v29 = vpop.f32.mrb[12].mxu1 }
 0x4c3   :  { %v6219_v25 = vadd.f32 %v4110_v29, %v2297_v11  ;;  %v4112_v55 = vpop.f32.mrb[13].mxu1  ;;  %v6810_v11 = vld [vmem:[%s8970_s8 + $0x90] sm:$0xff]   ;;  %v6812_v29 = vld [vmem:[%s8970_s8 + $0x98] sm:$0xff]  }
 0x4c4   :  { %v6220_v52 = vadd.f32 %v4112_v55, %v2301_v4  ;;  %v4114_v49 = vpop.f32.mrb[14].mxu1  ;;  %v7130_v4 = vpop.eup %7129  ;;  %v6813_v55 = vld [vmem:[%s8970_s8 + $0xe0] sm:$0xff]  }
 0x4c5   :  { %v4115_v30 = vpop.f32.mrb[15].mxu1  ;;  %v4291_v58 = vpack.c.bf16 %v6219_v25, %v6219_v25  ;;  %v7132_v26 = vpop.eup %7131  ;;  %v1909_v50 = vadd.f32 1.0, %v7130_v4  ;;  %v6815_v49 = vld [vmem:[%s8970_s8 + $0xe8] sm:$0xff]  }
 0x4c6   :  { %v4292_v28 = vpack.c.bf16 %v6220_v52, %v6220_v52  ;;  %v1912_v25 = vadd.f32 1.0, %v7132_v26  ;;  %v8815_v52 = vld [vmem:[#allocation5 + $0x8] sm:$0x3]  ;;  %v6842_v26 = vld [vmem:[%s8970_s8 + $0x210] sm:$0xff]  }
 0x4c7   :  { %7133 = vrcp.f32 %v1909_v50  ;;  %v1496_v30 = vrot.slane %v8815_v52, %v9285_v12  ;;  %v6818_v12 = vld [vmem:[%s8970_s8 + $0xb0] sm:$0xff]   ;;  %v6840_v4 = vld [vmem:[%s8970_s8 + $0x208] sm:$0xff]  }
 0x4c8   :  { %4789 = vmatprep.mubr.bf16.mxu0 %v4292_v28  ;;  %7135 = vrcp.f32 %v1912_v25  ;;  %v6816_v28 = vld [vmem:[%s8970_s8 + $0xa8] sm:$0xff]  }
 0x4c9   :  { %4790 = vmatmul.mubr.bf16.vlgmr.msra.gmra.mrb[24].mxu0 %v4291_v58 }
 0x4ca   :  { %6106 = vmatpush3.bf16.msra.mxu0 %v6790_v20  ;;  %5309 = vmatprep.mubr.bf16.mxu0 %v4118_v51  ;;  %v6817_v20 = vld [vmem:[%s8970_s8 + $0xf0] sm:$0xff]   ;;  %v8829_v51 = vadd.f32 %v8646_v43, %v1496_v30  ;;  %v5615_v43 = vmul.f32 -1.442695, %v8638_v18  ;;  %v6848_v30 = vld [vmem:[%s8970_s8 + $0x228] sm:$0xff]  }
 0x4cb   :  { %6107 = vmatprep.subr.bf16.mxu0 %v6791_v37 }
 0x4cc   :  { %7137 = vpow2.f32 %v5615_v43 }
 0x4ce   :  { %6108 = vmatpush3.bf16.msra.mxu0 %v6792_v38 }
 0x4cf   :  { %6109 = vmatprep.subr.bf16.mxu0 %v6793_v63 }
 0x4d2   :  { %6110 = vmatpush3.bf16.msra.mxu0 %v6794_v14 }
 0x4d3   :  { %6111 = vmatprep.subr.bf16.mxu0 %v6795_v48  ;;  %v7134_v48 = vpop.eup %7133 }
 0x4d4   :  { %v7136_v0 = vpop.eup %7135 }
 0x4d6   :  { %6112 = vmatpush3.bf16.msra.mxu0 %v6796_v7  ;;  %v5620_v7 = vmul.f32 -1.442695, %v8829_v51 }
 0x4d7   :  { %6113 = vmatprep.subr.bf16.mxu0 %v6797_v44  ;;  %v1939_v44 = vmul.f32 %v7134_v48, %v8626_v62  ;;  %v6823_v62 = vld [vmem:[%s8970_s8 + $0x148] sm:$0xff]  }
 0x4d8   :  { %7139 = vpow2.f32 %v5620_v7 }
 0x4da   :  { %6114 = vmatpush3.bf16.msra.mxu0 %v6798_v61  ;;  %v6821_v61 = vld [vmem:[%s8970_s8 + $0x140] sm:$0xff]  }
 0x4db   :  { %6115 = vmatprep.subr.bf16.mxu0 %v6799_v60  ;;  %v1942_v60 = vmul.f32 %v7136_v0, %v8642_v8  ;;  %v6824_v8 = vld [vmem:[%s8970_s8 + $0x108] sm:$0xff]  }
 0x4dc   :  { %v6055_v46 = vpop.f32.mrb[16].mxu0 }
 0x4dd   :  { %v6056_v13 = vpop.f32.mrb[17].mxu0 }
 0x4de   :  { %v8768_v39 = vadd.f32 %v6056_v13, %v6055_v46  ;;  %6116 = vmatpush3.bf16.msra.mxu0 %v6800_v16  ;;  %v6058_v21 = vpop.f32.mrb[18].mxu0  ;;  %v6822_v16 = vld [vmem:[%s8970_s8 + $0x100] sm:$0xff]   ;;  %v4122_v46 = vpack.c.bf16 %v1942_v60, %v1942_v60  ;;  %v6825_v13 = vld [vmem:[%s8970_s8 + $0x150] sm:$0xff]  }
 0x4df   :  { %v6059_v2 = vpop.f32.mrb[19].mxu0  ;;  %6117 = vmatprep.subr.bf16.mxu0 %v6801_v9  ;;  %v4119_v9 = vpack.c.bf16 %v1939_v44, %v1939_v44  ;;  %v7138_v21 = vpop.eup %7137 }
 0x4e2   :  { %6118 = vmatpush3.bf16.msra.mxu0 %v6802_v35  ;;  %v6187_v56 = vpop.f32.mrb[16].mxu1  ;;  %v6827_v35 = vld [vmem:[%s8970_s8 + $0x158] sm:$0xff]   ;;  %v7140_v2 = vpop.eup %7139 }
 0x4e3   :  { %v6188_v42 = vpop.f32.mrb[17].mxu1  ;;  %6119 = vmatprep.subr.bf16.mxu0 %v6803_v15  ;;  %v1911_v15 = vadd.f32 1.0, %v7138_v21  ;;  %v1916_v40 = vadd.f32 1.0, %v7140_v2 }
 0x4e4   :  { %v8786_v41 = vadd.f32 %v6188_v42, %v6187_v56  ;;  %v6190_v24 = vpop.f32.mrb[18].mxu1  ;;  %v6831_v56 = vld [vmem:[%s8970_s8 + $0x168] sm:$0xff]   ;;  %v6833_v42 = vld [vmem:[%s8970_s8 + $0x170] sm:$0xff]  }
 0x4e5   :  { %v6191_v17 = vpop.f32.mrb[19].mxu1  ;;  %7141 = vrcp.f32 %v1911_v15 }
 0x4e6   :  { %6120 = vmatpush3.bf16.msra.mxu0 %v6804_v27  ;;  %7143 = vrcp.f32 %v1916_v40  ;;  %v1492_v27 = vrot.slane %v8815_v52, %v9283_v47  ;;  %v6835_v47 = vld [vmem:[%s8970_s8 + $0x178] sm:$0xff]   ;;  %v6846_v52 = vld [vmem:[%s8970_s8 + $0x220] sm:$0xff]  }
 0x4e7   :  { %6127 = vmatprep.subr.bf16.mxu0 %v6805_v31 }
 0x4e8   :  { %v1871_v31 = vadd.f32 %v8644_v10, %v1492_v27 }
 0x4e9   :  { %5310 = vmatmul.mubr.bf16.vlgmr.msra.gmra.mrb[28].mxu0 %v4117_v23  ;;  %v6836_v23 = vld [vmem:[%s8970_s8 + $0x138] sm:$0xff]  }
 0x4ea   :  { %6128 = vmatpush3.bf16.msra.mxu0 %v6806_v1  ;;  %5349 = vmatprep.mubr.bf16.mxu0 %v4120_v45  ;;  %v5619_v1 = vmul.f32 -1.442695, %v1871_v31 }
 0x4eb   :  { %6129 = vmatprep.subr.bf16.mxu0 %v6807_v19  ;;  %v6837_v19 = vld [vmem:[%s8970_s8 + $0x240] sm:$0xff]  }
 0x4ec   :  { %7145 = vpow2.f32 %v5619_v1 }
 0x4ee   :  { %6130 = vmatpush3.bf16.msra.mxu0 %v6808_v33  ;;  %v6838_v33 = vld [vmem:[%s8970_s8 + $0x200] sm:$0xff]  }
 0x4ef   :  { %6131 = vmatprep.subr.bf16.mxu0 %v6809_v36  ;;  %v7142_v24 = vpop.eup %7141 }
 0x4f0   :  { %v7144_v17 = vpop.eup %7143  ;;  %v1941_v10 = vmul.f32 %v7142_v24, %v8638_v18 }
 0x4f1   :  { %v1946_v45 = vmul.f32 %v7144_v17, %v8829_v51  ;;  %v6852_v51 = vld [vmem:[%s8970_s8 + $0x238] sm:$0xff]  }
 0x4f2   :  { %6132 = vmatpush3.bf16.msra.mxu0 %v6810_v11  ;;  %v4121_v36 = vpack.c.bf16 %v1941_v10, %v1941_v10  ;;  %v6839_v11 = vld [vmem:[%s8970_s8 + $0x248] sm:$0xff]  }
 0x4f3   :  { %6133 = vmatprep.subr.bf16.mxu0 %v6811_v22  ;;  %v4126_v18 = vpack.c.bf16 %v1946_v45, %v1946_v45  ;;  %v6841_v22 = vld [vmem:[%s8970_s8 + $0x250] sm:$0xff]  }
 0x4f6   :  { %6134 = vmatpush3.bf16.msra.mxu0 %v6812_v29  ;;  %v7146_v50 = vpop.eup %7145  ;;  %v6843_v29 = vld [vmem:[%s8970_s8 + $0x258] sm:$0xff]  }
 0x4f7   :  { %6135 = vmatprep.subr.bf16.mxu0 %v6813_v55  ;;  %v1915_v25 = vadd.f32 1.0, %v7146_v50  ;;  %v6844_v55 = vld [vmem:[%s8970_s8 + $0x218] sm:$0xff]  }
 0x4f9   :  { %7147 = vrcp.f32 %v1915_v25 }
 0x4fa   :  { %6136 = vmatpush3.bf16.msra.mxu0 %v6814_v53  ;;  %v6845_v53 = vld [vmem:[%s8970_s8 + $0x260] sm:$0xff]  }
 0x4fb   :  { %6137 = vmatprep.subr.bf16.mxu0 %v6815_v49  ;;  %v6847_v49 = vld [vmem:[%s8970_s8 + $0x268] sm:$0xff]  }
 0x4fc   :  { %v6077_v58 = vpop.f32.mrb[20].mxu0 }
 0x4fd   :  { %v6078_v37 = vpop.f32.mrb[21].mxu0 }
 0x4fe   :  { %v6079_v38 = vadd.f32 %v6078_v37, %v6077_v58  ;;  %v6080_v63 = vpop.f32.mrb[22].mxu0  ;;  %6138 = vmatpush3.bf16.msra.mxu0 %v6816_v28  ;;  %v6849_v28 = vld [vmem:[%s8970_s8 + $0x270] sm:$0xff]   ;;  %v6851_v58 = vld [vmem:[%s8970_s8 + $0x278] sm:$0xff]  }
 0x4ff   :  { %v6081_v14 = vpop.f32.mrb[23].mxu0  ;;  %6139 = vmatprep.subr.bf16.mxu0 %v6817_v20  ;;  %v6850_v20 = vld [vmem:[%s8970_s8 + $0x230] sm:$0xff]  }
 0x500   :  { %v8838_v59 = vadd.f32 %v6079_v38, %v8768_v39  ;;  %v6826_v39 = vld [vmem:[%s8970_s8 + $0x110] sm:$0xff]   ;;  %s7327_s8 = smov [#allocation13]  }
 0x501   :  { %s5492_s6 = sshll.u32 %s7327_s8, 4  ;;  %s5493_s6 = int_to_ptr.vmem [resolvable:$true] %s5492_s6 }
 0x502   :  { %6140 = vmatpush3.bf16.msra.mxu0 %v6818_v12  ;;  %s7281_s16 = scalar_lea.vmem %s5493_s6, 32  ;;  %p7286_p7 = scmp.lt.s32.totalorder %s5493_s6, %s5493_s6 }
 0x503   :  { %6141 = vmatprep.subr.bf16.mxu0 %v6819_v32  ;;  %v7148_v37 = vpop.eup %7147  ;;  %p7282_p6 = scmp.ne.s32.totalorder %s5493_s6, %s7281_s16  ;;  %p7287_p8 = scmp.lt.s32.totalorder %s7281_s16, %s7281_s16 }
 0x504   :  { %v1945_v38 = vmul.f32 %v7148_v37, %v1871_v31 }
 0x505   :  { %p7288_p9 = por %p7287_p8, %p7286_p7 }
 0x506   :  { %6142 = vmatpush3.bf16.msra.mxu0 %v6820_v57  ;;  %v4125_v63 = vpack.c.bf16 %v1945_v38, %v1945_v38 }
 0x507   :  { %6149 = vmatprep.subr.bf16.mxu0 %v6821_v61  ;;  %p7289_p10 = pnand %p7288_p9, %p7282_p6 }
 0x509   :  { %5350 = vmatmul.mubr.bf16.vlgmr.msra.gmra.mrb[32].mxu0 %v4119_v9 }
 0x50a   :  { %6150 = vmatpush3.bf16.msra.mxu0 %v6822_v16  ;;  %5389 = vmatprep.mubr.bf16.mxu0 %v4122_v46 }
 0x50b   :  { %6151 = vmatprep.subr.bf16.mxu0 %v6823_v62 }
 0x50e   :  { %6152 = vmatpush3.bf16.msra.mxu0 %v6824_v8 }
 0x50f   :  { %6153 = vmatprep.subr.bf16.mxu0 %v6825_v13 }
 0x512   :  { %6154 = vmatpush3.bf16.msra.mxu0 %v6826_v39 }
 0x513   :  { %6155 = vmatprep.subr.bf16.mxu0 %v6827_v35 }
 0x516   :  { %6156 = vmatpush3.bf16.msra.mxu0 %v6828_v6 }
 0x517   :  { %6157 = vmatprep.subr.bf16.mxu0 %v6829_v3 }
 0x51a   :  { %6158 = vmatpush3.bf16.msra.mxu0 %v6830_v5 }
 0x51b   :  { %6159 = vmatprep.subr.bf16.mxu0 %v6831_v56 }
 0x51e   :  { %6160 = vmatpush3.bf16.msra.mxu0 %v6832_v34 }
 0x51f   :  { %6161 = vmatprep.subr.bf16.mxu0 %v6833_v42  ;;  %v6038_v42 = vld [vmem:[#allocation11] ss:$0 sm:$0xff] }
 0x522   :  { %6162 = vmatpush3.bf16.msra.mxu0 %v6834_v54 }
 0x523   :  { %6163 = vmatprep.subr.bf16.mxu0 %v6835_v47 }
 0x526   :  { %6164 = vmatpush3.bf16.msra.mxu0 %v6836_v23 }
 0x527   :  { %6193 = vmatprep.subr.bf16.mxu0 %v6837_v19 }
 0x529   :  { %5390 = vmatmul.mubr.bf16.vlgmr.msra.gmra.mrb[36].mxu0 %v4121_v36 }
 0x52a   :  { %6194 = vmatpush3.bf16.msra.mxu0 %v6838_v33  ;;  %5469 = vmatprep.mubr.bf16.mxu0 %v4126_v18 }
 0x52b   :  { %6195 = vmatprep.subr.bf16.mxu0 %v6839_v11 }
 0x52e   :  { %6196 = vmatpush3.bf16.msra.mxu0 %v6840_v4 }
 0x52f   :  { %6197 = vmatprep.subr.bf16.mxu0 %v6841_v22 }
 0x532   :  { %6198 = vmatpush3.bf16.msra.mxu0 %v6842_v26 }
 0x533   :  { %6199 = vmatprep.subr.bf16.mxu0 %v6843_v29 }
 0x536   :  { %6200 = vmatpush3.bf16.msra.mxu0 %v6844_v55 }
 0x537   :  { %6201 = vmatprep.subr.bf16.mxu0 %v6845_v53 }
 0x53a   :  { %6202 = vmatpush3.bf16.msra.mxu0 %v6846_v52 }
 0x53b   :  { %6203 = vmatprep.subr.bf16.mxu0 %v6847_v49 }
 0x53e   :  { %6204 = vmatpush3.bf16.msra.mxu0 %v6848_v30 }
 0x53f   :  { %6205 = vmatprep.subr.bf16.mxu0 %v6849_v28 }
 0x542   :  { %6206 = vmatpush3.bf16.msra.mxu0 %v6850_v20 }
 0x543   :  { %6207 = vmatprep.subr.bf16.mxu0 %v6851_v58 }
 0x546   :  { %6208 = vmatpush3.bf16.msra.mxu0 %v6852_v51 }
 0x549   :  { %5470 = vmatmul.mubr.bf16.vlgmr.msra.gmra.mrb[40].mxu0 %v4125_v63 }
 0x59c   :  { %v6099_v12 = vpop.f32.mrb[24].mxu0 }
 0x59d   :  { %v6100_v14 = vpop.f32.mrb[25].mxu0 }
 0x59e   :  { %v6101_v32 = vadd.f32 %v6100_v14, %v6099_v12  ;;  %v6102_v48 = vpop.f32.mrb[26].mxu0 }
 0x59f   :  { %v6103_v0 = vpop.f32.mrb[27].mxu0 }
 0x5a0   :  { %v4792_v43 = vadd.f32 %v6101_v32, %v8838_v59 }
 0x5bc   :  { %v6121_v7 = vpop.f32.mrb[28].mxu0 }
 0x5bd   :  { %v6122_v57 = vpop.f32.mrb[29].mxu0 }
 0x5be   :  { %v6123_v44 = vadd.f32 %v6122_v57, %v6121_v7  ;;  %v6124_v61 = vpop.f32.mrb[30].mxu0 }
 0x5bf   :  { %v6125_v60 = vpop.f32.mrb[31].mxu0 }
 0x5c0   :  { %v5312_v16 = vadd.f32 %v6123_v44, %v4792_v43 }
 0x5dc   :  { %v6143_v9 = vpop.f32.mrb[32].mxu0 }
 0x5dd   :  { %v6144_v62 = vpop.f32.mrb[33].mxu0 }
 0x5de   :  { %v6145_v46 = vadd.f32 %v6144_v62, %v6143_v9  ;;  %v6146_v8 = vpop.f32.mrb[34].mxu0 }
 0x5df   :  { %v6147_v13 = vpop.f32.mrb[35].mxu0 }
 0x5e0   :  { %v5352_v39 = vadd.f32 %v6145_v46, %v5312_v16 }
 0x5fc   :  { %v6165_v21 = vpop.f32.mrb[36].mxu0 }
 0x5fd   :  { %v6166_v35 = vpop.f32.mrb[37].mxu0 }
 0x5fe   :  { %v6167_v2 = vadd.f32 %v6166_v35, %v6165_v21  ;;  %v6168_v15 = vpop.f32.mrb[38].mxu0 }
 0x5ff   :  { %v6169_v6 = vpop.f32.mrb[39].mxu0 }
 0x600   :  { %v5392_v40 = vadd.f32 %v6167_v2, %v5352_v39 }
 0x602   :  { %v5432_v59 = vadd.f32 %v8786_v41, %v5392_v40 }
 0x61c   :  { %v6209_v3 = vpop.f32.mrb[40].mxu0 }
 0x61d   :  { %v6210_v5 = vpop.f32.mrb[41].mxu0 }
 0x61e   :  { %v6211_v56 = vadd.f32 %v6210_v5, %v6209_v3  ;;  %v6212_v27 = vpop.f32.mrb[42].mxu0 }
 0x61f   :  { %v6213_v34 = vpop.f32.mrb[43].mxu0 }
 0x620   :  { %v5472_v31 = vadd.f32 %v6211_v56, %v5432_v59 }
 0x622   :  { %v5484_v54 = vadd.f32 %v6038_v42, %v5472_v31 }
 0x624   :  { %5485 = vst [vmem:[#allocation13] sm:$0x3] %v5484_v54 }
 0x625   :  { %7292 = shalt.err (!%p7289_p10)
}
 0x626   :  { %s7293_s21 = scalar_lea.hbm %s8973_s11, 32 }
 0x627   :  { %p7294_p11 = scmp.ne.s32.totalorder %s8973_s11, %s7293_s21  ;;  %p7297_p12 = scmp.lt.u32.totalorder %s7293_s21, %s8973_s11 }
 0x629   :  { %p7299_p13 = pnand %p7297_p12, %p7294_p11 }
 0x62b   :  { %7302 = shalt.err (!%p7299_p13)
}
 0x62c   :  { %5495 = dma.vmem_to_hbm [thread:$0]  %s5493_s6, 32, %s8973_s11, [#allocation4]  }
 0x62d   :  { %7311 = dma.done.wait [#allocation4], 32  }
 0x62e   :  { %7312 = vsyncadd [#allocation4], 4294967264 }
 0x62f   :  { %5499 = vsyncpa [#allocation3], 1 }
 0x630   :  { %5500 = vsyncpa [#allocation6], 1 }
 0x631   :  { %5501 = vsyncpa [#allocation9], 1 }
 0x632   :  { %5502 = vsyncpa [#allocation12], 1 }
 0x633   :  { %5503 = vsyncpa [#allocation4], 1 }

</bundles_post_ra>
